<compile_context>
chip_gen: v7x
topology: tpu7x:2x2x1
jax: 0.10.0
libtpu: 0.0.40
codegen_flags: <defaults>
</compile_context>

<pallas_src>
import math

import jax
import jax.numpy as jnp
from jax import lax
from jax.experimental import pallas as pl
from jax.experimental.pallas import tpu as pltpu


def _round_up(x, m):
    return (x + m - 1) // m * m


# ---------------------------------------------------------------------------
# Fused Discriminator kernel (single invocation).
# ---------------------------------------------------------------------------
def _make_discrim_kernel(n_layers, hidden, bs, steps):
    """Args (refs), in order:
      x (T*bs, S), a (T*bs, A), h0 (L, bs, H),
      per layer l (10 refs): Wxr Wxz Wxn (in_l,H), Whr Whz Whn (H,H),
                             br bz bxn bhn (1,H),
      W1h (H,D), W1a (A,D), b1 (1,D), W2 (D,128), b2 (1,128),
      out (T*bs, 128),
      scratch: gxr gxz gxn hseq (T*bs, H) f32.
    """

    def kernel(*args):
        n_w = 10 * n_layers
        x_ref, a_ref, h0_ref = args[0], args[1], args[2]
        w_refs = args[3:3 + n_w]
        w1h_ref, w1a_ref, b1_ref, w2_ref, b2_ref = args[3 + n_w:8 + n_w]
        out_ref = args[8 + n_w]
        gxr, gxz, gxn, hseq = args[9 + n_w:13 + n_w]

        for l in range(n_layers):
            (wxr_ref, wxz_ref, wxn_ref, whr_ref, whz_ref, whn_ref,
             br_ref, bz_ref, bxn_ref, bhn_ref) = w_refs[10 * l:10 * l + 10]

            # Layer input: x for layer 0, previous layer's full sequence after.
            inp = x_ref[...] if l == 0 else hseq[...]          # (T*bs, in_l)

            # Hoisted input projections: one batched matmul per gate,
            # lane-aligned [*, H] results (no gate slicing inside a vreg).
            gxr[...] = (jnp.dot(inp, wxr_ref[...],
                                preferred_element_type=jnp.float32) + br_ref[...])
            gxz[...] = (jnp.dot(inp, wxz_ref[...],
                                preferred_element_type=jnp.float32) + bz_ref[...])
            gxn[...] = (jnp.dot(inp, wxn_ref[...],
                                preferred_element_type=jnp.float32) + bxn_ref[...])

            # Recurrent weights loaded exactly once per layer.
            whr = whr_ref[...]
            whz = whz_ref[...]
            whn = whn_ref[...]
            bhn = bhn_ref[...]

            def step(t, h):
                row = pl.multiple_of(t * bs, bs)               # sublane aligned
                gr = gxr[pl.ds(row, bs), :]
                gz = gxz[pl.ds(row, bs), :]
                gn = gxn[pl.ds(row, bs), :]
                r = jax.nn.sigmoid(
                    gr + jnp.dot(h, whr, preferred_element_type=jnp.float32))
                z = jax.nn.sigmoid(
                    gz + jnp.dot(h, whz, preferred_element_type=jnp.float32))
                n = jnp.tanh(
                    gn + r * (jnp.dot(h, whn,
                                      preferred_element_type=jnp.float32) + bhn))
                h_new = (1.0 - z) * n + z * h
                hseq[pl.ds(row, bs), :] = h_new
                return h_new

            lax.fori_loop(0, steps, step, h0_ref[l], unroll=True)

        # Batched dense head over all T*bs rows (dense1 split avoids concat).
        p = hseq[...]                                          # (T*bs, H)
        act = a_ref[...]                                       # (T*bs, A)
        d1 = (jnp.dot(p, w1h_ref[...], preferred_element_type=jnp.float32)
              + jnp.dot(act, w1a_ref[...], preferred_element_type=jnp.float32)
              + b1_ref[...])
        d1 = jnp.maximum(d1, 0.0)                              # ReLU
        logits = (jnp.dot(d1, w2_ref[...],
                          preferred_element_type=jnp.float32) + b2_ref[...])
        out_ref[...] = jax.nn.sigmoid(logits)                  # lane-dense store

    return kernel


# ---------------------------------------------------------------------------
# Wrapper: host-side weight re-layout + pallas_call.
# ---------------------------------------------------------------------------
def discriminator_forward(weights, x, a, h=None):
    """x, a: (seq_len, batch, y_dim) f32. Returns prob (seq_len, batch, 1)."""
    steps, batch, state_dim = x.shape
    action_dim = a.shape[-1]
    gru = weights['gru']
    n_layers = len(gru)
    hidden = gru[0]['w_hh'].shape[1]

    bs = _round_up(batch, 8)                   # pad batch to sublane width
    tb = steps * bs

    def pad_b(v):
        if bs == batch:
            return v
        return jnp.pad(v, ((0, 0), (0, bs - batch), (0, 0)))

    x_flat = pad_b(x).astype(jnp.float32).reshape(tb, state_dim)
    a_flat = pad_b(a).astype(jnp.float32).reshape(tb, action_dim)

    if h is None:
        h0 = jnp.zeros((n_layers, bs, hidden), jnp.float32)   # init_hidden
    else:
        h0 = jnp.zeros((n_layers, bs, hidden), jnp.float32).at[:, :batch].set(h)

    H = hidden
    flat_w = []
    for lw in gru:                              # torch packing: [r | z | n]
        w_ih, w_hh = lw['w_ih'], lw['w_hh']     # (3H, in), (3H, H)
        b_ih, b_hh = lw['b_ih'], lw['b_hh']     # (3H,), (3H,)
        flat_w += [
            jnp.transpose(w_ih[0:H]),                       # Wxr (in, H)
            jnp.transpose(w_ih[H:2 * H]),                   # Wxz
            jnp.transpose(w_ih[2 * H:]),                    # Wxn
            jnp.transpose(w_hh[0:H]),                       # Whr (H, H)
            jnp.transpose(w_hh[H:2 * H]),                   # Whz
            jnp.transpose(w_hh[2 * H:]),                    # Whn
            (b_ih[0:H] + b_hh[0:H]).reshape(1, H),          # br = b_ir + b_hr
            (b_ih[H:2 * H] + b_hh[H:2 * H]).reshape(1, H),  # bz
            b_ih[2 * H:].reshape(1, H),                     # bxn
            b_hh[2 * H:].reshape(1, H),                     # bhn
        ]

    w1, b1 = weights['dense1_w'], weights['dense1_b']       # (D, H+A), (D,)
    w2, b2 = weights['dense2_w'], weights['dense2_b']       # (1, D), (1,)
    d1_out = w1.shape[0]
    w1h = jnp.transpose(w1[:, :hidden])                      # (H, D) -> p part
    w1a = jnp.transpose(w1[:, hidden:])                      # (A, D) -> a part
    b1r = b1.reshape(1, d1_out)
    # dense2 zero-padded to 128 lanes so the final HBM store is unmasked.
    w2p = jnp.zeros((d1_out, 128), jnp.float32).at[:, 0].set(w2[0])
    b2p = jnp.zeros((1, 128), jnp.float32).at[0, 0].set(b2[0])

    inputs = [x_flat, a_flat, h0] + flat_w + [w1h, w1a, b1r, w2p, b2p]

    in_specs = [pl.BlockSpec(v.shape, lambda i, nd=v.ndim: (0,) * nd)
                for v in inputs]

    kernel = _make_discrim_kernel(n_layers, hidden, bs, steps)

    # Everything here is KB-scale; when scaling seq_len/rnn_dim to production
    # sizes, cap the resident chunk and set vmem_limit_bytes (v7x: 64 MiB VMEM).
    out = pl.pallas_call(
        kernel,
        out_shape=jax.ShapeDtypeStruct((tb, 128), jnp.float32),
        grid_spec=pltpu.PrefetchScalarGridSpec(
            num_scalar_prefetch=0,
            grid=(1,),
            in_specs=in_specs,
            out_specs=pl.BlockSpec((tb, 128), lambda i: (0, 0)),
            scratch_shapes=[pltpu.VMEM((tb, hidden), jnp.float32)] * 4,
        ),
        compiler_params=pltpu.CompilerParams(
            dimension_semantics=("arbitrary",)),
    )(*inputs)

    return out[:, :1].reshape(steps, bs, 1)[:, :batch]


# ---------------------------------------------------------------------------
# Pure-JAX reference (mirrors the PyTorch module) + deterministic init.
# ---------------------------------------------------------------------------
def discriminator_ref(weights, x, a, h=None):
    T, batch, _ = x.shape
    gru = weights['gru']
    L = len(gru)
    H = gru[0]['w_hh'].shape[1]
    hs = (list(h) if h is not None
          else [jnp.zeros((batch, H), jnp.float32) for _ in range(L)])
    ps = []
    for t in range(T):
        inp = x[t]
        for l in range(L):
            w_ih, w_hh = gru[l]['w_ih'], gru[l]['w_hh']
            b_ih, b_hh = gru[l]['b_ih'], gru[l]['b_hh']
            gx = inp @ w_ih.T + b_ih
            gh = hs[l] @ w_hh.T + b_hh
            r = jax.nn.sigmoid(gx[:, :H] + gh[:, :H])
            z = jax.nn.sigmoid(gx[:, H:2 * H] + gh[:, H:2 * H])
            n = jnp.tanh(gx[:, 2 * H:] + r * gh[:, 2 * H:])
            hs[l] = (1.0 - z) * n + z * hs[l]
            inp = hs[l]
        ps.append(hs[-1])
    p = jnp.stack(ps, axis=0)                                  # (T, batch, H)
    pc = jnp.concatenate([p, a], axis=2)
    d1 = jax.nn.relu(pc @ weights['dense1_w'].T + weights['dense1_b'])
    return jax.nn.sigmoid(d1 @ weights['dense2_w'].T + weights['dense2_b'])


def init_weights(key, params):
    H = params['discrim_rnn_dim']
    Y = params['y_dim']
    L = params['discrim_num_layers']
    s = 1.0 / math.sqrt(H)
    gru = []
    for l in range(L):
        d_in = Y if l == 0 else H
        key, k1, k2, k3, k4 = jax.random.split(key, 5)
        gru.append(dict(
            w_ih=jax.random.uniform(k1, (3 * H, d_in), jnp.float32, -s, s),
            w_hh=jax.random.uniform(k2, (3 * H, H), jnp.float32, -s, s),
            b_ih=jax.random.uniform(k3, (3 * H,), jnp.float32, -s, s),
            b_hh=jax.random.uniform(k4, (3 * H,), jnp.float32, -s, s),
        ))
    key, k1, k2, k3, k4 = jax.random.split(key, 5)
    s1 = 1.0 / math.sqrt(H + Y)
    s2 = 1.0 / math.sqrt(H)
    return dict(
        gru=gru,
        dense1_w=jax.random.uniform(k1, (H, H + Y), jnp.float32, -s1, s1),
        dense1_b=jax.random.uniform(k2, (H,), jnp.float32, -s1, s1),
        dense2_w=jax.random.uniform(k3, (1, H), jnp.float32, -s2, s2),
        dense2_b=jax.random.uniform(k4, (1,), jnp.float32, -s2, s2),
    )


if __name__ == "__main__":
    params = {
        'discrim_rnn_dim': 32,
        'y_dim': 4,
        'discrim_num_layers': 2,
        'cuda': False,
    }
    seq_len, batch = 8, 4

    key = jax.random.PRNGKey(0)
    key, kx, ka = jax.random.split(key, 3)
    x = jax.random.normal(kx, (seq_len, batch, params['y_dim']), jnp.float32)
    a = jax.random.normal(ka, (seq_len, batch, params['y_dim']), jnp.float32)
    weights = init_weights(jax.random.PRNGKey(1), params)

    prob = discriminator_forward(weights, x, a)
    jax.block_until_ready(prob)

    ref = discriminator_ref(weights, x, a)
    err = float(jnp.max(jnp.abs(prob - ref)))
    if prob.shape != (seq_len, batch, 1) or not (err < 5e-3):
        raise SystemExit(f"MISMATCH shape={prob.shape} max_abs_err={err}")
    print("KERNEL_OK")
</pallas_src>

<mosaic_0001>
module attributes {stable_mosaic.version = 11 : i64} {
  func.func @kernel(%arg0: i32, %arg1: memref<64x4xf32, #tpu.memory_space<vmem>>, %arg2: memref<64x4xf32, #tpu.memory_space<vmem>>, %arg3: memref<2x8x32xf32, #tpu.memory_space<vmem>>, %arg4: memref<4x32xf32, #tpu.memory_space<vmem>>, %arg5: memref<4x32xf32, #tpu.memory_space<vmem>>, %arg6: memref<4x32xf32, #tpu.memory_space<vmem>>, %arg7: memref<32x32xf32, #tpu.memory_space<vmem>>, %arg8: memref<32x32xf32, #tpu.memory_space<vmem>>, %arg9: memref<32x32xf32, #tpu.memory_space<vmem>>, %arg10: memref<1x32xf32, #tpu.memory_space<vmem>>, %arg11: memref<1x32xf32, #tpu.memory_space<vmem>>, %arg12: memref<1x32xf32, #tpu.memory_space<vmem>>, %arg13: memref<1x32xf32, #tpu.memory_space<vmem>>, %arg14: memref<32x32xf32, #tpu.memory_space<vmem>>, %arg15: memref<32x32xf32, #tpu.memory_space<vmem>>, %arg16: memref<32x32xf32, #tpu.memory_space<vmem>>, %arg17: memref<32x32xf32, #tpu.memory_space<vmem>>, %arg18: memref<32x32xf32, #tpu.memory_space<vmem>>, %arg19: memref<32x32xf32, #tpu.memory_space<vmem>>, %arg20: memref<1x32xf32, #tpu.memory_space<vmem>>, %arg21: memref<1x32xf32, #tpu.memory_space<vmem>>, %arg22: memref<1x32xf32, #tpu.memory_space<vmem>>, %arg23: memref<1x32xf32, #tpu.memory_space<vmem>>, %arg24: memref<32x32xf32, #tpu.memory_space<vmem>>, %arg25: memref<4x32xf32, #tpu.memory_space<vmem>>, %arg26: memref<1x32xf32, #tpu.memory_space<vmem>>, %arg27: memref<32x128xf32, #tpu.memory_space<vmem>>, %arg28: memref<1x128xf32, #tpu.memory_space<vmem>>, %arg29: memref<64x128xf32, #tpu.memory_space<vmem>>, %arg30: memref<64x32xf32, #tpu.memory_space<vmem>>, %arg31: memref<64x32xf32, #tpu.memory_space<vmem>>, %arg32: memref<64x32xf32, #tpu.memory_space<vmem>>, %arg33: memref<64x32xf32, #tpu.memory_space<vmem>>) attributes {dimension_semantics = [#tpu.dimension_semantics<arbitrary>], iteration_bounds = array<i64: 1>, scalar_prefetch = 0 : i64, scratch_operands = 4 : i64, tpu.core_type = #tpu.core_type<tc>, window_params = [{pipeline_mode = #tpu.pipeline_mode<synchronous>, transform_indices = @transform_0, window_bounds = array<i64: 64, 4>}, {pipeline_mode = #tpu.pipeline_mode<synchronous>, transform_indices = @transform_1, window_bounds = array<i64: 64, 4>}, {pipeline_mode = #tpu.pipeline_mode<synchronous>, transform_indices = @transform_2, window_bounds = array<i64: 2, 8, 32>}, {pipeline_mode = #tpu.pipeline_mode<synchronous>, transform_indices = @transform_3, window_bounds = array<i64: 4, 32>}, {pipeline_mode = #tpu.pipeline_mode<synchronous>, transform_indices = @transform_4, window_bounds = array<i64: 4, 32>}, {pipeline_mode = #tpu.pipeline_mode<synchronous>, transform_indices = @transform_5, window_bounds = array<i64: 4, 32>}, {pipeline_mode = #tpu.pipeline_mode<synchronous>, transform_indices = @transform_6, window_bounds = array<i64: 32, 32>}, {pipeline_mode = #tpu.pipeline_mode<synchronous>, transform_indices = @transform_7, window_bounds = array<i64: 32, 32>}, {pipeline_mode = #tpu.pipeline_mode<synchronous>, transform_indices = @transform_8, window_bounds = array<i64: 32, 32>}, {pipeline_mode = #tpu.pipeline_mode<synchronous>, transform_indices = @transform_9, window_bounds = array<i64: 1, 32>}, {pipeline_mode = #tpu.pipeline_mode<synchronous>, transform_indices = @transform_10, window_bounds = array<i64: 1, 32>}, {pipeline_mode = #tpu.pipeline_mode<synchronous>, transform_indices = @transform_11, window_bounds = array<i64: 1, 32>}, {pipeline_mode = #tpu.pipeline_mode<synchronous>, transform_indices = @transform_12, window_bounds = array<i64: 1, 32>}, {pipeline_mode = #tpu.pipeline_mode<synchronous>, transform_indices = @transform_13, window_bounds = array<i64: 32, 32>}, {pipeline_mode = #tpu.pipeline_mode<synchronous>, transform_indices = @transform_14, window_bounds = array<i64: 32, 32>}, {pipeline_mode = #tpu.pipeline_mode<synchronous>, transform_indices = @transform_15, window_bounds = array<i64: 32, 32>}, {pipeline_mode = #tpu.pipeline_mode<synchronous>, transform_indices = @transform_16, window_bounds = array<i64: 32, 32>}, {pipeline_mode = #tpu.pipeline_mode<synchronous>, transform_indices = @transform_17, window_bounds = array<i64: 32, 32>}, {pipeline_mode = #tpu.pipeline_mode<synchronous>, transform_indices = @transform_18, window_bounds = array<i64: 32, 32>}, {pipeline_mode = #tpu.pipeline_mode<synchronous>, transform_indices = @transform_19, window_bounds = array<i64: 1, 32>}, {pipeline_mode = #tpu.pipeline_mode<synchronous>, transform_indices = @transform_20, window_bounds = array<i64: 1, 32>}, {pipeline_mode = #tpu.pipeline_mode<synchronous>, transform_indices = @transform_21, window_bounds = array<i64: 1, 32>}, {pipeline_mode = #tpu.pipeline_mode<synchronous>, transform_indices = @transform_22, window_bounds = array<i64: 1, 32>}, {pipeline_mode = #tpu.pipeline_mode<synchronous>, transform_indices = @transform_23, window_bounds = array<i64: 32, 32>}, {pipeline_mode = #tpu.pipeline_mode<synchronous>, transform_indices = @transform_24, window_bounds = array<i64: 4, 32>}, {pipeline_mode = #tpu.pipeline_mode<synchronous>, transform_indices = @transform_25, window_bounds = array<i64: 1, 32>}, {pipeline_mode = #tpu.pipeline_mode<synchronous>, transform_indices = @transform_26, window_bounds = array<i64: 32, 128>}, {pipeline_mode = #tpu.pipeline_mode<synchronous>, transform_indices = @transform_27, window_bounds = array<i64: 1, 128>}, {pipeline_mode = #tpu.pipeline_mode<synchronous>, transform_indices = @transform_28, window_bounds = array<i64: 64, 128>}]} {
    %c0 = arith.constant 0 : index
    %c0_0 = arith.constant 0 : index
    %0 = vector.load %arg1[%c0, %c0_0] : memref<64x4xf32, #tpu.memory_space<vmem>>, vector<64x4xf32>
    %c0_1 = arith.constant 0 : index
    %c0_2 = arith.constant 0 : index
    %1 = vector.load %arg4[%c0_1, %c0_2] : memref<4x32xf32, #tpu.memory_space<vmem>>, vector<4x32xf32>
    %cst = arith.constant dense<0.000000e+00> : vector<64x32xf32>
    %2 = tpu.matmul %0, %1, %cst {dimension_numbers = #tpu.dot_dimension_numbers<[1], [0], [0], [1], [0, 0, 1, 1], [], []>} : vector<64x4xf32>, vector<4x32xf32>, vector<64x32xf32> -> vector<64x32xf32>
    %c0_3 = arith.constant 0 : index
    %c0_4 = arith.constant 0 : index
    %3 = vector.load %arg10[%c0_3, %c0_4] : memref<1x32xf32, #tpu.memory_space<vmem>>, vector<1x32xf32>
    %4 = vector.broadcast %3 : vector<1x32xf32> to vector<64x32xf32>
    %5 = arith.addf %2, %4 : vector<64x32xf32>
    %c0_5 = arith.constant 0 : index
    %c0_6 = arith.constant 0 : index
    %6 = vector.load %arg30[%c0_5, %c0_6] : memref<64x32xf32, #tpu.memory_space<vmem>>, vector<64x32xf32>
    tpu.vector_store %arg30[%c0_5, %c0_6], %5 {strides = array<i32>} : memref<64x32xf32, #tpu.memory_space<vmem>>, vector<64x32xf32>,
    %c0_7 = arith.constant 0 : index
    %c0_8 = arith.constant 0 : index
    %7 = vector.load %arg5[%c0_7, %c0_8] : memref<4x32xf32, #tpu.memory_space<vmem>>, vector<4x32xf32>
    %cst_9 = arith.constant dense<0.000000e+00> : vector<64x32xf32>
    %8 = tpu.matmul %0, %7, %cst_9 {dimension_numbers = #tpu.dot_dimension_numbers<[1], [0], [0], [1], [0, 0, 1, 1], [], []>} : vector<64x4xf32>, vector<4x32xf32>, vector<64x32xf32> -> vector<64x32xf32>
    %c0_10 = arith.constant 0 : index
    %c0_11 = arith.constant 0 : index
    %9 = vector.load %arg11[%c0_10, %c0_11] : memref<1x32xf32, #tpu.memory_space<vmem>>, vector<1x32xf32>
    %10 = vector.broadcast %9 : vector<1x32xf32> to vector<64x32xf32>
    %11 = arith.addf %8, %10 : vector<64x32xf32>
    %c0_12 = arith.constant 0 : index
    %c0_13 = arith.constant 0 : index
    %12 = vector.load %arg31[%c0_12, %c0_13] : memref<64x32xf32, #tpu.memory_space<vmem>>, vector<64x32xf32>
    tpu.vector_store %arg31[%c0_12, %c0_13], %11 {strides = array<i32>} : memref<64x32xf32, #tpu.memory_space<vmem>>, vector<64x32xf32>,
    %c0_14 = arith.constant 0 : index
    %c0_15 = arith.constant 0 : index
    %13 = vector.load %arg6[%c0_14, %c0_15] : memref<4x32xf32, #tpu.memory_space<vmem>>, vector<4x32xf32>
    %cst_16 = arith.constant dense<0.000000e+00> : vector<64x32xf32>
    %14 = tpu.matmul %0, %13, %cst_16 {dimension_numbers = #tpu.dot_dimension_numbers<[1], [0], [0], [1], [0, 0, 1, 1], [], []>} : vector<64x4xf32>, vector<4x32xf32>, vector<64x32xf32> -> vector<64x32xf32>
    %c0_17 = arith.constant 0 : index
    %c0_18 = arith.constant 0 : index
    %15 = vector.load %arg12[%c0_17, %c0_18] : memref<1x32xf32, #tpu.memory_space<vmem>>, vector<1x32xf32>
    %16 = vector.broadcast %15 : vector<1x32xf32> to vector<64x32xf32>
    %17 = arith.addf %14, %16 : vector<64x32xf32>
    %c0_19 = arith.constant 0 : index
    %c0_20 = arith.constant 0 : index
    %18 = vector.load %arg32[%c0_19, %c0_20] : memref<64x32xf32, #tpu.memory_space<vmem>>, vector<64x32xf32>
    tpu.vector_store %arg32[%c0_19, %c0_20], %17 {strides = array<i32>} : memref<64x32xf32, #tpu.memory_space<vmem>>, vector<64x32xf32>,
    %c0_21 = arith.constant 0 : index
    %c0_22 = arith.constant 0 : index
    %19 = vector.load %arg7[%c0_21, %c0_22] : memref<32x32xf32, #tpu.memory_space<vmem>>, vector<32x32xf32>
    %c0_23 = arith.constant 0 : index
    %c0_24 = arith.constant 0 : index
    %20 = vector.load %arg8[%c0_23, %c0_24] : memref<32x32xf32, #tpu.memory_space<vmem>>, vector<32x32xf32>
    %c0_25 = arith.constant 0 : index
    %c0_26 = arith.constant 0 : index
    %21 = vector.load %arg9[%c0_25, %c0_26] : memref<32x32xf32, #tpu.memory_space<vmem>>, vector<32x32xf32>
    %c0_27 = arith.constant 0 : index
    %c0_28 = arith.constant 0 : index
    %22 = vector.load %arg13[%c0_27, %c0_28] : memref<1x32xf32, #tpu.memory_space<vmem>>, vector<1x32xf32>
    %c0_29 = arith.constant 0 : index
    %c0_30 = arith.constant 0 : index
    %c0_31 = arith.constant 0 : index
    %23 = vector.load %arg3[%c0_29, %c0_30, %c0_31] : memref<2x8x32xf32, #tpu.memory_space<vmem>>, vector<1x8x32xf32>
    %24 = vector.shape_cast %23 : vector<1x8x32xf32> to vector<8x32xf32>
    %c0_i32 = arith.constant 0 : i32
    %c8_i32 = arith.constant 8 : i32
    %25 = arith.muli %c0_i32, %c8_i32 : i32
    %26 = tpu.assume_multiple %25, 8 : i32
    %27 = arith.index_cast %26 : i32 to index
    %c0_32 = arith.constant 0 : index
    %28 = vector.load %arg30[%27, %c0_32] : memref<64x32xf32, #tpu.memory_space<vmem>>, vector<8x32xf32>
    %29 = arith.index_cast %26 : i32 to index
    %c0_33 = arith.constant 0 : index
    %30 = vector.load %arg31[%29, %c0_33] : memref<64x32xf32, #tpu.memory_space<vmem>>, vector<8x32xf32>
    %31 = arith.index_cast %26 : i32 to index
    %c0_34 = arith.constant 0 : index
    %32 = vector.load %arg32[%31, %c0_34] : memref<64x32xf32, #tpu.memory_space<vmem>>, vector<8x32xf32>
    %cst_35 = arith.constant dense<0.000000e+00> : vector<8x32xf32>
    %33 = tpu.matmul %24, %19, %cst_35 {dimension_numbers = #tpu.dot_dimension_numbers<[1], [0], [0], [1], [0, 0, 1, 1], [], []>} : vector<8x32xf32>, vector<32x32xf32>, vector<8x32xf32> -> vector<8x32xf32>
    %34 = arith.addf %28, %33 : vector<8x32xf32>
    %35 = arith.negf %34 : vector<8x32xf32>
    %36 = math.exp %35 : vector<8x32xf32>
    %cst_36 = arith.constant 1.000000e+00 : f32
    %37 = vector.broadcast %cst_36 : f32 to vector<8x32xf32>
    %38 = arith.addf %37, %36 : vector<8x32xf32>
    %39 = arith.divf %37, %38 : vector<8x32xf32>
    %cst_37 = arith.constant dense<0.000000e+00> : vector<8x32xf32>
    %40 = tpu.matmul %24, %20, %cst_37 {dimension_numbers = #tpu.dot_dimension_numbers<[1], [0], [0], [1], [0, 0, 1, 1], [], []>} : vector<8x32xf32>, vector<32x32xf32>, vector<8x32xf32> -> vector<8x32xf32>
    %41 = arith.addf %30, %40 : vector<8x32xf32>
    %42 = arith.negf %41 : vector<8x32xf32>
    %43 = math.exp %42 : vector<8x32xf32>
    %cst_38 = arith.constant 1.000000e+00 : f32
    %44 = vector.broadcast %cst_38 : f32 to vector<8x32xf32>
    %45 = arith.addf %44, %43 : vector<8x32xf32>
    %46 = arith.divf %44, %45 : vector<8x32xf32>
    %cst_39 = arith.constant dense<0.000000e+00> : vector<8x32xf32>
    %47 = tpu.matmul %24, %21, %cst_39 {dimension_numbers = #tpu.dot_dimension_numbers<[1], [0], [0], [1], [0, 0, 1, 1], [], []>} : vector<8x32xf32>, vector<32x32xf32>, vector<8x32xf32> -> vector<8x32xf32>
    %48 = vector.broadcast %22 : vector<1x32xf32> to vector<8x32xf32>
    %49 = arith.addf %47, %48 : vector<8x32xf32>
    %50 = arith.mulf %39, %49 : vector<8x32xf32>
    %51 = arith.addf %32, %50 : vector<8x32xf32>
    %52 = math.tanh %51 : vector<8x32xf32>
    %cst_40 = arith.constant 1.000000e+00 : f32
    %53 = vector.broadcast %cst_40 : f32 to vector<8x32xf32>
    %54 = arith.subf %53, %46 : vector<8x32xf32>
    %55 = arith.mulf %54, %52 : vector<8x32xf32>
    %56 = arith.mulf %46, %24 : vector<8x32xf32>
    %57 = arith.addf %55, %56 : vector<8x32xf32>
    %58 = arith.index_cast %26 : i32 to index
    %c0_41 = arith.constant 0 : index
    %59 = vector.load %arg33[%58, %c0_41] : memref<64x32xf32, #tpu.memory_space<vmem>>, vector<8x32xf32>
    tpu.vector_store %arg33[%58, %c0_41], %57 {strides = array<i32>} : memref<64x32xf32, #tpu.memory_space<vmem>>, vector<8x32xf32>,
    %c1_i32 = arith.constant 1 : i32
    %c8_i32_42 = arith.constant 8 : i32
    %60 = arith.muli %c1_i32, %c8_i32_42 : i32
    %61 = tpu.assume_multiple %60, 8 : i32
    %62 = arith.index_cast %61 : i32 to index
    %c0_43 = arith.constant 0 : index
    %63 = vector.load %arg30[%62, %c0_43] : memref<64x32xf32, #tpu.memory_space<vmem>>, vector<8x32xf32>
    %64 = arith.index_cast %61 : i32 to index
    %c0_44 = arith.constant 0 : index
    %65 = vector.load %arg31[%64, %c0_44] : memref<64x32xf32, #tpu.memory_space<vmem>>, vector<8x32xf32>
    %66 = arith.index_cast %61 : i32 to index
    %c0_45 = arith.constant 0 : index
    %67 = vector.load %arg32[%66, %c0_45] : memref<64x32xf32, #tpu.memory_space<vmem>>, vector<8x32xf32>
    %cst_46 = arith.constant dense<0.000000e+00> : vector<8x32xf32>
    %68 = tpu.matmul %57, %19, %cst_46 {dimension_numbers = #tpu.dot_dimension_numbers<[1], [0], [0], [1], [0, 0, 1, 1], [], []>} : vector<8x32xf32>, vector<32x32xf32>, vector<8x32xf32> -> vector<8x32xf32>
    %69 = arith.addf %63, %68 : vector<8x32xf32>
    %70 = arith.negf %69 : vector<8x32xf32>
    %71 = math.exp %70 : vector<8x32xf32>
    %cst_47 = arith.constant 1.000000e+00 : f32
    %72 = vector.broadcast %cst_47 : f32 to vector<8x32xf32>
    %73 = arith.addf %72, %71 : vector<8x32xf32>
    %74 = arith.divf %72, %73 : vector<8x32xf32>
    %cst_48 = arith.constant dense<0.000000e+00> : vector<8x32xf32>
    %75 = tpu.matmul %57, %20, %cst_48 {dimension_numbers = #tpu.dot_dimension_numbers<[1], [0], [0], [1], [0, 0, 1, 1], [], []>} : vector<8x32xf32>, vector<32x32xf32>, vector<8x32xf32> -> vector<8x32xf32>
    %76 = arith.addf %65, %75 : vector<8x32xf32>
    %77 = arith.negf %76 : vector<8x32xf32>
    %78 = math.exp %77 : vector<8x32xf32>
    %cst_49 = arith.constant 1.000000e+00 : f32
    %79 = vector.broadcast %cst_49 : f32 to vector<8x32xf32>
    %80 = arith.addf %79, %78 : vector<8x32xf32>
    %81 = arith.divf %79, %80 : vector<8x32xf32>
    %cst_50 = arith.constant dense<0.000000e+00> : vector<8x32xf32>
    %82 = tpu.matmul %57, %21, %cst_50 {dimension_numbers = #tpu.dot_dimension_numbers<[1], [0], [0], [1], [0, 0, 1, 1], [], []>} : vector<8x32xf32>, vector<32x32xf32>, vector<8x32xf32> -> vector<8x32xf32>
    %83 = vector.broadcast %22 : vector<1x32xf32> to vector<8x32xf32>
    %84 = arith.addf %82, %83 : vector<8x32xf32>
    %85 = arith.mulf %74, %84 : vector<8x32xf32>
    %86 = arith.addf %67, %85 : vector<8x32xf32>
    %87 = math.tanh %86 : vector<8x32xf32>
    %cst_51 = arith.constant 1.000000e+00 : f32
    %88 = vector.broadcast %cst_51 : f32 to vector<8x32xf32>
    %89 = arith.subf %88, %81 : vector<8x32xf32>
    %90 = arith.mulf %89, %87 : vector<8x32xf32>
    %91 = arith.mulf %81, %57 : vector<8x32xf32>
    %92 = arith.addf %90, %91 : vector<8x32xf32>
    %93 = arith.index_cast %61 : i32 to index
    %c0_52 = arith.constant 0 : index
    %94 = vector.load %arg33[%93, %c0_52] : memref<64x32xf32, #tpu.memory_space<vmem>>, vector<8x32xf32>
    tpu.vector_store %arg33[%93, %c0_52], %92 {strides = array<i32>} : memref<64x32xf32, #tpu.memory_space<vmem>>, vector<8x32xf32>,
    %c2_i32 = arith.constant 2 : i32
    %c8_i32_53 = arith.constant 8 : i32
    %95 = arith.muli %c2_i32, %c8_i32_53 : i32
    %96 = tpu.assume_multiple %95, 8 : i32
    %97 = arith.index_cast %96 : i32 to index
    %c0_54 = arith.constant 0 : index
    %98 = vector.load %arg30[%97, %c0_54] : memref<64x32xf32, #tpu.memory_space<vmem>>, vector<8x32xf32>
    %99 = arith.index_cast %96 : i32 to index
    %c0_55 = arith.constant 0 : index
    %100 = vector.load %arg31[%99, %c0_55] : memref<64x32xf32, #tpu.memory_space<vmem>>, vector<8x32xf32>
    %101 = arith.index_cast %96 : i32 to index
    %c0_56 = arith.constant 0 : index
    %102 = vector.load %arg32[%101, %c0_56] : memref<64x32xf32, #tpu.memory_space<vmem>>, vector<8x32xf32>
    %cst_57 = arith.constant dense<0.000000e+00> : vector<8x32xf32>
    %103 = tpu.matmul %92, %19, %cst_57 {dimension_numbers = #tpu.dot_dimension_numbers<[1], [0], [0], [1], [0, 0, 1, 1], [], []>} : vector<8x32xf32>, vector<32x32xf32>, vector<8x32xf32> -> vector<8x32xf32>
    %104 = arith.addf %98, %103 : vector<8x32xf32>
    %105 = arith.negf %104 : vector<8x32xf32>
    %106 = math.exp %105 : vector<8x32xf32>
    %cst_58 = arith.constant 1.000000e+00 : f32
    %107 = vector.broadcast %cst_58 : f32 to vector<8x32xf32>
    %108 = arith.addf %107, %106 : vector<8x32xf32>
    %109 = arith.divf %107, %108 : vector<8x32xf32>
    %cst_59 = arith.constant dense<0.000000e+00> : vector<8x32xf32>
    %110 = tpu.matmul %92, %20, %cst_59 {dimension_numbers = #tpu.dot_dimension_numbers<[1], [0], [0], [1], [0, 0, 1, 1], [], []>} : vector<8x32xf32>, vector<32x32xf32>, vector<8x32xf32> -> vector<8x32xf32>
    %111 = arith.addf %100, %110 : vector<8x32xf32>
    %112 = arith.negf %111 : vector<8x32xf32>
    %113 = math.exp %112 : vector<8x32xf32>
    %cst_60 = arith.constant 1.000000e+00 : f32
    %114 = vector.broadcast %cst_60 : f32 to vector<8x32xf32>
    %115 = arith.addf %114, %113 : vector<8x32xf32>
    %116 = arith.divf %114, %115 : vector<8x32xf32>
    %cst_61 = arith.constant dense<0.000000e+00> : vector<8x32xf32>
    %117 = tpu.matmul %92, %21, %cst_61 {dimension_numbers = #tpu.dot_dimension_numbers<[1], [0], [0], [1], [0, 0, 1, 1], [], []>} : vector<8x32xf32>, vector<32x32xf32>, vector<8x32xf32> -> vector<8x32xf32>
    %118 = vector.broadcast %22 : vector<1x32xf32> to vector<8x32xf32>
    %119 = arith.addf %117, %118 : vector<8x32xf32>
    %120 = arith.mulf %109, %119 : vector<8x32xf32>
    %121 = arith.addf %102, %120 : vector<8x32xf32>
    %122 = math.tanh %121 : vector<8x32xf32>
    %cst_62 = arith.constant 1.000000e+00 : f32
    %123 = vector.broadcast %cst_62 : f32 to vector<8x32xf32>
    %124 = arith.subf %123, %116 : vector<8x32xf32>
    %125 = arith.mulf %124, %122 : vector<8x32xf32>
    %126 = arith.mulf %116, %92 : vector<8x32xf32>
    %127 = arith.addf %125, %126 : vector<8x32xf32>
    %128 = arith.index_cast %96 : i32 to index
    %c0_63 = arith.constant 0 : index
    %129 = vector.load %arg33[%128, %c0_63] : memref<64x32xf32, #tpu.memory_space<vmem>>, vector<8x32xf32>
    tpu.vector_store %arg33[%128, %c0_63], %127 {strides = array<i32>} : memref<64x32xf32, #tpu.memory_space<vmem>>, vector<8x32xf32>,
    %c3_i32 = arith.constant 3 : i32
    %c8_i32_64 = arith.constant 8 : i32
    %130 = arith.muli %c3_i32, %c8_i32_64 : i32
    %131 = tpu.assume_multiple %130, 8 : i32
    %132 = arith.index_cast %131 : i32 to index
    %c0_65 = arith.constant 0 : index
    %133 = vector.load %arg30[%132, %c0_65] : memref<64x32xf32, #tpu.memory_space<vmem>>, vector<8x32xf32>
    %134 = arith.index_cast %131 : i32 to index
    %c0_66 = arith.constant 0 : index
    %135 = vector.load %arg31[%134, %c0_66] : memref<64x32xf32, #tpu.memory_space<vmem>>, vector<8x32xf32>
    %136 = arith.index_cast %131 : i32 to index
    %c0_67 = arith.constant 0 : index
    %137 = vector.load %arg32[%136, %c0_67] : memref<64x32xf32, #tpu.memory_space<vmem>>, vector<8x32xf32>
    %cst_68 = arith.constant dense<0.000000e+00> : vector<8x32xf32>
    %138 = tpu.matmul %127, %19, %cst_68 {dimension_numbers = #tpu.dot_dimension_numbers<[1], [0], [0], [1], [0, 0, 1, 1], [], []>} : vector<8x32xf32>, vector<32x32xf32>, vector<8x32xf32> -> vector<8x32xf32>
    %139 = arith.addf %133, %138 : vector<8x32xf32>
    %140 = arith.negf %139 : vector<8x32xf32>
    %141 = math.exp %140 : vector<8x32xf32>
    %cst_69 = arith.constant 1.000000e+00 : f32
    %142 = vector.broadcast %cst_69 : f32 to vector<8x32xf32>
    %143 = arith.addf %142, %141 : vector<8x32xf32>
    %144 = arith.divf %142, %143 : vector<8x32xf32>
    %cst_70 = arith.constant dense<0.000000e+00> : vector<8x32xf32>
    %145 = tpu.matmul %127, %20, %cst_70 {dimension_numbers = #tpu.dot_dimension_numbers<[1], [0], [0], [1], [0, 0, 1, 1], [], []>} : vector<8x32xf32>, vector<32x32xf32>, vector<8x32xf32> -> vector<8x32xf32>
    %146 = arith.addf %135, %145 : vector<8x32xf32>
    %147 = arith.negf %146 : vector<8x32xf32>
    %148 = math.exp %147 : vector<8x32xf32>
    %cst_71 = arith.constant 1.000000e+00 : f32
    %149 = vector.broadcast %cst_71 : f32 to vector<8x32xf32>
    %150 = arith.addf %149, %148 : vector<8x32xf32>
    %151 = arith.divf %149, %150 : vector<8x32xf32>
    %cst_72 = arith.constant dense<0.000000e+00> : vector<8x32xf32>
    %152 = tpu.matmul %127, %21, %cst_72 {dimension_numbers = #tpu.dot_dimension_numbers<[1], [0], [0], [1], [0, 0, 1, 1], [], []>} : vector<8x32xf32>, vector<32x32xf32>, vector<8x32xf32> -> vector<8x32xf32>
    %153 = vector.broadcast %22 : vector<1x32xf32> to vector<8x32xf32>
    %154 = arith.addf %152, %153 : vector<8x32xf32>
    %155 = arith.mulf %144, %154 : vector<8x32xf32>
    %156 = arith.addf %137, %155 : vector<8x32xf32>
    %157 = math.tanh %156 : vector<8x32xf32>
    %cst_73 = arith.constant 1.000000e+00 : f32
    %158 = vector.broadcast %cst_73 : f32 to vector<8x32xf32>
    %159 = arith.subf %158, %151 : vector<8x32xf32>
    %160 = arith.mulf %159, %157 : vector<8x32xf32>
    %161 = arith.mulf %151, %127 : vector<8x32xf32>
    %162 = arith.addf %160, %161 : vector<8x32xf32>
    %163 = arith.index_cast %131 : i32 to index
    %c0_74 = arith.constant 0 : index
    %164 = vector.load %arg33[%163, %c0_74] : memref<64x32xf32, #tpu.memory_space<vmem>>, vector<8x32xf32>
    tpu.vector_store %arg33[%163, %c0_74], %162 {strides = array<i32>} : memref<64x32xf32, #tpu.memory_space<vmem>>, vector<8x32xf32>,
    %c4_i32 = arith.constant 4 : i32
    %c8_i32_75 = arith.constant 8 : i32
    %165 = arith.muli %c4_i32, %c8_i32_75 : i32
    %166 = tpu.assume_multiple %165, 8 : i32
    %167 = arith.index_cast %166 : i32 to index
    %c0_76 = arith.constant 0 : index
    %168 = vector.load %arg30[%167, %c0_76] : memref<64x32xf32, #tpu.memory_space<vmem>>, vector<8x32xf32>
    %169 = arith.index_cast %166 : i32 to index
    %c0_77 = arith.constant 0 : index
    %170 = vector.load %arg31[%169, %c0_77] : memref<64x32xf32, #tpu.memory_space<vmem>>, vector<8x32xf32>
    %171 = arith.index_cast %166 : i32 to index
    %c0_78 = arith.constant 0 : index
    %172 = vector.load %arg32[%171, %c0_78] : memref<64x32xf32, #tpu.memory_space<vmem>>, vector<8x32xf32>
    %cst_79 = arith.constant dense<0.000000e+00> : vector<8x32xf32>
    %173 = tpu.matmul %162, %19, %cst_79 {dimension_numbers = #tpu.dot_dimension_numbers<[1], [0], [0], [1], [0, 0, 1, 1], [], []>} : vector<8x32xf32>, vector<32x32xf32>, vector<8x32xf32> -> vector<8x32xf32>
    %174 = arith.addf %168, %173 : vector<8x32xf32>
    %175 = arith.negf %174 : vector<8x32xf32>
    %176 = math.exp %175 : vector<8x32xf32>
    %cst_80 = arith.constant 1.000000e+00 : f32
    %177 = vector.broadcast %cst_80 : f32 to vector<8x32xf32>
    %178 = arith.addf %177, %176 : vector<8x32xf32>
    %179 = arith.divf %177, %178 : vector<8x32xf32>
    %cst_81 = arith.constant dense<0.000000e+00> : vector<8x32xf32>
    %180 = tpu.matmul %162, %20, %cst_81 {dimension_numbers = #tpu.dot_dimension_numbers<[1], [0], [0], [1], [0, 0, 1, 1], [], []>} : vector<8x32xf32>, vector<32x32xf32>, vector<8x32xf32> -> vector<8x32xf32>
    %181 = arith.addf %170, %180 : vector<8x32xf32>
    %182 = arith.negf %181 : vector<8x32xf32>
    %183 = math.exp %182 : vector<8x32xf32>
    %cst_82 = arith.constant 1.000000e+00 : f32
    %184 = vector.broadcast %cst_82 : f32 to vector<8x32xf32>
    %185 = arith.addf %184, %183 : vector<8x32xf32>
    %186 = arith.divf %184, %185 : vector<8x32xf32>
    %cst_83 = arith.constant dense<0.000000e+00> : vector<8x32xf32>
    %187 = tpu.matmul %162, %21, %cst_83 {dimension_numbers = #tpu.dot_dimension_numbers<[1], [0], [0], [1], [0, 0, 1, 1], [], []>} : vector<8x32xf32>, vector<32x32xf32>, vector<8x32xf32> -> vector<8x32xf32>
    %188 = vector.broadcast %22 : vector<1x32xf32> to vector<8x32xf32>
    %189 = arith.addf %187, %188 : vector<8x32xf32>
    %190 = arith.mulf %179, %189 : vector<8x32xf32>
    %191 = arith.addf %172, %190 : vector<8x32xf32>
    %192 = math.tanh %191 : vector<8x32xf32>
    %cst_84 = arith.constant 1.000000e+00 : f32
    %193 = vector.broadcast %cst_84 : f32 to vector<8x32xf32>
    %194 = arith.subf %193, %186 : vector<8x32xf32>
    %195 = arith.mulf %194, %192 : vector<8x32xf32>
    %196 = arith.mulf %186, %162 : vector<8x32xf32>
    %197 = arith.addf %195, %196 : vector<8x32xf32>
    %198 = arith.index_cast %166 : i32 to index
    %c0_85 = arith.constant 0 : index
    %199 = vector.load %arg33[%198, %c0_85] : memref<64x32xf32, #tpu.memory_space<vmem>>, vector<8x32xf32>
    tpu.vector_store %arg33[%198, %c0_85], %197 {strides = array<i32>} : memref<64x32xf32, #tpu.memory_space<vmem>>, vector<8x32xf32>,
    %c5_i32 = arith.constant 5 : i32
    %c8_i32_86 = arith.constant 8 : i32
    %200 = arith.muli %c5_i32, %c8_i32_86 : i32
    %201 = tpu.assume_multiple %200, 8 : i32
    %202 = arith.index_cast %201 : i32 to index
    %c0_87 = arith.constant 0 : index
    %203 = vector.load %arg30[%202, %c0_87] : memref<64x32xf32, #tpu.memory_space<vmem>>, vector<8x32xf32>
    %204 = arith.index_cast %201 : i32 to index
    %c0_88 = arith.constant 0 : index
    %205 = vector.load %arg31[%204, %c0_88] : memref<64x32xf32, #tpu.memory_space<vmem>>, vector<8x32xf32>
    %206 = arith.index_cast %201 : i32 to index
    %c0_89 = arith.constant 0 : index
    %207 = vector.load %arg32[%206, %c0_89] : memref<64x32xf32, #tpu.memory_space<vmem>>, vector<8x32xf32>
    %cst_90 = arith.constant dense<0.000000e+00> : vector<8x32xf32>
    %208 = tpu.matmul %197, %19, %cst_90 {dimension_numbers = #tpu.dot_dimension_numbers<[1], [0], [0], [1], [0, 0, 1, 1], [], []>} : vector<8x32xf32>, vector<32x32xf32>, vector<8x32xf32> -> vector<8x32xf32>
    %209 = arith.addf %203, %208 : vector<8x32xf32>
    %210 = arith.negf %209 : vector<8x32xf32>
    %211 = math.exp %210 : vector<8x32xf32>
    %cst_91 = arith.constant 1.000000e+00 : f32
    %212 = vector.broadcast %cst_91 : f32 to vector<8x32xf32>
    %213 = arith.addf %212, %211 : vector<8x32xf32>
    %214 = arith.divf %212, %213 : vector<8x32xf32>
    %cst_92 = arith.constant dense<0.000000e+00> : vector<8x32xf32>
    %215 = tpu.matmul %197, %20, %cst_92 {dimension_numbers = #tpu.dot_dimension_numbers<[1], [0], [0], [1], [0, 0, 1, 1], [], []>} : vector<8x32xf32>, vector<32x32xf32>, vector<8x32xf32> -> vector<8x32xf32>
    %216 = arith.addf %205, %215 : vector<8x32xf32>
    %217 = arith.negf %216 : vector<8x32xf32>
    %218 = math.exp %217 : vector<8x32xf32>
    %cst_93 = arith.constant 1.000000e+00 : f32
    %219 = vector.broadcast %cst_93 : f32 to vector<8x32xf32>
    %220 = arith.addf %219, %218 : vector<8x32xf32>
    %221 = arith.divf %219, %220 : vector<8x32xf32>
    %cst_94 = arith.constant dense<0.000000e+00> : vector<8x32xf32>
    %222 = tpu.matmul %197, %21, %cst_94 {dimension_numbers = #tpu.dot_dimension_numbers<[1], [0], [0], [1], [0, 0, 1, 1], [], []>} : vector<8x32xf32>, vector<32x32xf32>, vector<8x32xf32> -> vector<8x32xf32>
    %223 = vector.broadcast %22 : vector<1x32xf32> to vector<8x32xf32>
    %224 = arith.addf %222, %223 : vector<8x32xf32>
    %225 = arith.mulf %214, %224 : vector<8x32xf32>
    %226 = arith.addf %207, %225 : vector<8x32xf32>
    %227 = math.tanh %226 : vector<8x32xf32>
    %cst_95 = arith.constant 1.000000e+00 : f32
    %228 = vector.broadcast %cst_95 : f32 to vector<8x32xf32>
    %229 = arith.subf %228, %221 : vector<8x32xf32>
    %230 = arith.mulf %229, %227 : vector<8x32xf32>
    %231 = arith.mulf %221, %197 : vector<8x32xf32>
    %232 = arith.addf %230, %231 : vector<8x32xf32>
    %233 = arith.index_cast %201 : i32 to index
    %c0_96 = arith.constant 0 : index
    %234 = vector.load %arg33[%233, %c0_96] : memref<64x32xf32, #tpu.memory_space<vmem>>, vector<8x32xf32>
    tpu.vector_store %arg33[%233, %c0_96], %232 {strides = array<i32>} : memref<64x32xf32, #tpu.memory_space<vmem>>, vector<8x32xf32>,
    %c6_i32 = arith.constant 6 : i32
    %c8_i32_97 = arith.constant 8 : i32
    %235 = arith.muli %c6_i32, %c8_i32_97 : i32
    %236 = tpu.assume_multiple %235, 8 : i32
    %237 = arith.index_cast %236 : i32 to index
    %c0_98 = arith.constant 0 : index
    %238 = vector.load %arg30[%237, %c0_98] : memref<64x32xf32, #tpu.memory_space<vmem>>, vector<8x32xf32>
    %239 = arith.index_cast %236 : i32 to index
    %c0_99 = arith.constant 0 : index
    %240 = vector.load %arg31[%239, %c0_99] : memref<64x32xf32, #tpu.memory_space<vmem>>, vector<8x32xf32>
    %241 = arith.index_cast %236 : i32 to index
    %c0_100 = arith.constant 0 : index
    %242 = vector.load %arg32[%241, %c0_100] : memref<64x32xf32, #tpu.memory_space<vmem>>, vector<8x32xf32>
    %cst_101 = arith.constant dense<0.000000e+00> : vector<8x32xf32>
    %243 = tpu.matmul %232, %19, %cst_101 {dimension_numbers = #tpu.dot_dimension_numbers<[1], [0], [0], [1], [0, 0, 1, 1], [], []>} : vector<8x32xf32>, vector<32x32xf32>, vector<8x32xf32> -> vector<8x32xf32>
    %244 = arith.addf %238, %243 : vector<8x32xf32>
    %245 = arith.negf %244 : vector<8x32xf32>
    %246 = math.exp %245 : vector<8x32xf32>
    %cst_102 = arith.constant 1.000000e+00 : f32
    %247 = vector.broadcast %cst_102 : f32 to vector<8x32xf32>
    %248 = arith.addf %247, %246 : vector<8x32xf32>
    %249 = arith.divf %247, %248 : vector<8x32xf32>
    %cst_103 = arith.constant dense<0.000000e+00> : vector<8x32xf32>
    %250 = tpu.matmul %232, %20, %cst_103 {dimension_numbers = #tpu.dot_dimension_numbers<[1], [0], [0], [1], [0, 0, 1, 1], [], []>} : vector<8x32xf32>, vector<32x32xf32>, vector<8x32xf32> -> vector<8x32xf32>
    %251 = arith.addf %240, %250 : vector<8x32xf32>
    %252 = arith.negf %251 : vector<8x32xf32>
    %253 = math.exp %252 : vector<8x32xf32>
    %cst_104 = arith.constant 1.000000e+00 : f32
    %254 = vector.broadcast %cst_104 : f32 to vector<8x32xf32>
    %255 = arith.addf %254, %253 : vector<8x32xf32>
    %256 = arith.divf %254, %255 : vector<8x32xf32>
    %cst_105 = arith.constant dense<0.000000e+00> : vector<8x32xf32>
    %257 = tpu.matmul %232, %21, %cst_105 {dimension_numbers = #tpu.dot_dimension_numbers<[1], [0], [0], [1], [0, 0, 1, 1], [], []>} : vector<8x32xf32>, vector<32x32xf32>, vector<8x32xf32> -> vector<8x32xf32>
    %258 = vector.broadcast %22 : vector<1x32xf32> to vector<8x32xf32>
    %259 = arith.addf %257, %258 : vector<8x32xf32>
    %260 = arith.mulf %249, %259 : vector<8x32xf32>
    %261 = arith.addf %242, %260 : vector<8x32xf32>
    %262 = math.tanh %261 : vector<8x32xf32>
    %cst_106 = arith.constant 1.000000e+00 : f32
    %263 = vector.broadcast %cst_106 : f32 to vector<8x32xf32>
    %264 = arith.subf %263, %256 : vector<8x32xf32>
    %265 = arith.mulf %264, %262 : vector<8x32xf32>
    %266 = arith.mulf %256, %232 : vector<8x32xf32>
    %267 = arith.addf %265, %266 : vector<8x32xf32>
    %268 = arith.index_cast %236 : i32 to index
    %c0_107 = arith.constant 0 : index
    %269 = vector.load %arg33[%268, %c0_107] : memref<64x32xf32, #tpu.memory_space<vmem>>, vector<8x32xf32>
    tpu.vector_store %arg33[%268, %c0_107], %267 {strides = array<i32>} : memref<64x32xf32, #tpu.memory_space<vmem>>, vector<8x32xf32>,
    %c7_i32 = arith.constant 7 : i32
    %c8_i32_108 = arith.constant 8 : i32
    %270 = arith.muli %c7_i32, %c8_i32_108 : i32
    %271 = tpu.assume_multiple %270, 8 : i32
    %272 = arith.index_cast %271 : i32 to index
    %c0_109 = arith.constant 0 : index
    %273 = vector.load %arg30[%272, %c0_109] : memref<64x32xf32, #tpu.memory_space<vmem>>, vector<8x32xf32>
    %274 = arith.index_cast %271 : i32 to index
    %c0_110 = arith.constant 0 : index
    %275 = vector.load %arg31[%274, %c0_110] : memref<64x32xf32, #tpu.memory_space<vmem>>, vector<8x32xf32>
    %276 = arith.index_cast %271 : i32 to index
    %c0_111 = arith.constant 0 : index
    %277 = vector.load %arg32[%276, %c0_111] : memref<64x32xf32, #tpu.memory_space<vmem>>, vector<8x32xf32>
    %cst_112 = arith.constant dense<0.000000e+00> : vector<8x32xf32>
    %278 = tpu.matmul %267, %19, %cst_112 {dimension_numbers = #tpu.dot_dimension_numbers<[1], [0], [0], [1], [0, 0, 1, 1], [], []>} : vector<8x32xf32>, vector<32x32xf32>, vector<8x32xf32> -> vector<8x32xf32>
    %279 = arith.addf %273, %278 : vector<8x32xf32>
    %280 = arith.negf %279 : vector<8x32xf32>
    %281 = math.exp %280 : vector<8x32xf32>
    %cst_113 = arith.constant 1.000000e+00 : f32
    %282 = vector.broadcast %cst_113 : f32 to vector<8x32xf32>
    %283 = arith.addf %282, %281 : vector<8x32xf32>
    %284 = arith.divf %282, %283 : vector<8x32xf32>
    %cst_114 = arith.constant dense<0.000000e+00> : vector<8x32xf32>
    %285 = tpu.matmul %267, %20, %cst_114 {dimension_numbers = #tpu.dot_dimension_numbers<[1], [0], [0], [1], [0, 0, 1, 1], [], []>} : vector<8x32xf32>, vector<32x32xf32>, vector<8x32xf32> -> vector<8x32xf32>
    %286 = arith.addf %275, %285 : vector<8x32xf32>
    %287 = arith.negf %286 : vector<8x32xf32>
    %288 = math.exp %287 : vector<8x32xf32>
    %cst_115 = arith.constant 1.000000e+00 : f32
    %289 = vector.broadcast %cst_115 : f32 to vector<8x32xf32>
    %290 = arith.addf %289, %288 : vector<8x32xf32>
    %291 = arith.divf %289, %290 : vector<8x32xf32>
    %cst_116 = arith.constant dense<0.000000e+00> : vector<8x32xf32>
    %292 = tpu.matmul %267, %21, %cst_116 {dimension_numbers = #tpu.dot_dimension_numbers<[1], [0], [0], [1], [0, 0, 1, 1], [], []>} : vector<8x32xf32>, vector<32x32xf32>, vector<8x32xf32> -> vector<8x32xf32>
    %293 = vector.broadcast %22 : vector<1x32xf32> to vector<8x32xf32>
    %294 = arith.addf %292, %293 : vector<8x32xf32>
    %295 = arith.mulf %284, %294 : vector<8x32xf32>
    %296 = arith.addf %277, %295 : vector<8x32xf32>
    %297 = math.tanh %296 : vector<8x32xf32>
    %cst_117 = arith.constant 1.000000e+00 : f32
    %298 = vector.broadcast %cst_117 : f32 to vector<8x32xf32>
    %299 = arith.subf %298, %291 : vector<8x32xf32>
    %300 = arith.mulf %299, %297 : vector<8x32xf32>
    %301 = arith.mulf %291, %267 : vector<8x32xf32>
    %302 = arith.addf %300, %301 : vector<8x32xf32>
    %303 = arith.index_cast %271 : i32 to index
    %c0_118 = arith.constant 0 : index
    %304 = vector.load %arg33[%303, %c0_118] : memref<64x32xf32, #tpu.memory_space<vmem>>, vector<8x32xf32>
    tpu.vector_store %arg33[%303, %c0_118], %302 {strides = array<i32>} : memref<64x32xf32, #tpu.memory_space<vmem>>, vector<8x32xf32>,
    %c8_i32_119 = arith.constant 8 : i32
    %c0_120 = arith.constant 0 : index
    %c0_121 = arith.constant 0 : index
    %305 = vector.load %arg33[%c0_120, %c0_121] : memref<64x32xf32, #tpu.memory_space<vmem>>, vector<64x32xf32>
    %c0_122 = arith.constant 0 : index
    %c0_123 = arith.constant 0 : index
    %306 = vector.load %arg14[%c0_122, %c0_123] : memref<32x32xf32, #tpu.memory_space<vmem>>, vector<32x32xf32>
    %cst_124 = arith.constant dense<0.000000e+00> : vector<64x32xf32>
    %307 = tpu.matmul %305, %306, %cst_124 {dimension_numbers = #tpu.dot_dimension_numbers<[1], [0], [0], [1], [0, 0, 1, 1], [], []>} : vector<64x32xf32>, vector<32x32xf32>, vector<64x32xf32> -> vector<64x32xf32>
    %c0_125 = arith.constant 0 : index
    %c0_126 = arith.constant 0 : index
    %308 = vector.load %arg20[%c0_125, %c0_126] : memref<1x32xf32, #tpu.memory_space<vmem>>, vector<1x32xf32>
    %309 = vector.broadcast %308 : vector<1x32xf32> to vector<64x32xf32>
    %310 = arith.addf %307, %309 : vector<64x32xf32>
    %c0_127 = arith.constant 0 : index
    %c0_128 = arith.constant 0 : index
    %311 = vector.load %arg30[%c0_127, %c0_128] : memref<64x32xf32, #tpu.memory_space<vmem>>, vector<64x32xf32>
    tpu.vector_store %arg30[%c0_127, %c0_128], %310 {strides = array<i32>} : memref<64x32xf32, #tpu.memory_space<vmem>>, vector<64x32xf32>,
    %c0_129 = arith.constant 0 : index
    %c0_130 = arith.constant 0 : index
    %312 = vector.load %arg15[%c0_129, %c0_130] : memref<32x32xf32, #tpu.memory_space<vmem>>, vector<32x32xf32>
    %cst_131 = arith.constant dense<0.000000e+00> : vector<64x32xf32>
    %313 = tpu.matmul %305, %312, %cst_131 {dimension_numbers = #tpu.dot_dimension_numbers<[1], [0], [0], [1], [0, 0, 1, 1], [], []>} : vector<64x32xf32>, vector<32x32xf32>, vector<64x32xf32> -> vector<64x32xf32>
    %c0_132 = arith.constant 0 : index
    %c0_133 = arith.constant 0 : index
    %314 = vector.load %arg21[%c0_132, %c0_133] : memref<1x32xf32, #tpu.memory_space<vmem>>, vector<1x32xf32>
    %315 = vector.broadcast %314 : vector<1x32xf32> to vector<64x32xf32>
    %316 = arith.addf %313, %315 : vector<64x32xf32>
    %c0_134 = arith.constant 0 : index
    %c0_135 = arith.constant 0 : index
    %317 = vector.load %arg31[%c0_134, %c0_135] : memref<64x32xf32, #tpu.memory_space<vmem>>, vector<64x32xf32>
    tpu.vector_store %arg31[%c0_134, %c0_135], %316 {strides = array<i32>} : memref<64x32xf32, #tpu.memory_space<vmem>>, vector<64x32xf32>,
    %c0_136 = arith.constant 0 : index
    %c0_137 = arith.constant 0 : index
    %318 = vector.load %arg16[%c0_136, %c0_137] : memref<32x32xf32, #tpu.memory_space<vmem>>, vector<32x32xf32>
    %cst_138 = arith.constant dense<0.000000e+00> : vector<64x32xf32>
    %319 = tpu.matmul %305, %318, %cst_138 {dimension_numbers = #tpu.dot_dimension_numbers<[1], [0], [0], [1], [0, 0, 1, 1], [], []>} : vector<64x32xf32>, vector<32x32xf32>, vector<64x32xf32> -> vector<64x32xf32>
    %c0_139 = arith.constant 0 : index
    %c0_140 = arith.constant 0 : index
    %320 = vector.load %arg22[%c0_139, %c0_140] : memref<1x32xf32, #tpu.memory_space<vmem>>, vector<1x32xf32>
    %321 = vector.broadcast %320 : vector<1x32xf32> to vector<64x32xf32>
    %322 = arith.addf %319, %321 : vector<64x32xf32>
    %c0_141 = arith.constant 0 : index
    %c0_142 = arith.constant 0 : index
    %323 = vector.load %arg32[%c0_141, %c0_142] : memref<64x32xf32, #tpu.memory_space<vmem>>, vector<64x32xf32>
    tpu.vector_store %arg32[%c0_141, %c0_142], %322 {strides = array<i32>} : memref<64x32xf32, #tpu.memory_space<vmem>>, vector<64x32xf32>,
    %c0_143 = arith.constant 0 : index
    %c0_144 = arith.constant 0 : index
    %324 = vector.load %arg17[%c0_143, %c0_144] : memref<32x32xf32, #tpu.memory_space<vmem>>, vector<32x32xf32>
    %c0_145 = arith.constant 0 : index
    %c0_146 = arith.constant 0 : index
    %325 = vector.load %arg18[%c0_145, %c0_146] : memref<32x32xf32, #tpu.memory_space<vmem>>, vector<32x32xf32>
    %c0_147 = arith.constant 0 : index
    %c0_148 = arith.constant 0 : index
    %326 = vector.load %arg19[%c0_147, %c0_148] : memref<32x32xf32, #tpu.memory_space<vmem>>, vector<32x32xf32>
    %c0_149 = arith.constant 0 : index
    %c0_150 = arith.constant 0 : index
    %327 = vector.load %arg23[%c0_149, %c0_150] : memref<1x32xf32, #tpu.memory_space<vmem>>, vector<1x32xf32>
    %c1 = arith.constant 1 : index
    %c0_151 = arith.constant 0 : index
    %c0_152 = arith.constant 0 : index
    %328 = vector.load %arg3[%c1, %c0_151, %c0_152] : memref<2x8x32xf32, #tpu.memory_space<vmem>>, vector<1x8x32xf32>
    %329 = vector.shape_cast %328 : vector<1x8x32xf32> to vector<8x32xf32>
    %c0_i32_153 = arith.constant 0 : i32
    %c8_i32_154 = arith.constant 8 : i32
    %330 = arith.muli %c0_i32_153, %c8_i32_154 : i32
    %331 = tpu.assume_multiple %330, 8 : i32
    %332 = arith.index_cast %331 : i32 to index
    %c0_155 = arith.constant 0 : index
    %333 = vector.load %arg30[%332, %c0_155] : memref<64x32xf32, #tpu.memory_space<vmem>>, vector<8x32xf32>
    %334 = arith.index_cast %331 : i32 to index
    %c0_156 = arith.constant 0 : index
    %335 = vector.load %arg31[%334, %c0_156] : memref<64x32xf32, #tpu.memory_space<vmem>>, vector<8x32xf32>
    %336 = arith.index_cast %331 : i32 to index
    %c0_157 = arith.constant 0 : index
    %337 = vector.load %arg32[%336, %c0_157] : memref<64x32xf32, #tpu.memory_space<vmem>>, vector<8x32xf32>
    %cst_158 = arith.constant dense<0.000000e+00> : vector<8x32xf32>
    %338 = tpu.matmul %329, %324, %cst_158 {dimension_numbers = #tpu.dot_dimension_numbers<[1], [0], [0], [1], [0, 0, 1, 1], [], []>} : vector<8x32xf32>, vector<32x32xf32>, vector<8x32xf32> -> vector<8x32xf32>
    %339 = arith.addf %333, %338 : vector<8x32xf32>
    %340 = arith.negf %339 : vector<8x32xf32>
    %341 = math.exp %340 : vector<8x32xf32>
    %cst_159 = arith.constant 1.000000e+00 : f32
    %342 = vector.broadcast %cst_159 : f32 to vector<8x32xf32>
    %343 = arith.addf %342, %341 : vector<8x32xf32>
    %344 = arith.divf %342, %343 : vector<8x32xf32>
    %cst_160 = arith.constant dense<0.000000e+00> : vector<8x32xf32>
    %345 = tpu.matmul %329, %325, %cst_160 {dimension_numbers = #tpu.dot_dimension_numbers<[1], [0], [0], [1], [0, 0, 1, 1], [], []>} : vector<8x32xf32>, vector<32x32xf32>, vector<8x32xf32> -> vector<8x32xf32>
    %346 = arith.addf %335, %345 : vector<8x32xf32>
    %347 = arith.negf %346 : vector<8x32xf32>
    %348 = math.exp %347 : vector<8x32xf32>
    %cst_161 = arith.constant 1.000000e+00 : f32
    %349 = vector.broadcast %cst_161 : f32 to vector<8x32xf32>
    %350 = arith.addf %349, %348 : vector<8x32xf32>
    %351 = arith.divf %349, %350 : vector<8x32xf32>
    %cst_162 = arith.constant dense<0.000000e+00> : vector<8x32xf32>
    %352 = tpu.matmul %329, %326, %cst_162 {dimension_numbers = #tpu.dot_dimension_numbers<[1], [0], [0], [1], [0, 0, 1, 1], [], []>} : vector<8x32xf32>, vector<32x32xf32>, vector<8x32xf32> -> vector<8x32xf32>
    %353 = vector.broadcast %327 : vector<1x32xf32> to vector<8x32xf32>
    %354 = arith.addf %352, %353 : vector<8x32xf32>
    %355 = arith.mulf %344, %354 : vector<8x32xf32>
    %356 = arith.addf %337, %355 : vector<8x32xf32>
    %357 = math.tanh %356 : vector<8x32xf32>
    %cst_163 = arith.constant 1.000000e+00 : f32
    %358 = vector.broadcast %cst_163 : f32 to vector<8x32xf32>
    %359 = arith.subf %358, %351 : vector<8x32xf32>
    %360 = arith.mulf %359, %357 : vector<8x32xf32>
    %361 = arith.mulf %351, %329 : vector<8x32xf32>
    %362 = arith.addf %360, %361 : vector<8x32xf32>
    %363 = arith.index_cast %331 : i32 to index
    %c0_164 = arith.constant 0 : index
    %364 = vector.load %arg33[%363, %c0_164] : memref<64x32xf32, #tpu.memory_space<vmem>>, vector<8x32xf32>
    tpu.vector_store %arg33[%363, %c0_164], %362 {strides = array<i32>} : memref<64x32xf32, #tpu.memory_space<vmem>>, vector<8x32xf32>,
    %c1_i32_165 = arith.constant 1 : i32
    %c8_i32_166 = arith.constant 8 : i32
    %365 = arith.muli %c1_i32_165, %c8_i32_166 : i32
    %366 = tpu.assume_multiple %365, 8 : i32
    %367 = arith.index_cast %366 : i32 to index
    %c0_167 = arith.constant 0 : index
    %368 = vector.load %arg30[%367, %c0_167] : memref<64x32xf32, #tpu.memory_space<vmem>>, vector<8x32xf32>
    %369 = arith.index_cast %366 : i32 to index
    %c0_168 = arith.constant 0 : index
    %370 = vector.load %arg31[%369, %c0_168] : memref<64x32xf32, #tpu.memory_space<vmem>>, vector<8x32xf32>
    %371 = arith.index_cast %366 : i32 to index
    %c0_169 = arith.constant 0 : index
    %372 = vector.load %arg32[%371, %c0_169] : memref<64x32xf32, #tpu.memory_space<vmem>>, vector<8x32xf32>
    %cst_170 = arith.constant dense<0.000000e+00> : vector<8x32xf32>
    %373 = tpu.matmul %362, %324, %cst_170 {dimension_numbers = #tpu.dot_dimension_numbers<[1], [0], [0], [1], [0, 0, 1, 1], [], []>} : vector<8x32xf32>, vector<32x32xf32>, vector<8x32xf32> -> vector<8x32xf32>
    %374 = arith.addf %368, %373 : vector<8x32xf32>
    %375 = arith.negf %374 : vector<8x32xf32>
    %376 = math.exp %375 : vector<8x32xf32>
    %cst_171 = arith.constant 1.000000e+00 : f32
    %377 = vector.broadcast %cst_171 : f32 to vector<8x32xf32>
    %378 = arith.addf %377, %376 : vector<8x32xf32>
    %379 = arith.divf %377, %378 : vector<8x32xf32>
    %cst_172 = arith.constant dense<0.000000e+00> : vector<8x32xf32>
    %380 = tpu.matmul %362, %325, %cst_172 {dimension_numbers = #tpu.dot_dimension_numbers<[1], [0], [0], [1], [0, 0, 1, 1], [], []>} : vector<8x32xf32>, vector<32x32xf32>, vector<8x32xf32> -> vector<8x32xf32>
    %381 = arith.addf %370, %380 : vector<8x32xf32>
    %382 = arith.negf %381 : vector<8x32xf32>
    %383 = math.exp %382 : vector<8x32xf32>
    %cst_173 = arith.constant 1.000000e+00 : f32
    %384 = vector.broadcast %cst_173 : f32 to vector<8x32xf32>
    %385 = arith.addf %384, %383 : vector<8x32xf32>
    %386 = arith.divf %384, %385 : vector<8x32xf32>
    %cst_174 = arith.constant dense<0.000000e+00> : vector<8x32xf32>
    %387 = tpu.matmul %362, %326, %cst_174 {dimension_numbers = #tpu.dot_dimension_numbers<[1], [0], [0], [1], [0, 0, 1, 1], [], []>} : vector<8x32xf32>, vector<32x32xf32>, vector<8x32xf32> -> vector<8x32xf32>
    %388 = vector.broadcast %327 : vector<1x32xf32> to vector<8x32xf32>
    %389 = arith.addf %387, %388 : vector<8x32xf32>
    %390 = arith.mulf %379, %389 : vector<8x32xf32>
    %391 = arith.addf %372, %390 : vector<8x32xf32>
    %392 = math.tanh %391 : vector<8x32xf32>
    %cst_175 = arith.constant 1.000000e+00 : f32
    %393 = vector.broadcast %cst_175 : f32 to vector<8x32xf32>
    %394 = arith.subf %393, %386 : vector<8x32xf32>
    %395 = arith.mulf %394, %392 : vector<8x32xf32>
    %396 = arith.mulf %386, %362 : vector<8x32xf32>
    %397 = arith.addf %395, %396 : vector<8x32xf32>
    %398 = arith.index_cast %366 : i32 to index
    %c0_176 = arith.constant 0 : index
    %399 = vector.load %arg33[%398, %c0_176] : memref<64x32xf32, #tpu.memory_space<vmem>>, vector<8x32xf32>
    tpu.vector_store %arg33[%398, %c0_176], %397 {strides = array<i32>} : memref<64x32xf32, #tpu.memory_space<vmem>>, vector<8x32xf32>,
    %c2_i32_177 = arith.constant 2 : i32
    %c8_i32_178 = arith.constant 8 : i32
    %400 = arith.muli %c2_i32_177, %c8_i32_178 : i32
    %401 = tpu.assume_multiple %400, 8 : i32
    %402 = arith.index_cast %401 : i32 to index
    %c0_179 = arith.constant 0 : index
    %403 = vector.load %arg30[%402, %c0_179] : memref<64x32xf32, #tpu.memory_space<vmem>>, vector<8x32xf32>
    %404 = arith.index_cast %401 : i32 to index
    %c0_180 = arith.constant 0 : index
    %405 = vector.load %arg31[%404, %c0_180] : memref<64x32xf32, #tpu.memory_space<vmem>>, vector<8x32xf32>
    %406 = arith.index_cast %401 : i32 to index
    %c0_181 = arith.constant 0 : index
    %407 = vector.load %arg32[%406, %c0_181] : memref<64x32xf32, #tpu.memory_space<vmem>>, vector<8x32xf32>
    %cst_182 = arith.constant dense<0.000000e+00> : vector<8x32xf32>
    %408 = tpu.matmul %397, %324, %cst_182 {dimension_numbers = #tpu.dot_dimension_numbers<[1], [0], [0], [1], [0, 0, 1, 1], [], []>} : vector<8x32xf32>, vector<32x32xf32>, vector<8x32xf32> -> vector<8x32xf32>
    %409 = arith.addf %403, %408 : vector<8x32xf32>
    %410 = arith.negf %409 : vector<8x32xf32>
    %411 = math.exp %410 : vector<8x32xf32>
    %cst_183 = arith.constant 1.000000e+00 : f32
    %412 = vector.broadcast %cst_183 : f32 to vector<8x32xf32>
    %413 = arith.addf %412, %411 : vector<8x32xf32>
    %414 = arith.divf %412, %413 : vector<8x32xf32>
    %cst_184 = arith.constant dense<0.000000e+00> : vector<8x32xf32>
    %415 = tpu.matmul %397, %325, %cst_184 {dimension_numbers = #tpu.dot_dimension_numbers<[1], [0], [0], [1], [0, 0, 1, 1], [], []>} : vector<8x32xf32>, vector<32x32xf32>, vector<8x32xf32> -> vector<8x32xf32>
    %416 = arith.addf %405, %415 : vector<8x32xf32>
    %417 = arith.negf %416 : vector<8x32xf32>
    %418 = math.exp %417 : vector<8x32xf32>
    %cst_185 = arith.constant 1.000000e+00 : f32
    %419 = vector.broadcast %cst_185 : f32 to vector<8x32xf32>
    %420 = arith.addf %419, %418 : vector<8x32xf32>
    %421 = arith.divf %419, %420 : vector<8x32xf32>
    %cst_186 = arith.constant dense<0.000000e+00> : vector<8x32xf32>
    %422 = tpu.matmul %397, %326, %cst_186 {dimension_numbers = #tpu.dot_dimension_numbers<[1], [0], [0], [1], [0, 0, 1, 1], [], []>} : vector<8x32xf32>, vector<32x32xf32>, vector<8x32xf32> -> vector<8x32xf32>
    %423 = vector.broadcast %327 : vector<1x32xf32> to vector<8x32xf32>
    %424 = arith.addf %422, %423 : vector<8x32xf32>
    %425 = arith.mulf %414, %424 : vector<8x32xf32>
    %426 = arith.addf %407, %425 : vector<8x32xf32>
    %427 = math.tanh %426 : vector<8x32xf32>
    %cst_187 = arith.constant 1.000000e+00 : f32
    %428 = vector.broadcast %cst_187 : f32 to vector<8x32xf32>
    %429 = arith.subf %428, %421 : vector<8x32xf32>
    %430 = arith.mulf %429, %427 : vector<8x32xf32>
    %431 = arith.mulf %421, %397 : vector<8x32xf32>
    %432 = arith.addf %430, %431 : vector<8x32xf32>
    %433 = arith.index_cast %401 : i32 to index
    %c0_188 = arith.constant 0 : index
    %434 = vector.load %arg33[%433, %c0_188] : memref<64x32xf32, #tpu.memory_space<vmem>>, vector<8x32xf32>
    tpu.vector_store %arg33[%433, %c0_188], %432 {strides = array<i32>} : memref<64x32xf32, #tpu.memory_space<vmem>>, vector<8x32xf32>,
    %c3_i32_189 = arith.constant 3 : i32
    %c8_i32_190 = arith.constant 8 : i32
    %435 = arith.muli %c3_i32_189, %c8_i32_190 : i32
    %436 = tpu.assume_multiple %435, 8 : i32
    %437 = arith.index_cast %436 : i32 to index
    %c0_191 = arith.constant 0 : index
    %438 = vector.load %arg30[%437, %c0_191] : memref<64x32xf32, #tpu.memory_space<vmem>>, vector<8x32xf32>
    %439 = arith.index_cast %436 : i32 to index
    %c0_192 = arith.constant 0 : index
    %440 = vector.load %arg31[%439, %c0_192] : memref<64x32xf32, #tpu.memory_space<vmem>>, vector<8x32xf32>
    %441 = arith.index_cast %436 : i32 to index
    %c0_193 = arith.constant 0 : index
    %442 = vector.load %arg32[%441, %c0_193] : memref<64x32xf32, #tpu.memory_space<vmem>>, vector<8x32xf32>
    %cst_194 = arith.constant dense<0.000000e+00> : vector<8x32xf32>
    %443 = tpu.matmul %432, %324, %cst_194 {dimension_numbers = #tpu.dot_dimension_numbers<[1], [0], [0], [1], [0, 0, 1, 1], [], []>} : vector<8x32xf32>, vector<32x32xf32>, vector<8x32xf32> -> vector<8x32xf32>
    %444 = arith.addf %438, %443 : vector<8x32xf32>
    %445 = arith.negf %444 : vector<8x32xf32>
    %446 = math.exp %445 : vector<8x32xf32>
    %cst_195 = arith.constant 1.000000e+00 : f32
    %447 = vector.broadcast %cst_195 : f32 to vector<8x32xf32>
    %448 = arith.addf %447, %446 : vector<8x32xf32>
    %449 = arith.divf %447, %448 : vector<8x32xf32>
    %cst_196 = arith.constant dense<0.000000e+00> : vector<8x32xf32>
    %450 = tpu.matmul %432, %325, %cst_196 {dimension_numbers = #tpu.dot_dimension_numbers<[1], [0], [0], [1], [0, 0, 1, 1], [], []>} : vector<8x32xf32>, vector<32x32xf32>, vector<8x32xf32> -> vector<8x32xf32>
    %451 = arith.addf %440, %450 : vector<8x32xf32>
    %452 = arith.negf %451 : vector<8x32xf32>
    %453 = math.exp %452 : vector<8x32xf32>
    %cst_197 = arith.constant 1.000000e+00 : f32
    %454 = vector.broadcast %cst_197 : f32 to vector<8x32xf32>
    %455 = arith.addf %454, %453 : vector<8x32xf32>
    %456 = arith.divf %454, %455 : vector<8x32xf32>
    %cst_198 = arith.constant dense<0.000000e+00> : vector<8x32xf32>
    %457 = tpu.matmul %432, %326, %cst_198 {dimension_numbers = #tpu.dot_dimension_numbers<[1], [0], [0], [1], [0, 0, 1, 1], [], []>} : vector<8x32xf32>, vector<32x32xf32>, vector<8x32xf32> -> vector<8x32xf32>
    %458 = vector.broadcast %327 : vector<1x32xf32> to vector<8x32xf32>
    %459 = arith.addf %457, %458 : vector<8x32xf32>
    %460 = arith.mulf %449, %459 : vector<8x32xf32>
    %461 = arith.addf %442, %460 : vector<8x32xf32>
    %462 = math.tanh %461 : vector<8x32xf32>
    %cst_199 = arith.constant 1.000000e+00 : f32
    %463 = vector.broadcast %cst_199 : f32 to vector<8x32xf32>
    %464 = arith.subf %463, %456 : vector<8x32xf32>
    %465 = arith.mulf %464, %462 : vector<8x32xf32>
    %466 = arith.mulf %456, %432 : vector<8x32xf32>
    %467 = arith.addf %465, %466 : vector<8x32xf32>
    %468 = arith.index_cast %436 : i32 to index
    %c0_200 = arith.constant 0 : index
    %469 = vector.load %arg33[%468, %c0_200] : memref<64x32xf32, #tpu.memory_space<vmem>>, vector<8x32xf32>
    tpu.vector_store %arg33[%468, %c0_200], %467 {strides = array<i32>} : memref<64x32xf32, #tpu.memory_space<vmem>>, vector<8x32xf32>,
    %c4_i32_201 = arith.constant 4 : i32
    %c8_i32_202 = arith.constant 8 : i32
    %470 = arith.muli %c4_i32_201, %c8_i32_202 : i32
    %471 = tpu.assume_multiple %470, 8 : i32
    %472 = arith.index_cast %471 : i32 to index
    %c0_203 = arith.constant 0 : index
    %473 = vector.load %arg30[%472, %c0_203] : memref<64x32xf32, #tpu.memory_space<vmem>>, vector<8x32xf32>
    %474 = arith.index_cast %471 : i32 to index
    %c0_204 = arith.constant 0 : index
    %475 = vector.load %arg31[%474, %c0_204] : memref<64x32xf32, #tpu.memory_space<vmem>>, vector<8x32xf32>
    %476 = arith.index_cast %471 : i32 to index
    %c0_205 = arith.constant 0 : index
    %477 = vector.load %arg32[%476, %c0_205] : memref<64x32xf32, #tpu.memory_space<vmem>>, vector<8x32xf32>
    %cst_206 = arith.constant dense<0.000000e+00> : vector<8x32xf32>
    %478 = tpu.matmul %467, %324, %cst_206 {dimension_numbers = #tpu.dot_dimension_numbers<[1], [0], [0], [1], [0, 0, 1, 1], [], []>} : vector<8x32xf32>, vector<32x32xf32>, vector<8x32xf32> -> vector<8x32xf32>
    %479 = arith.addf %473, %478 : vector<8x32xf32>
    %480 = arith.negf %479 : vector<8x32xf32>
    %481 = math.exp %480 : vector<8x32xf32>
    %cst_207 = arith.constant 1.000000e+00 : f32
    %482 = vector.broadcast %cst_207 : f32 to vector<8x32xf32>
    %483 = arith.addf %482, %481 : vector<8x32xf32>
    %484 = arith.divf %482, %483 : vector<8x32xf32>
    %cst_208 = arith.constant dense<0.000000e+00> : vector<8x32xf32>
    %485 = tpu.matmul %467, %325, %cst_208 {dimension_numbers = #tpu.dot_dimension_numbers<[1], [0], [0], [1], [0, 0, 1, 1], [], []>} : vector<8x32xf32>, vector<32x32xf32>, vector<8x32xf32> -> vector<8x32xf32>
    %486 = arith.addf %475, %485 : vector<8x32xf32>
    %487 = arith.negf %486 : vector<8x32xf32>
    %488 = math.exp %487 : vector<8x32xf32>
    %cst_209 = arith.constant 1.000000e+00 : f32
    %489 = vector.broadcast %cst_209 : f32 to vector<8x32xf32>
    %490 = arith.addf %489, %488 : vector<8x32xf32>
    %491 = arith.divf %489, %490 : vector<8x32xf32>
    %cst_210 = arith.constant dense<0.000000e+00> : vector<8x32xf32>
    %492 = tpu.matmul %467, %326, %cst_210 {dimension_numbers = #tpu.dot_dimension_numbers<[1], [0], [0], [1], [0, 0, 1, 1], [], []>} : vector<8x32xf32>, vector<32x32xf32>, vector<8x32xf32> -> vector<8x32xf32>
    %493 = vector.broadcast %327 : vector<1x32xf32> to vector<8x32xf32>
    %494 = arith.addf %492, %493 : vector<8x32xf32>
    %495 = arith.mulf %484, %494 : vector<8x32xf32>
    %496 = arith.addf %477, %495 : vector<8x32xf32>
    %497 = math.tanh %496 : vector<8x32xf32>
    %cst_211 = arith.constant 1.000000e+00 : f32
    %498 = vector.broadcast %cst_211 : f32 to vector<8x32xf32>
    %499 = arith.subf %498, %491 : vector<8x32xf32>
    %500 = arith.mulf %499, %497 : vector<8x32xf32>
    %501 = arith.mulf %491, %467 : vector<8x32xf32>
    %502 = arith.addf %500, %501 : vector<8x32xf32>
    %503 = arith.index_cast %471 : i32 to index
    %c0_212 = arith.constant 0 : index
    %504 = vector.load %arg33[%503, %c0_212] : memref<64x32xf32, #tpu.memory_space<vmem>>, vector<8x32xf32>
    tpu.vector_store %arg33[%503, %c0_212], %502 {strides = array<i32>} : memref<64x32xf32, #tpu.memory_space<vmem>>, vector<8x32xf32>,
    %c5_i32_213 = arith.constant 5 : i32
    %c8_i32_214 = arith.constant 8 : i32
    %505 = arith.muli %c5_i32_213, %c8_i32_214 : i32
    %506 = tpu.assume_multiple %505, 8 : i32
    %507 = arith.index_cast %506 : i32 to index
    %c0_215 = arith.constant 0 : index
    %508 = vector.load %arg30[%507, %c0_215] : memref<64x32xf32, #tpu.memory_space<vmem>>, vector<8x32xf32>
    %509 = arith.index_cast %506 : i32 to index
    %c0_216 = arith.constant 0 : index
    %510 = vector.load %arg31[%509, %c0_216] : memref<64x32xf32, #tpu.memory_space<vmem>>, vector<8x32xf32>
    %511 = arith.index_cast %506 : i32 to index
    %c0_217 = arith.constant 0 : index
    %512 = vector.load %arg32[%511, %c0_217] : memref<64x32xf32, #tpu.memory_space<vmem>>, vector<8x32xf32>
    %cst_218 = arith.constant dense<0.000000e+00> : vector<8x32xf32>
    %513 = tpu.matmul %502, %324, %cst_218 {dimension_numbers = #tpu.dot_dimension_numbers<[1], [0], [0], [1], [0, 0, 1, 1], [], []>} : vector<8x32xf32>, vector<32x32xf32>, vector<8x32xf32> -> vector<8x32xf32>
    %514 = arith.addf %508, %513 : vector<8x32xf32>
    %515 = arith.negf %514 : vector<8x32xf32>
    %516 = math.exp %515 : vector<8x32xf32>
    %cst_219 = arith.constant 1.000000e+00 : f32
    %517 = vector.broadcast %cst_219 : f32 to vector<8x32xf32>
    %518 = arith.addf %517, %516 : vector<8x32xf32>
    %519 = arith.divf %517, %518 : vector<8x32xf32>
    %cst_220 = arith.constant dense<0.000000e+00> : vector<8x32xf32>
    %520 = tpu.matmul %502, %325, %cst_220 {dimension_numbers = #tpu.dot_dimension_numbers<[1], [0], [0], [1], [0, 0, 1, 1], [], []>} : vector<8x32xf32>, vector<32x32xf32>, vector<8x32xf32> -> vector<8x32xf32>
    %521 = arith.addf %510, %520 : vector<8x32xf32>
    %522 = arith.negf %521 : vector<8x32xf32>
    %523 = math.exp %522 : vector<8x32xf32>
    %cst_221 = arith.constant 1.000000e+00 : f32
    %524 = vector.broadcast %cst_221 : f32 to vector<8x32xf32>
    %525 = arith.addf %524, %523 : vector<8x32xf32>
    %526 = arith.divf %524, %525 : vector<8x32xf32>
    %cst_222 = arith.constant dense<0.000000e+00> : vector<8x32xf32>
    %527 = tpu.matmul %502, %326, %cst_222 {dimension_numbers = #tpu.dot_dimension_numbers<[1], [0], [0], [1], [0, 0, 1, 1], [], []>} : vector<8x32xf32>, vector<32x32xf32>, vector<8x32xf32> -> vector<8x32xf32>
    %528 = vector.broadcast %327 : vector<1x32xf32> to vector<8x32xf32>
    %529 = arith.addf %527, %528 : vector<8x32xf32>
    %530 = arith.mulf %519, %529 : vector<8x32xf32>
    %531 = arith.addf %512, %530 : vector<8x32xf32>
    %532 = math.tanh %531 : vector<8x32xf32>
    %cst_223 = arith.constant 1.000000e+00 : f32
    %533 = vector.broadcast %cst_223 : f32 to vector<8x32xf32>
    %534 = arith.subf %533, %526 : vector<8x32xf32>
    %535 = arith.mulf %534, %532 : vector<8x32xf32>
    %536 = arith.mulf %526, %502 : vector<8x32xf32>
    %537 = arith.addf %535, %536 : vector<8x32xf32>
    %538 = arith.index_cast %506 : i32 to index
    %c0_224 = arith.constant 0 : index
    %539 = vector.load %arg33[%538, %c0_224] : memref<64x32xf32, #tpu.memory_space<vmem>>, vector<8x32xf32>
    tpu.vector_store %arg33[%538, %c0_224], %537 {strides = array<i32>} : memref<64x32xf32, #tpu.memory_space<vmem>>, vector<8x32xf32>,
    %c6_i32_225 = arith.constant 6 : i32
    %c8_i32_226 = arith.constant 8 : i32
    %540 = arith.muli %c6_i32_225, %c8_i32_226 : i32
    %541 = tpu.assume_multiple %540, 8 : i32
    %542 = arith.index_cast %541 : i32 to index
    %c0_227 = arith.constant 0 : index
    %543 = vector.load %arg30[%542, %c0_227] : memref<64x32xf32, #tpu.memory_space<vmem>>, vector<8x32xf32>
    %544 = arith.index_cast %541 : i32 to index
    %c0_228 = arith.constant 0 : index
    %545 = vector.load %arg31[%544, %c0_228] : memref<64x32xf32, #tpu.memory_space<vmem>>, vector<8x32xf32>
    %546 = arith.index_cast %541 : i32 to index
    %c0_229 = arith.constant 0 : index
    %547 = vector.load %arg32[%546, %c0_229] : memref<64x32xf32, #tpu.memory_space<vmem>>, vector<8x32xf32>
    %cst_230 = arith.constant dense<0.000000e+00> : vector<8x32xf32>
    %548 = tpu.matmul %537, %324, %cst_230 {dimension_numbers = #tpu.dot_dimension_numbers<[1], [0], [0], [1], [0, 0, 1, 1], [], []>} : vector<8x32xf32>, vector<32x32xf32>, vector<8x32xf32> -> vector<8x32xf32>
    %549 = arith.addf %543, %548 : vector<8x32xf32>
    %550 = arith.negf %549 : vector<8x32xf32>
    %551 = math.exp %550 : vector<8x32xf32>
    %cst_231 = arith.constant 1.000000e+00 : f32
    %552 = vector.broadcast %cst_231 : f32 to vector<8x32xf32>
    %553 = arith.addf %552, %551 : vector<8x32xf32>
    %554 = arith.divf %552, %553 : vector<8x32xf32>
    %cst_232 = arith.constant dense<0.000000e+00> : vector<8x32xf32>
    %555 = tpu.matmul %537, %325, %cst_232 {dimension_numbers = #tpu.dot_dimension_numbers<[1], [0], [0], [1], [0, 0, 1, 1], [], []>} : vector<8x32xf32>, vector<32x32xf32>, vector<8x32xf32> -> vector<8x32xf32>
    %556 = arith.addf %545, %555 : vector<8x32xf32>
    %557 = arith.negf %556 : vector<8x32xf32>
    %558 = math.exp %557 : vector<8x32xf32>
    %cst_233 = arith.constant 1.000000e+00 : f32
    %559 = vector.broadcast %cst_233 : f32 to vector<8x32xf32>
    %560 = arith.addf %559, %558 : vector<8x32xf32>
    %561 = arith.divf %559, %560 : vector<8x32xf32>
    %cst_234 = arith.constant dense<0.000000e+00> : vector<8x32xf32>
    %562 = tpu.matmul %537, %326, %cst_234 {dimension_numbers = #tpu.dot_dimension_numbers<[1], [0], [0], [1], [0, 0, 1, 1], [], []>} : vector<8x32xf32>, vector<32x32xf32>, vector<8x32xf32> -> vector<8x32xf32>
    %563 = vector.broadcast %327 : vector<1x32xf32> to vector<8x32xf32>
    %564 = arith.addf %562, %563 : vector<8x32xf32>
    %565 = arith.mulf %554, %564 : vector<8x32xf32>
    %566 = arith.addf %547, %565 : vector<8x32xf32>
    %567 = math.tanh %566 : vector<8x32xf32>
    %cst_235 = arith.constant 1.000000e+00 : f32
    %568 = vector.broadcast %cst_235 : f32 to vector<8x32xf32>
    %569 = arith.subf %568, %561 : vector<8x32xf32>
    %570 = arith.mulf %569, %567 : vector<8x32xf32>
    %571 = arith.mulf %561, %537 : vector<8x32xf32>
    %572 = arith.addf %570, %571 : vector<8x32xf32>
    %573 = arith.index_cast %541 : i32 to index
    %c0_236 = arith.constant 0 : index
    %574 = vector.load %arg33[%573, %c0_236] : memref<64x32xf32, #tpu.memory_space<vmem>>, vector<8x32xf32>
    tpu.vector_store %arg33[%573, %c0_236], %572 {strides = array<i32>} : memref<64x32xf32, #tpu.memory_space<vmem>>, vector<8x32xf32>,
    %c7_i32_237 = arith.constant 7 : i32
    %c8_i32_238 = arith.constant 8 : i32
    %575 = arith.muli %c7_i32_237, %c8_i32_238 : i32
    %576 = tpu.assume_multiple %575, 8 : i32
    %577 = arith.index_cast %576 : i32 to index
    %c0_239 = arith.constant 0 : index
    %578 = vector.load %arg30[%577, %c0_239] : memref<64x32xf32, #tpu.memory_space<vmem>>, vector<8x32xf32>
    %579 = arith.index_cast %576 : i32 to index
    %c0_240 = arith.constant 0 : index
    %580 = vector.load %arg31[%579, %c0_240] : memref<64x32xf32, #tpu.memory_space<vmem>>, vector<8x32xf32>
    %581 = arith.index_cast %576 : i32 to index
    %c0_241 = arith.constant 0 : index
    %582 = vector.load %arg32[%581, %c0_241] : memref<64x32xf32, #tpu.memory_space<vmem>>, vector<8x32xf32>
    %cst_242 = arith.constant dense<0.000000e+00> : vector<8x32xf32>
    %583 = tpu.matmul %572, %324, %cst_242 {dimension_numbers = #tpu.dot_dimension_numbers<[1], [0], [0], [1], [0, 0, 1, 1], [], []>} : vector<8x32xf32>, vector<32x32xf32>, vector<8x32xf32> -> vector<8x32xf32>
    %584 = arith.addf %578, %583 : vector<8x32xf32>
    %585 = arith.negf %584 : vector<8x32xf32>
    %586 = math.exp %585 : vector<8x32xf32>
    %cst_243 = arith.constant 1.000000e+00 : f32
    %587 = vector.broadcast %cst_243 : f32 to vector<8x32xf32>
    %588 = arith.addf %587, %586 : vector<8x32xf32>
    %589 = arith.divf %587, %588 : vector<8x32xf32>
    %cst_244 = arith.constant dense<0.000000e+00> : vector<8x32xf32>
    %590 = tpu.matmul %572, %325, %cst_244 {dimension_numbers = #tpu.dot_dimension_numbers<[1], [0], [0], [1], [0, 0, 1, 1], [], []>} : vector<8x32xf32>, vector<32x32xf32>, vector<8x32xf32> -> vector<8x32xf32>
    %591 = arith.addf %580, %590 : vector<8x32xf32>
    %592 = arith.negf %591 : vector<8x32xf32>
    %593 = math.exp %592 : vector<8x32xf32>
    %cst_245 = arith.constant 1.000000e+00 : f32
    %594 = vector.broadcast %cst_245 : f32 to vector<8x32xf32>
    %595 = arith.addf %594, %593 : vector<8x32xf32>
    %596 = arith.divf %594, %595 : vector<8x32xf32>
    %cst_246 = arith.constant dense<0.000000e+00> : vector<8x32xf32>
    %597 = tpu.matmul %572, %326, %cst_246 {dimension_numbers = #tpu.dot_dimension_numbers<[1], [0], [0], [1], [0, 0, 1, 1], [], []>} : vector<8x32xf32>, vector<32x32xf32>, vector<8x32xf32> -> vector<8x32xf32>
    %598 = vector.broadcast %327 : vector<1x32xf32> to vector<8x32xf32>
    %599 = arith.addf %597, %598 : vector<8x32xf32>
    %600 = arith.mulf %589, %599 : vector<8x32xf32>
    %601 = arith.addf %582, %600 : vector<8x32xf32>
    %602 = math.tanh %601 : vector<8x32xf32>
    %cst_247 = arith.constant 1.000000e+00 : f32
    %603 = vector.broadcast %cst_247 : f32 to vector<8x32xf32>
    %604 = arith.subf %603, %596 : vector<8x32xf32>
    %605 = arith.mulf %604, %602 : vector<8x32xf32>
    %606 = arith.mulf %596, %572 : vector<8x32xf32>
    %607 = arith.addf %605, %606 : vector<8x32xf32>
    %608 = arith.index_cast %576 : i32 to index
    %c0_248 = arith.constant 0 : index
    %609 = vector.load %arg33[%608, %c0_248] : memref<64x32xf32, #tpu.memory_space<vmem>>, vector<8x32xf32>
    tpu.vector_store %arg33[%608, %c0_248], %607 {strides = array<i32>} : memref<64x32xf32, #tpu.memory_space<vmem>>, vector<8x32xf32>,
    %c8_i32_249 = arith.constant 8 : i32
    %c0_250 = arith.constant 0 : index
    %c0_251 = arith.constant 0 : index
    %610 = vector.load %arg33[%c0_250, %c0_251] : memref<64x32xf32, #tpu.memory_space<vmem>>, vector<64x32xf32>
    %c0_252 = arith.constant 0 : index
    %c0_253 = arith.constant 0 : index
    %611 = vector.load %arg2[%c0_252, %c0_253] : memref<64x4xf32, #tpu.memory_space<vmem>>, vector<64x4xf32>
    %c0_254 = arith.constant 0 : index
    %c0_255 = arith.constant 0 : index
    %612 = vector.load %arg24[%c0_254, %c0_255] : memref<32x32xf32, #tpu.memory_space<vmem>>, vector<32x32xf32>
    %cst_256 = arith.constant dense<0.000000e+00> : vector<64x32xf32>
    %613 = tpu.matmul %610, %612, %cst_256 {dimension_numbers = #tpu.dot_dimension_numbers<[1], [0], [0], [1], [0, 0, 1, 1], [], []>} : vector<64x32xf32>, vector<32x32xf32>, vector<64x32xf32> -> vector<64x32xf32>
    %c0_257 = arith.constant 0 : index
    %c0_258 = arith.constant 0 : index
    %614 = vector.load %arg25[%c0_257, %c0_258] : memref<4x32xf32, #tpu.memory_space<vmem>>, vector<4x32xf32>
    %cst_259 = arith.constant dense<0.000000e+00> : vector<64x32xf32>
    %615 = tpu.matmul %611, %614, %cst_259 {dimension_numbers = #tpu.dot_dimension_numbers<[1], [0], [0], [1], [0, 0, 1, 1], [], []>} : vector<64x4xf32>, vector<4x32xf32>, vector<64x32xf32> -> vector<64x32xf32>
    %616 = arith.addf %613, %615 : vector<64x32xf32>
    %c0_260 = arith.constant 0 : index
    %c0_261 = arith.constant 0 : index
    %617 = vector.load %arg26[%c0_260, %c0_261] : memref<1x32xf32, #tpu.memory_space<vmem>>, vector<1x32xf32>
    %618 = vector.broadcast %617 : vector<1x32xf32> to vector<64x32xf32>
    %619 = arith.addf %616, %618 : vector<64x32xf32>
    %cst_262 = arith.constant 0.000000e+00 : f32
    %620 = vector.broadcast %cst_262 : f32 to vector<64x32xf32>
    %621 = arith.maximumf %619, %620 : vector<64x32xf32>
    %c0_263 = arith.constant 0 : index
    %c0_264 = arith.constant 0 : index
    %622 = vector.load %arg27[%c0_263, %c0_264] : memref<32x128xf32, #tpu.memory_space<vmem>>, vector<32x128xf32>
    %cst_265 = arith.constant dense<0.000000e+00> : vector<64x128xf32>
    %623 = tpu.matmul %621, %622, %cst_265 {dimension_numbers = #tpu.dot_dimension_numbers<[1], [0], [0], [1], [0, 0, 1, 1], [], []>} : vector<64x32xf32>, vector<32x128xf32>, vector<64x128xf32> -> vector<64x128xf32>
    %c0_266 = arith.constant 0 : index
    %c0_267 = arith.constant 0 : index
    %624 = vector.load %arg28[%c0_266, %c0_267] : memref<1x128xf32, #tpu.memory_space<vmem>>, vector<1x128xf32>
    %625 = vector.broadcast %624 : vector<1x128xf32> to vector<64x128xf32>
    %626 = arith.addf %623, %625 : vector<64x128xf32>
    %627 = arith.negf %626 : vector<64x128xf32>
    %628 = math.exp %627 : vector<64x128xf32>
    %cst_268 = arith.constant 1.000000e+00 : f32
    %629 = vector.broadcast %cst_268 : f32 to vector<64x128xf32>
    %630 = arith.addf %629, %628 : vector<64x128xf32>
    %631 = arith.divf %629, %630 : vector<64x128xf32>
    %c0_269 = arith.constant 0 : index
    %c0_270 = arith.constant 0 : index
    %632 = vector.load %arg29[%c0_269, %c0_270] : memref<64x128xf32, #tpu.memory_space<vmem>>, vector<64x128xf32>
    tpu.vector_store %arg29[%c0_269, %c0_270], %631 {strides = array<i32>} : memref<64x128xf32, #tpu.memory_space<vmem>>, vector<64x128xf32>,
    return
  }
  func.func @transform_0(%arg0: i32) -> (i32, i32) {
    %c0_i32 = arith.constant 0 : i32
    %c0_i32_0 = arith.constant 0 : i32
    %c0_i32_1 = arith.constant 0 : i32
    return %c0_i32, %c0_i32_0 : i32, i32
  }
  func.func @transform_1(%arg0: i32) -> (i32, i32) {
    %c0_i32 = arith.constant 0 : i32
    %c0_i32_0 = arith.constant 0 : i32
    %c0_i32_1 = arith.constant 0 : i32
    return %c0_i32, %c0_i32_0 : i32, i32
  }
  func.func @transform_2(%arg0: i32) -> (i32, i32, i32) {
    %c0_i32 = arith.constant 0 : i32
    %c0_i32_0 = arith.constant 0 : i32
    %c0_i32_1 = arith.constant 0 : i32
    %c0_i32_2 = arith.constant 0 : i32
    return %c0_i32, %c0_i32_0, %c0_i32_1 : i32, i32, i32
  }
  func.func @transform_3(%arg0: i32) -> (i32, i32) {
    %c0_i32 = arith.constant 0 : i32
    %c0_i32_0 = arith.constant 0 : i32
    %c0_i32_1 = arith.constant 0 : i32
    return %c0_i32, %c0_i32_0 : i32, i32
  }
  func.func @transform_4(%arg0: i32) -> (i32, i32) {
    %c0_i32 = arith.constant 0 : i32
    %c0_i32_0 = arith.constant 0 : i32
    %c0_i32_1 = arith.constant 0 : i32
    return %c0_i32, %c0_i32_0 : i32, i32
  }
  func.func @transform_5(%arg0: i32) -> (i32, i32) {
    %c0_i32 = arith.constant 0 : i32
    %c0_i32_0 = arith.constant 0 : i32
    %c0_i32_1 = arith.constant 0 : i32
    return %c0_i32, %c0_i32_0 : i32, i32
  }
  func.func @transform_6(%arg0: i32) -> (i32, i32) {
    %c0_i32 = arith.constant 0 : i32
    %c0_i32_0 = arith.constant 0 : i32
    %c0_i32_1 = arith.constant 0 : i32
    return %c0_i32, %c0_i32_0 : i32, i32
  }
  func.func @transform_7(%arg0: i32) -> (i32, i32) {
    %c0_i32 = arith.constant 0 : i32
    %c0_i32_0 = arith.constant 0 : i32
    %c0_i32_1 = arith.constant 0 : i32
    return %c0_i32, %c0_i32_0 : i32, i32
  }
  func.func @transform_8(%arg0: i32) -> (i32, i32) {
    %c0_i32 = arith.constant 0 : i32
    %c0_i32_0 = arith.constant 0 : i32
    %c0_i32_1 = arith.constant 0 : i32
    return %c0_i32, %c0_i32_0 : i32, i32
  }
  func.func @transform_9(%arg0: i32) -> (i32, i32) {
    %c0_i32 = arith.constant 0 : i32
    %c0_i32_0 = arith.constant 0 : i32
    %c0_i32_1 = arith.constant 0 : i32
    return %c0_i32, %c0_i32_0 : i32, i32
  }
  func.func @transform_10(%arg0: i32) -> (i32, i32) {
    %c0_i32 = arith.constant 0 : i32
    %c0_i32_0 = arith.constant 0 : i32
    %c0_i32_1 = arith.constant 0 : i32
    return %c0_i32, %c0_i32_0 : i32, i32
  }
  func.func @transform_11(%arg0: i32) -> (i32, i32) {
    %c0_i32 = arith.constant 0 : i32
    %c0_i32_0 = arith.constant 0 : i32
    %c0_i32_1 = arith.constant 0 : i32
    return %c0_i32, %c0_i32_0 : i32, i32
  }
  func.func @transform_12(%arg0: i32) -> (i32, i32) {
    %c0_i32 = arith.constant 0 : i32
    %c0_i32_0 = arith.constant 0 : i32
    %c0_i32_1 = arith.constant 0 : i32
    return %c0_i32, %c0_i32_0 : i32, i32
  }
  func.func @transform_13(%arg0: i32) -> (i32, i32) {
    %c0_i32 = arith.constant 0 : i32
    %c0_i32_0 = arith.constant 0 : i32
    %c0_i32_1 = arith.constant 0 : i32
    return %c0_i32, %c0_i32_0 : i32, i32
  }
  func.func @transform_14(%arg0: i32) -> (i32, i32) {
    %c0_i32 = arith.constant 0 : i32
    %c0_i32_0 = arith.constant 0 : i32
    %c0_i32_1 = arith.constant 0 : i32
    return %c0_i32, %c0_i32_0 : i32, i32
  }
  func.func @transform_15(%arg0: i32) -> (i32, i32) {
    %c0_i32 = arith.constant 0 : i32
    %c0_i32_0 = arith.constant 0 : i32
    %c0_i32_1 = arith.constant 0 : i32
    return %c0_i32, %c0_i32_0 : i32, i32
  }
  func.func @transform_16(%arg0: i32) -> (i32, i32) {
    %c0_i32 = arith.constant 0 : i32
    %c0_i32_0 = arith.constant 0 : i32
    %c0_i32_1 = arith.constant 0 : i32
    return %c0_i32, %c0_i32_0 : i32, i32
  }
  func.func @transform_17(%arg0: i32) -> (i32, i32) {
    %c0_i32 = arith.constant 0 : i32
    %c0_i32_0 = arith.constant 0 : i32
    %c0_i32_1 = arith.constant 0 : i32
    return %c0_i32, %c0_i32_0 : i32, i32
  }
  func.func @transform_18(%arg0: i32) -> (i32, i32) {
    %c0_i32 = arith.constant 0 : i32
    %c0_i32_0 = arith.constant 0 : i32
    %c0_i32_1 = arith.constant 0 : i32
    return %c0_i32, %c0_i32_0 : i32, i32
  }
  func.func @transform_19(%arg0: i32) -> (i32, i32) {
    %c0_i32 = arith.constant 0 : i32
    %c0_i32_0 = arith.constant 0 : i32
    %c0_i32_1 = arith.constant 0 : i32
    return %c0_i32, %c0_i32_0 : i32, i32
  }
  func.func @transform_20(%arg0: i32) -> (i32, i32) {
    %c0_i32 = arith.constant 0 : i32
    %c0_i32_0 = arith.constant 0 : i32
    %c0_i32_1 = arith.constant 0 : i32
    return %c0_i32, %c0_i32_0 : i32, i32
  }
  func.func @transform_21(%arg0: i32) -> (i32, i32) {
    %c0_i32 = arith.constant 0 : i32
    %c0_i32_0 = arith.constant 0 : i32
    %c0_i32_1 = arith.constant 0 : i32
    return %c0_i32, %c0_i32_0 : i32, i32
  }
  func.func @transform_22(%arg0: i32) -> (i32, i32) {
    %c0_i32 = arith.constant 0 : i32
    %c0_i32_0 = arith.constant 0 : i32
    %c0_i32_1 = arith.constant 0 : i32
    return %c0_i32, %c0_i32_0 : i32, i32
  }
  func.func @transform_23(%arg0: i32) -> (i32, i32) {
    %c0_i32 = arith.constant 0 : i32
    %c0_i32_0 = arith.constant 0 : i32
    %c0_i32_1 = arith.constant 0 : i32
    return %c0_i32, %c0_i32_0 : i32, i32
  }
  func.func @transform_24(%arg0: i32) -> (i32, i32) {
    %c0_i32 = arith.constant 0 : i32
    %c0_i32_0 = arith.constant 0 : i32
    %c0_i32_1 = arith.constant 0 : i32
    return %c0_i32, %c0_i32_0 : i32, i32
  }
  func.func @transform_25(%arg0: i32) -> (i32, i32) {
    %c0_i32 = arith.constant 0 : i32
    %c0_i32_0 = arith.constant 0 : i32
    %c0_i32_1 = arith.constant 0 : i32
    return %c0_i32, %c0_i32_0 : i32, i32
  }
  func.func @transform_26(%arg0: i32) -> (i32, i32) {
    %c0_i32 = arith.constant 0 : i32
    %c0_i32_0 = arith.constant 0 : i32
    %c0_i32_1 = arith.constant 0 : i32
    return %c0_i32, %c0_i32_0 : i32, i32
  }
  func.func @transform_27(%arg0: i32) -> (i32, i32) {
    %c0_i32 = arith.constant 0 : i32
    %c0_i32_0 = arith.constant 0 : i32
    %c0_i32_1 = arith.constant 0 : i32
    return %c0_i32, %c0_i32_0 : i32, i32
  }
  func.func @transform_28(%arg0: i32) -> (i32, i32) {
    %c0_i32 = arith.constant 0 : i32
    %c0_i32_0 = arith.constant 0 : i32
    %c0_i32_1 = arith.constant 0 : i32
    return %c0_i32, %c0_i32_0 : i32, i32
  }
}

</mosaic_0001>

<bundles_post_ra>
// kernel: tpu_custom_call.1
= control target key start
LH: loop header
LB: loop body
LE: loop exit
PB: predicated region body
PF: predicated region fallthrough
CT: control target
= control target key end

     0   :  { %s8781_s0 = inlined_call_operand.vmem [shape: f32[64,4], index: 0, kind: input, shape index: {}]   ;;  %s8782_s1 = inlined_call_operand.vmem [shape: f32[64,4], index: 1, kind: input, shape index: {}]   ;;  %s8783_s2 = inlined_call_operand.hbm [shape: f32[2,8,32], index: 2, kind: input, shape index: {}]   ;;  %s8784_s3 = inlined_call_operand.hbm [shape: f32[4,32], index: 3, kind: input, shape index: {}]   ;;  %s8785_s4 = inlined_call_operand.hbm [shape: f32[4,32], index: 4, kind: input, shape index: {}]   ;;  %s8786_s5 = inlined_call_operand.hbm [shape: f32[4,32], index: 5, kind: input, shape index: {}]   ;;  %s8787_s6 = inlined_call_operand.vmem [shape: f32[32,32], index: 6, kind: input, shape index: {}]   ;;  %s8788_s7 = inlined_call_operand.vmem [shape: f32[32,32], index: 7, kind: input, shape index: {}]   ;;  %s8789_s8 = inlined_call_operand.vmem [shape: f32[32,32], index: 8, kind: input, shape index: {}]   ;;  %s8790_s9 = inlined_call_operand.hbm [shape: f32[1,32], index: 9, kind: input, shape index: {}]   ;;  %s8791_s10 = inlined_call_operand.hbm [shape: f32[1,32], index: 10, kind: input, shape index: {}]   ;;  %s8792_s11 = inlined_call_operand.hbm [shape: f32[1,32], index: 11, kind: input, shape index: {}]   ;;  %s8793_s12 = inlined_call_operand.hbm [shape: f32[1,32], index: 12, kind: input, shape index: {}]   ;;  %s8794_s13 = inlined_call_operand.vmem [shape: f32[32,32], index: 13, kind: input, shape index: {}]   ;;  %s8795_s14 = inlined_call_operand.vmem [shape: f32[32,32], index: 14, kind: input, shape index: {}]   ;;  %s8796_s15 = inlined_call_operand.vmem [shape: f32[32,32], index: 15, kind: input, shape index: {}]   ;;  %s8797_s16 = inlined_call_operand.hbm [shape: f32[32,32], index: 16, kind: input, shape index: {}]   ;;  %s8798_s17 = inlined_call_operand.hbm [shape: f32[32,32], index: 17, kind: input, shape index: {}]   ;;  %s8799_s18 = inlined_call_operand.hbm [shape: f32[32,32], index: 18, kind: input, shape index: {}]   ;;  %s8800_s19 = inlined_call_operand.vmem [shape: f32[1,32], index: 19, kind: input, shape index: {}]   ;;  %s8801_s20 = inlined_call_operand.vmem [shape: f32[1,32], index: 20, kind: input, shape index: {}]   ;;  %s8802_s21 = inlined_call_operand.hbm [shape: f32[1,32], index: 21, kind: input, shape index: {}]   ;;  %s8803_s22 = inlined_call_operand.hbm [shape: f32[1,32], index: 22, kind: input, shape index: {}]   ;;  %s8804_s23 = inlined_call_operand.hbm [shape: f32[32,32], index: 23, kind: input, shape index: {}]   ;;  %s8805_s24 = inlined_call_operand.hbm [shape: f32[4,32], index: 24, kind: input, shape index: {}]   ;;  %s8806_s25 = inlined_call_operand.vmem [shape: f32[1,32], index: 25, kind: input, shape index: {}]   ;;  %s8807_s26 = inlined_call_operand.vmem [shape: f32[32,128], index: 26, kind: input, shape index: {}]   ;;  %s8808_s27 = inlined_call_operand.vmem [shape: f32[1,128], index: 27, kind: input, shape index: {}]   ;;  %s8809_s28 = inlined_call_operand.hbm [shape: f32[64,128], index: 28, kind: output, shape index: {}]  }
   0x1   :  { %8824 = sst [smem:[#allocation40_spill]] %s8781_s0 }
   0x2   :  { %8825 = sst [smem:[#allocation41_spill]] %s8782_s1 }
   0x3   :  { %8826 = sst [smem:[#allocation42_spill]] %s8783_s2 }
   0x4   :  { %8827 = sst [smem:[#allocation43_spill]] %s8784_s3 }
   0x5   :  { %8828 = sst [smem:[#allocation44_spill]] %s8785_s4 }
   0x6   :  { %8829 = sst [smem:[#allocation45_spill]] %s8786_s5 }
   0x7   :  { %8830 = sst [smem:[#allocation46_spill]] %s8787_s6 }
   0x8   :  { %8831 = sst [smem:[#allocation47_spill]] %s8788_s7 }
   0x9   :  { %8832 = sst [smem:[#allocation48_spill]] %s8789_s8 }
   0xa   :  { %8833 = sst [smem:[#allocation49_spill]] %s8790_s9 }
   0xb   :  { %8834 = sst [smem:[#allocation50_spill]] %s8791_s10 }
   0xc   :  { %8835 = sst [smem:[#allocation51_spill]] %s8792_s11 }
   0xd   :  { %8836 = sst [smem:[#allocation52_spill]] %s8793_s12 }
   0xe   :  { %8837 = sst [smem:[#allocation53_spill]] %s8809_s28 }
   0xf   :  { %33 = vsyncpa [#allocation7], 0 }
  0x10   :  { %34 = vsyncpa [#allocation10], 0 }
  0x11   :  { %35 = vsyncpa [#allocation13], 0 }
  0x12   :  { %36 = vsyncpa [#allocation16], 0 }
  0x13   :  { %37 = vsyncpa [#allocation19], 0 }
  0x14   :  { %38 = vsyncpa [#allocation22], 0 }
  0x15   :  { %39 = vsyncpa [#allocation25], 0 }
  0x16   :  { %40 = vsyncpa [#allocation28], 0 }
  0x17   :  { %41 = vsyncpa [#allocation8], 0  ;;  %s7601_s8 = smov [#allocation9]   ;;  %s7602_s9 = smov [#allocation12]  }
  0x18   :  { %s64_s5 = sshll.u32 %s7601_s8, 4  ;;  %s84_s30 = sshll.u32 %s7602_s9, 4  ;;  %s65_s5 = int_to_ptr.vmem [resolvable:$true] %s64_s5  ;;  %s85_s30 = int_to_ptr.vmem [resolvable:$true] %s84_s30 }
  0x19   :  { %s8838_s10 = sld [smem:[#allocation43_spill]] }
  0x1f   :  { %s7231_s0 = scalar_lea.hbm %s8838_s10, 64 }
  0x20   :  { %p7232_p0 = scmp.ne.s32.totalorder %s8838_s10, %s7231_s0  ;;  %p7235_p1 = scmp.lt.u32.totalorder %s7231_s0, %s8838_s10 }
  0x22   :  { %p7237_p2 = pnand %p7235_p1, %p7232_p0 }
  0x24   :  { %7240 = shalt.err (!%p7237_p2)
}
  0x25   :  { %s7241_s12 = scalar_lea.vmem %s65_s5, 64  ;;  %p7246_p4 = scmp.lt.s32.totalorder %s65_s5, %s65_s5 }
  0x26   :  { %p7242_p3 = scmp.ne.s32.totalorder %s65_s5, %s7241_s12  ;;  %p7247_p5 = scmp.lt.s32.totalorder %s7241_s12, %s7241_s12 }
  0x28   :  { %p7248_p6 = por %p7247_p5, %p7246_p4 }
  0x2a   :  { %p7249_p7 = pnand %p7248_p6, %p7242_p3 }
  0x2c   :  { %7252 = shalt.err (!%p7249_p7)
}
  0x2d   :  { %67 = dma.hbm_to_vmem [thread:$0]  %s8838_s10, 64, %s65_s5, [#allocation10]  }
  0x2e   :  { %s8839_s3 = sld [smem:[#allocation45_spill]] }
  0x34   :  { %s7253_s6 = scalar_lea.hbm %s8839_s3, 64 }
  0x35   :  { %p7254_p8 = scmp.ne.s32.totalorder %s8839_s3, %s7253_s6  ;;  %p7257_p9 = scmp.lt.u32.totalorder %s7253_s6, %s8839_s3 }
  0x37   :  { %p7259_p10 = pnand %p7257_p9, %p7254_p8 }
  0x39   :  { %7262 = shalt.err (!%p7259_p10)
}
  0x3a   :  { %s7263_s7 = scalar_lea.vmem %s85_s30, 64  ;;  %p7268_p12 = scmp.lt.s32.totalorder %s85_s30, %s85_s30 }
  0x3b   :  { %p7264_p11 = scmp.ne.s32.totalorder %s85_s30, %s7263_s7  ;;  %p7269_p13 = scmp.lt.s32.totalorder %s7263_s7, %s7263_s7 }
  0x3d   :  { %p7270_p0 = por %p7269_p13, %p7268_p12 }
  0x3f   :  { %p7271_p1 = pnand %p7270_p0, %p7264_p11 }
  0x41   :  { %7274 = shalt.err (!%p7271_p1)
}
  0x42   :  { %87 = dma.hbm_to_vmem [thread:$0]  %s8839_s3, 64, %s85_s30, [#allocation13]  }
  0x43   :  { %s7603_s12 = smov [#allocation15]   ;;  %s7604_s4 = smov [#allocation18]  }
  0x44   :  { %s110_s1 = sshll.u32 %s7603_s12, 4  ;;  %s130_s8 = sshll.u32 %s7604_s4, 4  ;;  %s111_s1 = int_to_ptr.vmem [resolvable:$true] %s110_s1  ;;  %s131_s8 = int_to_ptr.vmem [resolvable:$true] %s130_s8 }
  0x45   :  { %s8840_s11 = sld [smem:[#allocation50_spill]] }
  0x4b   :  { %s7275_s29 = scalar_lea.hbm %s8840_s11, 16 }
  0x4c   :  { %p7276_p2 = scmp.ne.s32.totalorder %s8840_s11, %s7275_s29  ;;  %p7279_p3 = scmp.lt.u32.totalorder %s7275_s29, %s8840_s11 }
  0x4e   :  { %p7281_p4 = pnand %p7279_p3, %p7276_p2 }
  0x50   :  { %7284 = shalt.err (!%p7281_p4)
}
  0x51   :  { %s7285_s30 = scalar_lea.vmem %s111_s1, 16  ;;  %s7289_s3 = scalar_lea.vmem %s111_s1, 32 }
  0x52   :  { %p7286_p5 = scmp.ne.s32.totalorder %s111_s1, %s7285_s30  ;;  %p7290_p6 = scmp.lt.s32.totalorder %s111_s1, %s111_s1 }
  0x53   :  { %p7291_p7 = scmp.lt.s32.totalorder %s7289_s3, %s7285_s30 }
  0x55   :  { %p7292_p8 = por %p7291_p7, %p7290_p6 }
  0x57   :  { %p7293_p9 = pnand %p7292_p8, %p7286_p5 }
  0x59   :  { %7296 = shalt.err (!%p7293_p9)
}
  0x5a   :  { %113 = dma.hbm_to_vmem [thread:$0]  %s8840_s11, 16, %s111_s1, [#allocation16]  }
  0x5b   :  { %s8841_s9 = sld [smem:[#allocation52_spill]] }
  0x61   :  { %s7297_s6 = scalar_lea.hbm %s8841_s9, 16 }
  0x62   :  { %p7298_p10 = scmp.ne.s32.totalorder %s8841_s9, %s7297_s6  ;;  %p7301_p11 = scmp.lt.u32.totalorder %s7297_s6, %s8841_s9 }
  0x64   :  { %p7303_p12 = pnand %p7301_p11, %p7298_p10 }
  0x66   :  { %7306 = shalt.err (!%p7303_p12)
}
  0x67   :  { %s7307_s7 = scalar_lea.vmem %s131_s8, 16  ;;  %s7311_s30 = scalar_lea.vmem %s131_s8, 32 }
  0x68   :  { %p7308_p13 = scmp.ne.s32.totalorder %s131_s8, %s7307_s7  ;;  %p7312_p0 = scmp.lt.s32.totalorder %s131_s8, %s131_s8 }
  0x69   :  { %p7313_p1 = scmp.lt.s32.totalorder %s7311_s30, %s7307_s7 }
  0x6b   :  { %p7314_p2 = por %p7313_p1, %p7312_p0 }
  0x6d   :  { %p7315_p3 = pnand %p7314_p2, %p7308_p13 }
  0x6f   :  { %7318 = shalt.err (!%p7315_p3)
}
  0x70   :  { %133 = dma.hbm_to_vmem [thread:$0]  %s8841_s9, 16, %s131_s8, [#allocation19]  }
  0x71   :  { %s7605_s3 = smov [#allocation21]   ;;  %s7606_s10 = smov [#allocation24]  }
  0x72   :  { %s157_s5 = sshll.u32 %s7605_s3, 4  ;;  %s186_s12 = sshll.u32 %s7606_s10, 4  ;;  %s158_s5 = int_to_ptr.vmem [resolvable:$true] %s157_s5  ;;  %s7815_s12 = int_to_ptr.vmem [resolvable:$true] %s186_s12 }
  0x73   :  { %s7319_s28 = scalar_lea.hbm %s8798_s17, 512 }
  0x74   :  { %p7320_p4 = scmp.ne.s32.totalorder %s8798_s17, %s7319_s28  ;;  %p7323_p5 = scmp.lt.u32.totalorder %s7319_s28, %s8798_s17 }
  0x76   :  { %p7325_p6 = pnand %p7323_p5, %p7320_p4 }
  0x78   :  { %7328 = shalt.err (!%p7325_p6)
}
  0x79   :  { %s7329_s8 = scalar_lea.vmem %s158_s5, 512  ;;  %p7334_p8 = scmp.lt.s32.totalorder %s158_s5, %s158_s5 }
  0x7a   :  { %p7330_p7 = scmp.ne.s32.totalorder %s158_s5, %s7329_s8  ;;  %p7335_p9 = scmp.lt.s32.totalorder %s7329_s8, %s7329_s8 }
  0x7c   :  { %p7336_p10 = por %p7335_p9, %p7334_p8 }
  0x7e   :  { %p7337_p11 = pnand %p7336_p10, %p7330_p7 }
  0x80   :  { %7340 = shalt.err (!%p7337_p11)
}
  0x81   :  { %s7607_s9 = smov 128   ;;  %s7608_s30 = smov 8  }
  0x82   :  { %163 = dma.hbm_to_vmem [thread:$0]  %s8798_s17, 512, %s158_s5, [#allocation22], %s7607_s9, %s7607_s9, %s7608_s30  }
  0x83   :  { %s7341_s4 = scalar_lea.hbm %s8802_s21, 16 }
  0x84   :  { %p7342_p12 = scmp.ne.s32.totalorder %s8802_s21, %s7341_s4  ;;  %p7345_p13 = scmp.lt.u32.totalorder %s7341_s4, %s8802_s21 }
  0x86   :  { %p7347_p0 = pnand %p7345_p13, %p7342_p12 }
  0x88   :  { %7350 = shalt.err (!%p7347_p0)
}
  0x89   :  { %s7351_s2 = scalar_lea.vmem %s7815_s12, 16  ;;  %s7355_s17 = scalar_lea.vmem %s7815_s12, 32 }
  0x8a   :  { %p7352_p1 = scmp.ne.s32.totalorder %s7815_s12, %s7351_s2  ;;  %p7356_p2 = scmp.lt.s32.totalorder %s7815_s12, %s7815_s12 }
  0x8b   :  { %p7357_p3 = scmp.lt.s32.totalorder %s7355_s17, %s7351_s2 }
  0x8d   :  { %p7358_p4 = por %p7357_p3, %p7356_p2 }
  0x8f   :  { %p7359_p5 = pnand %p7358_p4, %p7352_p1 }
  0x91   :  { %7362 = shalt.err (!%p7359_p5)
}
  0x92   :  { %189 = dma.hbm_to_vmem [thread:$0]  %s8802_s21, 16, %s7815_s12, [#allocation25]  }
  0x93   :  { %s7609_s8 = smov [#allocation27]   ;;  %s7610_s11 = smov [#allocation6]  }
  0x94   :  { %s205_s1 = sshll.u32 %s7609_s8, 4  ;;  %s51_s3 = sshll.u32 %s7610_s11, 4  ;;  %s206_s1 = int_to_ptr.vmem [resolvable:$true] %s205_s1  ;;  %s7850_s3 = int_to_ptr.vmem [resolvable:$true] %s51_s3 }
  0x95   :  { %s7363_s6 = scalar_lea.hbm %s8804_s23, 512 }
  0x96   :  { %p7364_p6 = scmp.ne.s32.totalorder %s8804_s23, %s7363_s6  ;;  %p7367_p7 = scmp.lt.u32.totalorder %s7363_s6, %s8804_s23 }
  0x98   :  { %p7369_p8 = pnand %p7367_p7, %p7364_p6 }
  0x9a   :  { %7372 = shalt.err (!%p7369_p8)
}
  0x9b   :  { %s7373_s21 = scalar_lea.vmem %s206_s1, 512  ;;  %p7378_p10 = scmp.lt.s32.totalorder %s206_s1, %s206_s1 }
  0x9c   :  { %p7374_p9 = scmp.ne.s32.totalorder %s206_s1, %s7373_s21  ;;  %p7379_p11 = scmp.lt.s32.totalorder %s7373_s21, %s7373_s21 }
  0x9e   :  { %p7380_p12 = por %p7379_p11, %p7378_p10 }
  0xa0   :  { %p7381_p13 = pnand %p7380_p12, %p7374_p9 }
  0xa2   :  { %7384 = shalt.err (!%p7381_p13)
}
  0xa3   :  { %211 = dma.hbm_to_vmem [thread:$0]  %s8804_s23, 512, %s206_s1, [#allocation28], %s7607_s9, %s7607_s9, %s7608_s30  }
  0xa4   :  { %s8842_s8 = sld [smem:[#allocation42_spill]] }
  0xaa   :  { %s7385_s11 = scalar_lea.hbm %s8842_s8, 256 }
  0xab   :  { %p7386_p0 = scmp.ne.s32.totalorder %s8842_s8, %s7385_s11  ;;  %p7389_p1 = scmp.lt.u32.totalorder %s7385_s11, %s8842_s8 }
  0xad   :  { %p7391_p2 = pnand %p7389_p1, %p7386_p0 }
  0xaf   :  { %7394 = shalt.err (!%p7391_p2)
}
  0xb0   :  { %s7395_s29 = scalar_lea.vmem %s7850_s3, 256  ;;  %p7400_p4 = scmp.lt.s32.totalorder %s7850_s3, %s7850_s3 }
  0xb1   :  { %p7396_p3 = scmp.ne.s32.totalorder %s7850_s3, %s7395_s29  ;;  %p7401_p5 = scmp.lt.s32.totalorder %s7395_s29, %s7395_s29 }
  0xb3   :  { %p7402_p6 = por %p7401_p5, %p7400_p4 }
  0xb5   :  { %p7403_p7 = pnand %p7402_p6, %p7396_p3 }
  0xb7   :  { %7406 = shalt.err (!%p7403_p7)
}
  0xb8   :  { %57 = dma.hbm_to_vmem [thread:$0]  %s8842_s8, 256, %s7850_s3, [#allocation7], %s7607_s9, %s7607_s9, %s7608_s30  }
  0xb9   :  { %s7611_s0 = smov [#allocation11]   ;;  %s7612_s21 = smov [#allocation14]  }
  0xba   :  { %s74_s2 = sshll.u32 %s7611_s0, 4  ;;  %s100_s12 = sshll.u32 %s7612_s21, 4  ;;  %s75_s2 = int_to_ptr.vmem [resolvable:$true] %s74_s2  ;;  %s101_s12 = int_to_ptr.vmem [resolvable:$true] %s100_s12 }
  0xbb   :  { %s8843_s7 = sld [smem:[#allocation44_spill]] }
  0xc1   :  { %s7407_s11 = scalar_lea.hbm %s8843_s7, 64 }
  0xc2   :  { %p7408_p8 = scmp.ne.s32.totalorder %s8843_s7, %s7407_s11  ;;  %p7411_p9 = scmp.lt.u32.totalorder %s7407_s11, %s8843_s7 }
  0xc4   :  { %p7413_p10 = pnand %p7411_p9, %p7408_p8 }
  0xc6   :  { %7416 = shalt.err (!%p7413_p10)
}
  0xc7   :  { %s7417_s3 = scalar_lea.vmem %s75_s2, 64  ;;  %p7422_p12 = scmp.lt.s32.totalorder %s75_s2, %s75_s2 }
  0xc8   :  { %p7418_p11 = scmp.ne.s32.totalorder %s75_s2, %s7417_s3  ;;  %p7423_p13 = scmp.lt.s32.totalorder %s7417_s3, %s7417_s3 }
  0xca   :  { %p7424_p0 = por %p7423_p13, %p7422_p12 }
  0xcc   :  { %p7425_p1 = pnand %p7424_p0, %p7418_p11 }
  0xce   :  { %7428 = shalt.err (!%p7425_p1)
}
  0xcf   :  { %77 = dma.hbm_to_vmem [thread:$0]  %s8843_s7, 64, %s75_s2, [#allocation10]  }
  0xd0   :  { %s8844_s0 = sld [smem:[#allocation49_spill]] }
  0xd6   :  { %s7429_s21 = scalar_lea.hbm %s8844_s0, 16 }
  0xd7   :  { %p7430_p2 = scmp.ne.s32.totalorder %s8844_s0, %s7429_s21  ;;  %p7433_p3 = scmp.lt.u32.totalorder %s7429_s21, %s8844_s0 }
  0xd9   :  { %p7435_p4 = pnand %p7433_p3, %p7430_p2 }
  0xdb   :  { %7438 = shalt.err (!%p7435_p4)
}
  0xdc   :  { %s7439_s4 = scalar_lea.vmem %s101_s12, 16  ;;  %s7443_s6 = scalar_lea.vmem %s101_s12, 32 }
  0xdd   :  { %p7440_p5 = scmp.ne.s32.totalorder %s101_s12, %s7439_s4  ;;  %p7444_p6 = scmp.lt.s32.totalorder %s101_s12, %s101_s12 }
  0xde   :  { %p7445_p7 = scmp.lt.s32.totalorder %s7443_s6, %s7439_s4 }
  0xe0   :  { %p7446_p8 = por %p7445_p7, %p7444_p6 }
  0xe2   :  { %p7447_p9 = pnand %p7446_p8, %p7440_p5 }
  0xe4   :  { %7450 = shalt.err (!%p7447_p9)
}
  0xe5   :  { %103 = dma.hbm_to_vmem [thread:$0]  %s8844_s0, 16, %s101_s12, [#allocation13]  }
  0xe6   :  { %s7613_s28 = smov [#allocation17]   ;;  %s7614_s8 = smov [#allocation20]  }
  0xe7   :  { %s120_s3 = sshll.u32 %s7613_s28, 4  ;;  %s145_s29 = sshll.u32 %s7614_s8, 4  ;;  %s121_s3 = int_to_ptr.vmem [resolvable:$true] %s120_s3  ;;  %s7911_s29 = int_to_ptr.vmem [resolvable:$true] %s145_s29 }
  0xe8   :  { %s8845_s21 = sld [smem:[#allocation51_spill]] }
  0xee   :  { %s7451_s17 = scalar_lea.hbm %s8845_s21, 16 }
  0xef   :  { %p7452_p10 = scmp.ne.s32.totalorder %s8845_s21, %s7451_s17  ;;  %p7455_p11 = scmp.lt.u32.totalorder %s7451_s17, %s8845_s21 }
  0xf1   :  { %p7457_p12 = pnand %p7455_p11, %p7452_p10 }
  0xf3   :  { %7460 = shalt.err (!%p7457_p12)
}
  0xf4   :  { %s7461_s12 = scalar_lea.vmem %s121_s3, 16  ;;  %s7465_s0 = scalar_lea.vmem %s121_s3, 32 }
  0xf5   :  { %p7462_p13 = scmp.ne.s32.totalorder %s121_s3, %s7461_s12  ;;  %p7466_p0 = scmp.lt.s32.totalorder %s121_s3, %s121_s3 }
  0xf6   :  { %p7467_p1 = scmp.lt.s32.totalorder %s7465_s0, %s7461_s12 }
  0xf8   :  { %p7468_p2 = por %p7467_p1, %p7466_p0 }
  0xfa   :  { %p7469_p3 = pnand %p7468_p2, %p7462_p13 }
  0xfc   :  { %7472 = shalt.err (!%p7469_p3)
}
  0xfd   :  { %123 = dma.hbm_to_vmem [thread:$0]  %s8845_s21, 16, %s121_s3, [#allocation16]  }
  0xfe   :  { %s7473_s8 = scalar_lea.hbm %s8797_s16, 512 }
  0xff   :  { %p7474_p4 = scmp.ne.s32.totalorder %s8797_s16, %s7473_s8  ;;  %p7477_p5 = scmp.lt.u32.totalorder %s7473_s8, %s8797_s16 }
 0x101   :  { %p7479_p6 = pnand %p7477_p5, %p7474_p4 }
 0x103   :  { %7482 = shalt.err (!%p7479_p6)
}
 0x104   :  { %s7483_s11 = scalar_lea.vmem %s7911_s29, 512  ;;  %p7488_p8 = scmp.lt.s32.totalorder %s7911_s29, %s7911_s29 }
 0x105   :  { %p7484_p7 = scmp.ne.s32.totalorder %s7911_s29, %s7483_s11  ;;  %p7489_p9 = scmp.lt.s32.totalorder %s7483_s11, %s7483_s11 }
 0x107   :  { %p7490_p10 = por %p7489_p9, %p7488_p8 }
 0x109   :  { %p7491_p11 = pnand %p7490_p10, %p7484_p7 }
 0x10b   :  { %7494 = shalt.err (!%p7491_p11)
}
 0x10c   :  { %151 = dma.hbm_to_vmem [thread:$0]  %s8797_s16, 512, %s7911_s29, [#allocation19], %s7607_s9, %s7607_s9, %s7608_s30  }
 0x10d   :  { %s7615_s10 = smov [#allocation23]   ;;  %s7616_s12 = smov [#allocation26]  }
 0x10e   :  { %s169_s4 = sshll.u32 %s7615_s10, 4  ;;  %s196_s0 = sshll.u32 %s7616_s12, 4  ;;  %s170_s4 = int_to_ptr.vmem [resolvable:$true] %s169_s4  ;;  %s197_s0 = int_to_ptr.vmem [resolvable:$true] %s196_s0 }
 0x10f   :  { %s7495_s7 = scalar_lea.hbm %s8799_s18, 512 }
 0x110   :  { %p7496_p12 = scmp.ne.s32.totalorder %s8799_s18, %s7495_s7  ;;  %p7499_p13 = scmp.lt.u32.totalorder %s7495_s7, %s8799_s18 }
 0x112   :  { %p7501_p0 = pnand %p7499_p13, %p7496_p12 }
 0x114   :  { %7504 = shalt.err (!%p7501_p0)
}
 0x115   :  { %s7505_s16 = scalar_lea.vmem %s170_s4, 512  ;;  %p7510_p2 = scmp.lt.s32.totalorder %s170_s4, %s170_s4 }
 0x116   :  { %p7506_p1 = scmp.ne.s32.totalorder %s170_s4, %s7505_s16  ;;  %p7511_p3 = scmp.lt.s32.totalorder %s7505_s16, %s7505_s16 }
 0x118   :  { %p7512_p4 = por %p7511_p3, %p7510_p2 }
 0x11a   :  { %p7513_p5 = pnand %p7512_p4, %p7506_p1 }
 0x11c   :  { %7516 = shalt.err (!%p7513_p5)
}
 0x11d   :  { %175 = dma.hbm_to_vmem [thread:$0]  %s8799_s18, 512, %s170_s4, [#allocation22], %s7607_s9, %s7607_s9, %s7608_s30  }
 0x11e   :  { %s7517_s3 = scalar_lea.hbm %s8803_s22, 16 }
 0x11f   :  { %p7518_p6 = scmp.ne.s32.totalorder %s8803_s22, %s7517_s3  ;;  %p7521_p7 = scmp.lt.u32.totalorder %s7517_s3, %s8803_s22 }
 0x121   :  { %p7523_p8 = pnand %p7521_p7, %p7518_p6 }
 0x123   :  { %7526 = shalt.err (!%p7523_p8)
}
 0x124   :  { %s7527_s2 = scalar_lea.vmem %s197_s0, 16  ;;  %s7531_s7 = scalar_lea.vmem %s197_s0, 32 }
 0x125   :  { %p7528_p9 = scmp.ne.s32.totalorder %s197_s0, %s7527_s2  ;;  %p7532_p10 = scmp.lt.s32.totalorder %s197_s0, %s197_s0 }
 0x126   :  { %p7533_p11 = scmp.lt.s32.totalorder %s7531_s7, %s7527_s2 }
 0x128   :  { %p7534_p12 = por %p7533_p11, %p7532_p10 }
 0x12a   :  { %p7535_p13 = pnand %p7534_p12, %p7528_p9 }
 0x12c   :  { %7538 = shalt.err (!%p7535_p13)
}
 0x12d   :  { %199 = dma.hbm_to_vmem [thread:$0]  %s8803_s22, 16, %s197_s0, [#allocation25]  }
 0x12e   :  { %s7617_s28 = smov [#allocation29]   ;;  %s7539_s16 = scalar_lea.hbm %s8805_s24, 64 }
 0x12f   :  { %s218_s8 = sshll.u32 %s7617_s28, 4  ;;  %p7540_p0 = scmp.ne.s32.totalorder %s8805_s24, %s7539_s16  ;;  %s219_s8 = int_to_ptr.vmem [resolvable:$true] %s218_s8 }
 0x130   :  { %p7543_p1 = scmp.lt.u32.totalorder %s7539_s16, %s8805_s24 }
 0x132   :  { %p7545_p2 = pnand %p7543_p1, %p7540_p0 }
 0x134   :  { %7548 = shalt.err (!%p7545_p2)
}
 0x135   :  { %s7549_s3 = scalar_lea.vmem %s219_s8, 64  ;;  %p7554_p4 = scmp.lt.s32.totalorder %s219_s8, %s219_s8 }
 0x136   :  { %p7550_p3 = scmp.ne.s32.totalorder %s219_s8, %s7549_s3  ;;  %p7555_p5 = scmp.lt.s32.totalorder %s7549_s3, %s7549_s3 }
 0x138   :  { %p7556_p6 = por %p7555_p5, %p7554_p4 }
 0x13a   :  { %p7557_p7 = pnand %p7556_p6, %p7550_p3 }
 0x13c   :  { %7560 = shalt.err (!%p7557_p7)
}
 0x13d   :  { %221 = dma.hbm_to_vmem [thread:$0]  %s8805_s24, 64, %s219_s8, [#allocation28]  }
 0x13e   :  { %7583 = dma.done.wait [#allocation7], 256  }
 0x13f   :  { %7584 = vsyncadd [#allocation7], 4294967040 }
 0x140   :  { %7585 = dma.done.wait [#allocation10], 128  }
 0x141   :  { %7586 = vsyncadd [#allocation10], 4294967168 }
 0x142   :  { %7587 = dma.done.wait [#allocation13], 80  }
 0x143   :  { %7588 = vsyncadd [#allocation13], 4294967216 }
 0x144   :  { %7589 = dma.done.wait [#allocation16], 32  }
 0x145   :  { %7590 = vsyncadd [#allocation16], 4294967264 }
 0x146   :  { %7591 = dma.done.wait [#allocation19], 528  }
 0x147   :  { %7592 = vsyncadd [#allocation19], 4294966768 }
 0x148   :  { %7593 = dma.done.wait [#allocation22], 1024  }
 0x149   :  { %7594 = vsyncadd [#allocation22], 4294966272 }
 0x14a   :  { %7595 = dma.done.wait [#allocation25], 32  }
 0x14b   :  { %7596 = vsyncadd [#allocation25], 4294967264 }
 0x14c   :  { %7597 = dma.done.wait [#allocation28], 576  }
 0x14d   :  { %7598 = vsyncadd [#allocation28], 4294966720  ;;  %vm314_vm0 = vcmask 1043456   ;;  %vm289_vm1 = vcmask 31744   ;;  %v432_v0 = vld [vmem:[#allocation11] sm:$0xf] }
 0x14e   :  { %s8846_s10 = sld [smem:[#allocation40_spill]]  ;;  %6010 = vmatprep.subr.msk.mxu1 %vm314_vm0, %v432_v0  ;;  %s8847_s18 = sld [smem:[#allocation46_spill]]  ;;  %v281_v5 = vld [vmem:[#allocation9] sm:$0xf]  ;;  %v7618_v8 = vmov 0.0|0.0   ;;  %vm7619_vm2 = vmmov 0  }
 0x14f   :  { %6011 = vmatpush3.msk.msra.mxu1 %vm314_vm0, %v432_v0  ;;  %5996 = vmatprep.subr.msk.mxu0 %vm314_vm0, %v281_v5  ;;  %v556_v13 = vld [vmem:[#allocation12] sm:$0xf]  ;;  %s8848_s4 = sld [smem:[#allocation47_spill]]  ;;  %v7620_v20 = vmov 0.0   ;;  %vm423_vm3 = vcmask 261120   ;;  %v8063_v21 = vld [vmem:[#allocation6] sm:$0xff] }
 0x150   :  { %6680 = vmatprep.subr.bf16.mxu1 %v7618_v8  ;;  %5997 = vmatpush3.msk.msra.mxu0 %vm314_vm0, %v281_v5  ;;  %s8849_s1 = sld [smem:[#allocation48_spill]]  ;;  %v5496_v32 = vld [vmem:[#allocation15] ss:$0 sm:$0xff]  ;;  %v5486_v36 = vld [vmem:[#allocation14] ss:$0 sm:$0xff] }
 0x151   :  { %6024 = vmatprep.subr.msk.mxu0 %vm314_vm0, %v556_v13 }
 0x154   :  { %v273_v1 = vld [vmem:[%s8846_s10] sm:$0xff]  ;;  %v7990_v2 = vld [vmem:[%s8846_s10 + $0x8] sm:$0xff]  ;;  %v275_v7 = vld [vmem:[%s8846_s10 + $0x10] sm:$0xff] }
 0x155   :  { %6012 = vmatprep.mubr.msk.f32.mxu1 %vm289_vm1, %v273_v1  ;;  %v680_v3 = vld [vmem:[%s8847_s18] sm:$0xff]  ;;  %v681_v4 = vld [vmem:[%s8847_s18 + $0x8] sm:$0xff]  ;;  %v682_v9 = vld [vmem:[%s8847_s18 + $0x10] sm:$0xff]  ;;  %5998 = vmatprep.mubr.msk.f32.mxu0 %vm289_vm1, %v273_v1 }
 0x156   :  { %v8001_v6 = vpack.c.bf16 %v681_v4, %v680_v3  ;;  %6013 = vmatmul.mubr.msk.f32.vlgmr.msra.gmra.mrb[0].mxu1 %vm289_vm1, %v7990_v2  ;;  %v683_v10 = vld [vmem:[%s8847_s18 + $0x18] sm:$0xff]  ;;  %v277_v14 = vld [vmem:[%s8846_s10 + $0x20] sm:$0xff]  ;;  %5999 = vmatmul.mubr.msk.f32.vlgmr.msra.gmra.mrb[0].mxu0 %vm289_vm1, %v7990_v2  ;;  %v278_v15 = vld [vmem:[%s8846_s10 + $0x28] sm:$0xff]  ;;  %s8850_s18 = sld [smem:[#allocation41_spill]] }
 0x157   :  { %6015 = vmatprep.mubr.msk.f32.mxu1 %vm289_vm1, %v275_v7  ;;  %v276_v11 = vld [vmem:[%s8846_s10 + $0x18] sm:$0xff]  ;;  %v8021_v12 = vpack.c.bf16 %v683_v10, %v682_v9  ;;  %v279_v16 = vld [vmem:[%s8846_s10 + $0x30] sm:$0xff]  ;;  %6025 = vmatpush3.msk.msra.mxu0 %vm314_vm0, %v556_v13  ;;  %v684_v18 = vld [vmem:[%s8848_s4] sm:$0xff] }
 0x158   :  { %6682 = vmatpush3.bf16.msra.mxu1 %v8001_v6  ;;  %6001 = vmatprep.mubr.msk.f32.mxu0 %vm289_vm1, %v275_v7  ;;  %v280_v17 = vld [vmem:[%s8846_s10 + $0x38] sm:$0xff]  ;;  %v685_v19 = vld [vmem:[%s8848_s4 + $0x8] sm:$0xff]  ;;  %v688_v23 = vld [vmem:[%s8849_s1] sm:$0xff] }
 0x159   :  { %6683 = vmatprep.subr.bf16.mxu1 %v7618_v8  ;;  %6692 = vmatprep.subr.bf16.mxu0 %v7618_v8  ;;  %v8065_v22 = vpack.c.bf16 %v685_v19, %v684_v18  ;;  %v689_v24 = vld [vmem:[%s8849_s1 + $0x8] sm:$0xff]  ;;  %v686_v25 = vld [vmem:[%s8848_s4 + $0x10] sm:$0xff]  ;;  %v687_v26 = vld [vmem:[%s8848_s4 + $0x18] sm:$0xff] }
 0x15a   :  { %6016 = vmatmul.mubr.msk.f32.gmra.mrb[2].mxu1 %vm289_vm1, %v276_v11  ;;  %6002 = vmatmul.mubr.msk.f32.gmra.mrb[2].mxu0 %vm289_vm1, %v276_v11  ;;  %v8083_v27 = vpack.c.bf16 %v689_v24, %v688_v23  ;;  %v8086_v28 = vpack.c.bf16 %v687_v26, %v686_v25  ;;  %v690_v29 = vld [vmem:[%s8849_s1 + $0x10] sm:$0xff]  ;;  %v691_v30 = vld [vmem:[%s8849_s1 + $0x18] sm:$0xff] }
 0x15b   :  { %6018 = vmatprep.mubr.msk.f32.mxu1 %vm289_vm1, %v277_v14  ;;  %6004 = vmatprep.mubr.msk.f32.mxu0 %vm289_vm1, %v277_v14  ;;  %v8103_v31 = vpack.c.bf16 %v691_v30, %v690_v29 }
 0x15c   :  { %6685 = vmatpush3.bf16.msra.mxu1 %v8021_v12 }
 0x15d   :  { %6686 = vmatprep.subr.bf16.mxu1 %v7618_v8 }
 0x15e   :  { %6019 = vmatmul.mubr.msk.f32.gmra.mrb[4].mxu1 %vm289_vm1, %v278_v15  ;;  %6005 = vmatmul.mubr.msk.f32.gmra.mrb[4].mxu0 %vm289_vm1, %v278_v15 }
 0x15f   :  { %6021 = vmatprep.mubr.msk.f32.mxu1 %vm289_vm1, %v279_v16  ;;  %6007 = vmatprep.mubr.msk.f32.mxu0 %vm289_vm1, %v279_v16 }
 0x162   :  { %6022 = vmatmul.mubr.msk.f32.gmra.mrb[6].mxu1 %vm289_vm1, %v280_v17  ;;  %6008 = vmatmul.mubr.msk.f32.gmra.mrb[6].mxu0 %vm289_vm1, %v280_v17 }
 0x163   :  { %6046 = vmatprep.mubr.msk.f32.mxu1 %vm7619_vm2, %v7620_v20  ;;  %6026 = vmatprep.mubr.msk.f32.mxu0 %vm289_vm1, %v273_v1 }
 0x166   :  { %6047 = vmatmul.mubr.msk.f32.vlgmr.msra.gmra.mrb[8].mxu1 %vm423_vm3, %v8063_v21  ;;  %6027 = vmatmul.mubr.msk.f32.vlgmr.msra.gmra.mrb[8].mxu0 %vm289_vm1, %v7990_v2 }
 0x167   :  { %6688 = vmatpush3.bf16.msra.mxu1 %v8065_v22  ;;  %6057 = vmatprep.mubr.msk.f32.mxu1 %vm7619_vm2, %v7620_v20 }
 0x168   :  { %6689 = vmatprep.subr.bf16.mxu1 %v7618_v8  ;;  %6694 = vmatpush3.bf16.msra.mxu0 %v8083_v27 }
 0x169   :  { %6029 = vmatprep.mubr.msk.f32.mxu0 %vm289_vm1, %v275_v7  ;;  %6695 = vmatprep.subr.bf16.mxu0 %v7618_v8  ;;  %v5506_v7 = vld [vmem:[#allocation17] ss:$0 sm:$0xff] }
 0x16a   :  { %6030 = vmatmul.mubr.msk.f32.gmra.mrb[10].mxu0 %vm289_vm1, %v276_v11 }
 0x16b   :  { %6691 = vmatpush3.bf16.msra.mxu1 %v8086_v28  ;;  %6032 = vmatprep.mubr.msk.f32.mxu0 %vm289_vm1, %v277_v14 }
 0x16c   :  { %6698 = vmatprep.subr.bf16.mxu1 %v7618_v8  ;;  %6697 = vmatpush3.bf16.msra.mxu0 %v8103_v31 }
 0x16d   :  { %6704 = vmatprep.subr.bf16.mxu0 %v7618_v8 }
 0x16e   :  { %6058 = vmatmul.mubr.msk.f32.vlgmr.msra.gmra.mrb[10].mxu1 %vm423_vm3, %v8063_v21  ;;  %6033 = vmatmul.mubr.msk.f32.gmra.mrb[12].mxu0 %vm289_vm1, %v278_v15 }
 0x16f   :  { %6700 = vmatpush3.bf16.msra.mxu1 %v8001_v6  ;;  %6079 = vmatprep.mubr.msk.f32.mxu1 %vm7619_vm2, %v7620_v20 }
 0x170   :  { %6701 = vmatprep.subr.bf16.mxu1 %v7618_v8  ;;  %6035 = vmatprep.mubr.msk.f32.mxu0 %vm289_vm1, %v279_v16 }
 0x172   :  { %6036 = vmatmul.mubr.msk.f32.gmra.mrb[14].mxu0 %vm289_vm1, %v280_v17 }
 0x173   :  { %6703 = vmatpush3.bf16.msra.mxu1 %v8021_v12  ;;  %6068 = vmatprep.mubr.msk.f32.mxu0 %vm7619_vm2, %v7620_v20 }
 0x174   :  { %6710 = vmatprep.subr.bf16.mxu1 %v7618_v8 }
 0x176   :  { %6069 = vmatmul.mubr.msk.f32.vlgmr.msra.gmra.mrb[16].mxu0 %vm423_vm3, %v8063_v21 }
 0x177   :  { %6706 = vmatpush3.bf16.msra.mxu0 %v8065_v22  ;;  %6090 = vmatprep.mubr.msk.f32.mxu0 %vm7619_vm2, %v7620_v20 }
 0x178   :  { %6707 = vmatprep.subr.bf16.mxu0 %v7618_v8 }
 0x17b   :  { %6709 = vmatpush3.bf16.msra.mxu0 %v8086_v28 }
 0x17c   :  { %6716 = vmatprep.subr.bf16.mxu0 %v7618_v8 }
 0x229   :  { %v6014_v33 = vpop.f32.mrb[0].mxu1  ;;  %v6000_v38 = vpop.f32.mrb[0].mxu0 }
 0x22a   :  { %v515_v34 = vadd.f32 %v6014_v33, %v5496_v32  ;;  %v509_v35 = vpop.f32.mrb[1].mxu1  ;;  %v390_v40 = vadd.f32 %v6000_v38, %v5486_v36  ;;  %v384_v41 = vpop.f32.mrb[1].mxu0 }
 0x22b   :  { %v510_v37 = vadd.f32 %v5496_v32, %v509_v35  ;;  %v385_v44 = vadd.f32 %v5486_v36, %v384_v41 }
 0x22c   :  { %549 = vst.msk [vmem:[#allocation3 + $0x8] sm:$0xff] %vm423_vm3, %v515_v34  ;;  %425 = vst.msk [vmem:[#allocation2 + $0x8] sm:$0xff] %vm423_vm3, %v390_v40 }
 0x22d   :  { %548 = vst.msk [vmem:[#allocation3] sm:$0xff] %vm423_vm3, %v510_v37  ;;  %v6017_v39 = vpop.f32.mrb[2].mxu1  ;;  %424 = vst.msk [vmem:[#allocation2] sm:$0xff] %vm423_vm3, %v385_v44  ;;  %v6003_v46 = vpop.f32.mrb[2].mxu0 }
 0x22e   :  { %v525_v42 = vadd.f32 %v6017_v39, %v5496_v32  ;;  %v519_v43 = vpop.f32.mrb[3].mxu1  ;;  %v400_v48 = vadd.f32 %v6003_v46, %v5486_v36  ;;  %v394_v49 = vpop.f32.mrb[3].mxu0 }
 0x22f   :  { %v520_v45 = vadd.f32 %v5496_v32, %v519_v43  ;;  %v395_v52 = vadd.f32 %v5486_v36, %v394_v49 }
 0x230   :  { %551 = vst.msk [vmem:[#allocation3 + $0x18] sm:$0xff] %vm423_vm3, %v525_v42  ;;  %427 = vst.msk [vmem:[#allocation2 + $0x18] sm:$0xff] %vm423_vm3, %v400_v48  ;;  %v8155_v42 = vld [vmem:[#allocation18] ss:$0 sm:$0xff] }
 0x231   :  { %550 = vst.msk [vmem:[#allocation3 + $0x10] sm:$0xff] %vm423_vm3, %v520_v45  ;;  %v6020_v47 = vpop.f32.mrb[4].mxu1  ;;  %426 = vst.msk [vmem:[#allocation2 + $0x10] sm:$0xff] %vm423_vm3, %v395_v52  ;;  %v6006_v54 = vpop.f32.mrb[4].mxu0 }
 0x232   :  { %v535_v50 = vadd.f32 %v6020_v47, %v5496_v32  ;;  %v529_v51 = vpop.f32.mrb[5].mxu1  ;;  %v410_v56 = vadd.f32 %v6006_v54, %v5486_v36  ;;  %v404_v57 = vpop.f32.mrb[5].mxu0 }
 0x233   :  { %v530_v53 = vadd.f32 %v5496_v32, %v529_v51  ;;  %v405_v60 = vadd.f32 %v5486_v36, %v404_v57 }
 0x234   :  { %553 = vst.msk [vmem:[#allocation3 + $0x28] sm:$0xff] %vm423_vm3, %v535_v50  ;;  %v694_v62 = vld [vmem:[#allocation2] sm:$0xff]  ;;  %429 = vst.msk [vmem:[#allocation2 + $0x28] sm:$0xff] %vm423_vm3, %v410_v56 }
 0x235   :  { %552 = vst.msk [vmem:[#allocation3 + $0x20] sm:$0xff] %vm423_vm3, %v530_v53  ;;  %v6023_v55 = vpop.f32.mrb[6].mxu1  ;;  %428 = vst.msk [vmem:[#allocation2 + $0x20] sm:$0xff] %vm423_vm3, %v405_v60  ;;  %v6009_v63 = vpop.f32.mrb[6].mxu0  ;;  %v695_v16 = vld [vmem:[#allocation3] sm:$0xff] }
 0x236   :  { %v545_v58 = vadd.f32 %v6023_v55, %v5496_v32  ;;  %v539_v59 = vpop.f32.mrb[7].mxu1  ;;  %v420_v1 = vadd.f32 %v6009_v63, %v5486_v36  ;;  %v414_v2 = vpop.f32.mrb[7].mxu0 }
 0x237   :  { %v540_v61 = vadd.f32 %v5496_v32, %v539_v59  ;;  %v415_v5 = vadd.f32 %v5486_v36, %v414_v2 }
 0x238   :  { %555 = vst.msk [vmem:[#allocation3 + $0x38] sm:$0xff] %vm423_vm3, %v545_v58  ;;  %431 = vst.msk [vmem:[#allocation2 + $0x38] sm:$0xff] %vm423_vm3, %v420_v1 }
 0x239   :  { %554 = vst.msk [vmem:[#allocation3 + $0x30] sm:$0xff] %vm423_vm3, %v540_v61  ;;  %v766_v0 = vpop.f32.mrb[8].mxu1  ;;  %430 = vst.msk [vmem:[#allocation2 + $0x30] sm:$0xff] %vm423_vm3, %v415_v5  ;;  %v6028_v10 = vpop.f32.mrb[8].mxu0 }
 0x23a   :  { %v770_v3 = vadd.f32 %v766_v0, %v694_v62  ;;  %v6048_v4 = vpop.f32.mrb[9].mxu1  ;;  %v639_v11 = vadd.f32 %v6028_v10, %v5506_v7  ;;  %v633_v13 = vpop.f32.mrb[9].mxu0  ;;  %v941_v62 = vld [vmem:[#allocation3 + $0x8] sm:$0xff] }
 0x23b   :  { %v634_v14 = vadd.f32 %v5506_v7, %v633_v13 }
 0x23c   :  { %v5517_v9 = vmul.f32 -1.442695, %v770_v3  ;;  %673 = vst.msk [vmem:[#allocation4 + $0x8] sm:$0xff] %vm423_vm3, %v639_v11 }
 0x23d   :  { %672 = vst.msk [vmem:[#allocation4] sm:$0xff] %vm423_vm3, %v634_v14  ;;  %v6031_v15 = vpop.f32.mrb[10].mxu0 }
 0x23e   :  { %7039 = vpow2.f32 %v5517_v9  ;;  %v649_v18 = vadd.f32 %v6031_v15, %v5506_v7  ;;  %v643_v19 = vpop.f32.mrb[11].mxu0 }
 0x23f   :  { %v644_v25 = vadd.f32 %v5506_v7, %v643_v19 }
 0x240   :  { %675 = vst.msk [vmem:[#allocation4 + $0x18] sm:$0xff] %vm423_vm3, %v649_v18 }
 0x241   :  { %v843_v17 = vpop.f32.mrb[10].mxu1  ;;  %674 = vst.msk [vmem:[#allocation4 + $0x10] sm:$0xff] %vm423_vm3, %v644_v25  ;;  %v6034_v29 = vpop.f32.mrb[12].mxu0 }
 0x242   :  { %v847_v23 = vadd.f32 %v843_v17, %v695_v16  ;;  %v6059_v24 = vpop.f32.mrb[11].mxu1  ;;  %v659_v30 = vadd.f32 %v6034_v29, %v5506_v7  ;;  %v653_v32 = vpop.f32.mrb[13].mxu0 }
 0x243   :  { %v654_v33 = vadd.f32 %v5506_v7, %v653_v32  ;;  %v943_v13 = vld [vmem:[#allocation4 + $0x8] sm:$0xff]  ;;  %v1181_v24 = vld [vmem:[#allocation2 + $0x10] sm:$0xff] }
 0x244   :  { %v5519_v26 = vmul.f32 -1.442695, %v847_v23  ;;  %677 = vst.msk [vmem:[#allocation4 + $0x28] sm:$0xff] %vm423_vm3, %v659_v30  ;;  %v696_v48 = vld [vmem:[#allocation4] sm:$0xff] }
 0x245   :  { %676 = vst.msk [vmem:[#allocation4 + $0x20] sm:$0xff] %vm423_vm3, %v654_v33  ;;  %v6037_v35 = vpop.f32.mrb[14].mxu0 }
 0x246   :  { %7041 = vpow2.f32 %v5519_v26  ;;  %v669_v37 = vadd.f32 %v6037_v35, %v5506_v7  ;;  %v663_v38 = vpop.f32.mrb[15].mxu0 }
 0x247   :  { %v664_v39 = vadd.f32 %v5506_v7, %v663_v38 }
 0x248   :  { %v7040_v34 = vpop.eup %7039  ;;  %679 = vst.msk [vmem:[#allocation4 + $0x38] sm:$0xff] %vm423_vm3, %v669_v37 }
 0x249   :  { %v774_v36 = vadd.f32 1.0, %v7040_v34  ;;  %678 = vst.msk [vmem:[#allocation4 + $0x30] sm:$0xff] %vm423_vm3, %v664_v39  ;;  %v926_v40 = vpop.f32.mrb[16].mxu0  ;;  %v1183_v34 = vld [vmem:[#allocation3 + $0x10] sm:$0xff] }
 0x24a   :  { %v6070_v41 = vpop.f32.mrb[17].mxu0  ;;  %v927_v45 = vadd.f32 %v8155_v42, %v926_v40 }
 0x24b   :  { %7043 = vrcp.f32 %v774_v36 }
 0x250   :  { %v7042_v43 = vpop.eup %7041 }
 0x251   :  { %v851_v44 = vadd.f32 1.0, %v7042_v43 }
 0x253   :  { %7045 = vrcp.f32 %v851_v44 }
 0x255   :  { %v7044_v46 = vpop.eup %7043 }
 0x256   :  { %v930_v47 = vmul.f32 %v7044_v46, %v927_v45 }
 0x258   :  { %v931_v49 = vadd.f32 %v930_v47, %v696_v48  ;;  %v1185_v47 = vld [vmem:[#allocation4 + $0x10] sm:$0xff] }
 0x25a   :  { %7047 = vtanh.f32 %v931_v49 }
 0x25d   :  { %v7046_v50 = vpop.eup %7045 }
 0x25e   :  { %v933_v51 = vsub.f32 1.0, %v7046_v50  ;;  %v935_v54 = vmul.f32 %v7046_v50, %v8063_v21  ;;  %v939_v21 = vld [vmem:[#allocation2 + $0x8] sm:$0xff] }
 0x264   :  { %v7048_v52 = vpop.eup %7047 }
 0x265   :  { %v934_v53 = vmul.f32 %v7048_v52, %v933_v51 }
 0x267   :  { %v936_v55 = vadd.f32 %v935_v54, %v934_v53 }
 0x269   :  { %937 = vst.msk [vmem:[#allocation5] sm:$0xff] %vm423_vm3, %v936_v55  ;;  %6080 = vmatmul.mubr.msk.f32.vlgmr.msra.gmra.mrb[12].mxu1 %vm423_vm3, %v936_v55  ;;  %6091 = vmatmul.mubr.msk.f32.vlgmr.msra.gmra.mrb[18].mxu0 %vm423_vm3, %v936_v55 }
 0x26a   :  { %6712 = vmatpush3.bf16.msra.mxu1 %v8083_v27  ;;  %6101 = vmatprep.mubr.msk.f32.mxu1 %vm7619_vm2, %v7620_v20 }
 0x26b   :  { %6713 = vmatprep.subr.bf16.mxu1 %v7618_v8  ;;  %6718 = vmatpush3.bf16.msra.mxu0 %v8001_v6 }
 0x26c   :  { %6719 = vmatprep.subr.bf16.mxu0 %v7618_v8  ;;  %6112 = vmatprep.mubr.msk.f32.mxu0 %vm7619_vm2, %v7620_v20 }
 0x26e   :  { %6715 = vmatpush3.bf16.msra.mxu1 %v8103_v31 }
 0x26f   :  { %6722 = vmatprep.subr.bf16.mxu1 %v7618_v8  ;;  %6721 = vmatpush3.bf16.msra.mxu0 %v8021_v12 }
 0x270   :  { %6728 = vmatprep.subr.bf16.mxu0 %v7618_v8 }
 0x271   :  { %6102 = vmatmul.mubr.msk.f32.vlgmr.msra.gmra.mrb[14].mxu1 %vm423_vm3, %v936_v55 }
 0x272   :  { %6724 = vmatpush3.bf16.msra.mxu1 %v8065_v22  ;;  %6123 = vmatprep.mubr.msk.f32.mxu1 %vm7619_vm2, %v7620_v20 }
 0x273   :  { %6725 = vmatprep.subr.bf16.mxu1 %v7618_v8 }
 0x276   :  { %6727 = vmatpush3.bf16.msra.mxu1 %v8086_v28 }
 0x277   :  { %6734 = vmatprep.subr.bf16.mxu1 %v7618_v8 }
 0x33c   :  { %v1013_v56 = vpop.f32.mrb[12].mxu1  ;;  %v1090_v57 = vpop.f32.mrb[18].mxu0 }
 0x33d   :  { %v1017_v58 = vadd.f32 %v1013_v56, %v939_v21  ;;  %v6081_v59 = vpop.f32.mrb[13].mxu1  ;;  %v6092_v60 = vpop.f32.mrb[19].mxu0  ;;  %v1094_v63 = vadd.f32 %v1090_v57, %v941_v62 }
 0x33f   :  { %v5523_v61 = vmul.f32 -1.442695, %v1017_v58  ;;  %v5525_v0 = vmul.f32 -1.442695, %v1094_v63 }
 0x341   :  { %7049 = vpow2.f32 %v5523_v61  ;;  %v1425_v61 = vld [vmem:[#allocation3 + $0x18] sm:$0xff] }
 0x342   :  { %7051 = vpow2.f32 %v5525_v0 }
 0x344   :  { %v1167_v1 = vpop.f32.mrb[14].mxu1 }
 0x345   :  { %v6103_v2 = vpop.f32.mrb[15].mxu1  ;;  %v1168_v9 = vadd.f32 %v8155_v42, %v1167_v1 }
 0x34b   :  { %v7050_v3 = vpop.eup %7049 }
 0x34c   :  { %v1021_v4 = vadd.f32 1.0, %v7050_v3  ;;  %v7052_v5 = vpop.eup %7051 }
 0x34d   :  { %v1098_v7 = vadd.f32 1.0, %v7052_v5 }
 0x34e   :  { %7053 = vrcp.f32 %v1021_v4 }
 0x34f   :  { %7055 = vrcp.f32 %v1098_v7 }
 0x358   :  { %v7054_v10 = vpop.eup %7053 }
 0x359   :  { %v1171_v11 = vmul.f32 %v7054_v10, %v1168_v9  ;;  %v7056_v15 = vpop.eup %7055 }
 0x35a   :  { %v1174_v16 = vsub.f32 1.0, %v7056_v15  ;;  %v1176_v19 = vmul.f32 %v7056_v15, %v936_v55  ;;  %v1423_v55 = vld [vmem:[#allocation2 + $0x18] sm:$0xff] }
 0x35b   :  { %v1172_v14 = vadd.f32 %v1171_v11, %v943_v13  ;;  %v1427_v11 = vld [vmem:[#allocation4 + $0x18] sm:$0xff] }
 0x35d   :  { %7057 = vtanh.f32 %v1172_v14 }
 0x367   :  { %v7058_v17 = vpop.eup %7057 }
 0x368   :  { %v1175_v18 = vmul.f32 %v7058_v17, %v1174_v16 }
 0x36a   :  { %v1177_v23 = vadd.f32 %v1176_v19, %v1175_v18 }
 0x36c   :  { %1179 = vst.msk [vmem:[#allocation5 + $0x8] sm:$0xff] %vm423_vm3, %v1177_v23  ;;  %6113 = vmatmul.mubr.msk.f32.vlgmr.msra.gmra.mrb[20].mxu0 %vm423_vm3, %v1177_v23  ;;  %6124 = vmatmul.mubr.msk.f32.vlgmr.msra.gmra.mrb[16].mxu1 %vm423_vm3, %v1177_v23 }
 0x36d   :  { %6730 = vmatpush3.bf16.msra.mxu0 %v8083_v27  ;;  %6134 = vmatprep.mubr.msk.f32.mxu0 %vm7619_vm2, %v7620_v20 }
 0x36e   :  { %6731 = vmatprep.subr.bf16.mxu0 %v7618_v8  ;;  %6736 = vmatpush3.bf16.msra.mxu1 %v8001_v6 }
 0x36f   :  { %6737 = vmatprep.subr.bf16.mxu1 %v7618_v8  ;;  %6145 = vmatprep.mubr.msk.f32.mxu1 %vm7619_vm2, %v7620_v20 }
 0x371   :  { %6733 = vmatpush3.bf16.msra.mxu0 %v8103_v31 }
 0x372   :  { %6740 = vmatprep.subr.bf16.mxu0 %v7618_v8  ;;  %6739 = vmatpush3.bf16.msra.mxu1 %v8021_v12 }
 0x373   :  { %6746 = vmatprep.subr.bf16.mxu1 %v7618_v8 }
 0x374   :  { %6135 = vmatmul.mubr.msk.f32.vlgmr.msra.gmra.mrb[22].mxu0 %vm423_vm3, %v1177_v23 }
 0x375   :  { %6742 = vmatpush3.bf16.msra.mxu0 %v8065_v22  ;;  %6156 = vmatprep.mubr.msk.f32.mxu0 %vm7619_vm2, %v7620_v20 }
 0x376   :  { %6743 = vmatprep.subr.bf16.mxu0 %v7618_v8 }
 0x379   :  { %6745 = vmatpush3.bf16.msra.mxu0 %v8086_v28 }
 0x37a   :  { %6752 = vmatprep.subr.bf16.mxu0 %v7618_v8 }
 0x43f   :  { %v1255_v25 = vpop.f32.mrb[20].mxu0  ;;  %v1332_v26 = vpop.f32.mrb[16].mxu1 }
 0x440   :  { %v1259_v29 = vadd.f32 %v1255_v25, %v1181_v24  ;;  %v6114_v30 = vpop.f32.mrb[21].mxu0  ;;  %v6125_v32 = vpop.f32.mrb[17].mxu1  ;;  %v1336_v35 = vadd.f32 %v1332_v26, %v1183_v34 }
 0x442   :  { %v5528_v33 = vmul.f32 -1.442695, %v1259_v29  ;;  %v5530_v36 = vmul.f32 -1.442695, %v1336_v35 }
 0x444   :  { %7059 = vpow2.f32 %v5528_v33  ;;  %v1667_v33 = vld [vmem:[#allocation3 + $0x20] sm:$0xff] }
 0x445   :  { %7061 = vpow2.f32 %v5530_v36 }
 0x447   :  { %v1409_v37 = vpop.f32.mrb[22].mxu0 }
 0x448   :  { %v6136_v38 = vpop.f32.mrb[23].mxu0  ;;  %v1410_v44 = vadd.f32 %v8155_v42, %v1409_v37 }
 0x44e   :  { %v7060_v39 = vpop.eup %7059 }
 0x44f   :  { %v1263_v40 = vadd.f32 1.0, %v7060_v39  ;;  %v7062_v41 = vpop.eup %7061 }
 0x450   :  { %v1340_v43 = vadd.f32 1.0, %v7062_v41 }
 0x451   :  { %7063 = vrcp.f32 %v1263_v40 }
 0x452   :  { %7065 = vrcp.f32 %v1340_v43 }
 0x45b   :  { %v7064_v45 = vpop.eup %7063 }
 0x45c   :  { %v1413_v46 = vmul.f32 %v7064_v45, %v1410_v44  ;;  %v7066_v49 = vpop.eup %7065 }
 0x45d   :  { %v1416_v50 = vsub.f32 1.0, %v7066_v49  ;;  %v1418_v53 = vmul.f32 %v7066_v49, %v1177_v23  ;;  %v1665_v23 = vld [vmem:[#allocation2 + $0x20] sm:$0xff] }
 0x45e   :  { %v1414_v48 = vadd.f32 %v1413_v46, %v1185_v47  ;;  %v1669_v46 = vld [vmem:[#allocation4 + $0x20] sm:$0xff] }
 0x460   :  { %7067 = vtanh.f32 %v1414_v48 }
 0x46a   :  { %v7068_v51 = vpop.eup %7067 }
 0x46b   :  { %v1417_v52 = vmul.f32 %v7068_v51, %v1416_v50 }
 0x46d   :  { %v1419_v54 = vadd.f32 %v1418_v53, %v1417_v52 }
 0x46f   :  { %1421 = vst.msk [vmem:[#allocation5 + $0x10] sm:$0xff] %vm423_vm3, %v1419_v54  ;;  %6146 = vmatmul.mubr.msk.f32.vlgmr.msra.gmra.mrb[18].mxu1 %vm423_vm3, %v1419_v54  ;;  %6157 = vmatmul.mubr.msk.f32.vlgmr.msra.gmra.mrb[24].mxu0 %vm423_vm3, %v1419_v54 }
 0x470   :  { %6748 = vmatpush3.bf16.msra.mxu1 %v8083_v27  ;;  %6167 = vmatprep.mubr.msk.f32.mxu1 %vm7619_vm2, %v7620_v20 }
 0x471   :  { %6749 = vmatprep.subr.bf16.mxu1 %v7618_v8  ;;  %6754 = vmatpush3.bf16.msra.mxu0 %v8001_v6 }
 0x472   :  { %6755 = vmatprep.subr.bf16.mxu0 %v7618_v8  ;;  %6178 = vmatprep.mubr.msk.f32.mxu0 %vm7619_vm2, %v7620_v20 }
 0x474   :  { %6751 = vmatpush3.bf16.msra.mxu1 %v8103_v31 }
 0x475   :  { %6758 = vmatprep.subr.bf16.mxu1 %v7618_v8  ;;  %6757 = vmatpush3.bf16.msra.mxu0 %v8021_v12 }
 0x476   :  { %6764 = vmatprep.subr.bf16.mxu0 %v7618_v8 }
 0x477   :  { %6168 = vmatmul.mubr.msk.f32.vlgmr.msra.gmra.mrb[20].mxu1 %vm423_vm3, %v1419_v54 }
 0x478   :  { %6760 = vmatpush3.bf16.msra.mxu1 %v8065_v22  ;;  %6189 = vmatprep.mubr.msk.f32.mxu1 %vm7619_vm2, %v7620_v20 }
 0x479   :  { %6761 = vmatprep.subr.bf16.mxu1 %v7618_v8 }
 0x47c   :  { %6763 = vmatpush3.bf16.msra.mxu1 %v8086_v28 }
 0x47d   :  { %6770 = vmatprep.subr.bf16.mxu1 %v7618_v8 }
 0x542   :  { %v1497_v21 = vpop.f32.mrb[18].mxu1  ;;  %v1574_v56 = vpop.f32.mrb[24].mxu0 }
 0x543   :  { %v1501_v57 = vadd.f32 %v1497_v21, %v1423_v55  ;;  %v6147_v58 = vpop.f32.mrb[19].mxu1  ;;  %v6158_v59 = vpop.f32.mrb[25].mxu0  ;;  %v1578_v62 = vadd.f32 %v1574_v56, %v1425_v61 }
 0x545   :  { %v5533_v60 = vmul.f32 -1.442695, %v1501_v57  ;;  %v5535_v63 = vmul.f32 -1.442695, %v1578_v62 }
 0x547   :  { %7069 = vpow2.f32 %v5533_v60  ;;  %v1909_v60 = vld [vmem:[#allocation3 + $0x28] sm:$0xff] }
 0x548   :  { %7071 = vpow2.f32 %v5535_v63 }
 0x54a   :  { %v1651_v0 = vpop.f32.mrb[20].mxu1 }
 0x54b   :  { %v6169_v1 = vpop.f32.mrb[21].mxu1  ;;  %v1652_v7 = vadd.f32 %v8155_v42, %v1651_v0 }
 0x551   :  { %v7070_v2 = vpop.eup %7069 }
 0x552   :  { %v1505_v3 = vadd.f32 1.0, %v7070_v2  ;;  %v7072_v4 = vpop.eup %7071 }
 0x553   :  { %v1582_v5 = vadd.f32 1.0, %v7072_v4 }
 0x554   :  { %7073 = vrcp.f32 %v1505_v3 }
 0x555   :  { %7075 = vrcp.f32 %v1582_v5 }
 0x55e   :  { %v7074_v9 = vpop.eup %7073 }
 0x55f   :  { %v1655_v10 = vmul.f32 %v7074_v9, %v1652_v7  ;;  %v7076_v14 = vpop.eup %7075 }
 0x560   :  { %v1658_v15 = vsub.f32 1.0, %v7076_v14  ;;  %v1660_v18 = vmul.f32 %v7076_v14, %v1419_v54  ;;  %v1907_v54 = vld [vmem:[#allocation2 + $0x28] sm:$0xff] }
 0x561   :  { %v1656_v13 = vadd.f32 %v1655_v10, %v1427_v11  ;;  %v1911_v10 = vld [vmem:[#allocation4 + $0x28] sm:$0xff] }
 0x563   :  { %7077 = vtanh.f32 %v1656_v13 }
 0x56d   :  { %v7078_v16 = vpop.eup %7077 }
 0x56e   :  { %v1659_v17 = vmul.f32 %v7078_v16, %v1658_v15 }
 0x570   :  { %v1661_v19 = vadd.f32 %v1660_v18, %v1659_v17 }
 0x572   :  { %1663 = vst.msk [vmem:[#allocation5 + $0x18] sm:$0xff] %vm423_vm3, %v1661_v19  ;;  %6179 = vmatmul.mubr.msk.f32.vlgmr.msra.gmra.mrb[26].mxu0 %vm423_vm3, %v1661_v19  ;;  %6190 = vmatmul.mubr.msk.f32.vlgmr.msra.gmra.mrb[22].mxu1 %vm423_vm3, %v1661_v19 }
 0x573   :  { %6766 = vmatpush3.bf16.msra.mxu0 %v8083_v27  ;;  %6200 = vmatprep.mubr.msk.f32.mxu0 %vm7619_vm2, %v7620_v20 }
 0x574   :  { %6767 = vmatprep.subr.bf16.mxu0 %v7618_v8  ;;  %6772 = vmatpush3.bf16.msra.mxu1 %v8001_v6 }
 0x575   :  { %6773 = vmatprep.subr.bf16.mxu1 %v7618_v8  ;;  %6211 = vmatprep.mubr.msk.f32.mxu1 %vm7619_vm2, %v7620_v20 }
 0x577   :  { %6769 = vmatpush3.bf16.msra.mxu0 %v8103_v31 }
 0x578   :  { %6776 = vmatprep.subr.bf16.mxu0 %v7618_v8  ;;  %6775 = vmatpush3.bf16.msra.mxu1 %v8021_v12 }
 0x579   :  { %6782 = vmatprep.subr.bf16.mxu1 %v7618_v8 }
 0x57a   :  { %6201 = vmatmul.mubr.msk.f32.vlgmr.msra.gmra.mrb[28].mxu0 %vm423_vm3, %v1661_v19 }
 0x57b   :  { %6778 = vmatpush3.bf16.msra.mxu0 %v8065_v22  ;;  %6222 = vmatprep.mubr.msk.f32.mxu0 %vm7619_vm2, %v7620_v20 }
 0x57c   :  { %6779 = vmatprep.subr.bf16.mxu0 %v7618_v8 }
 0x57f   :  { %6781 = vmatpush3.bf16.msra.mxu0 %v8086_v28 }
 0x580   :  { %6788 = vmatprep.subr.bf16.mxu0 %v7618_v8 }
 0x645   :  { %v1739_v24 = vpop.f32.mrb[26].mxu0  ;;  %v1816_v25 = vpop.f32.mrb[22].mxu1 }
 0x646   :  { %v1743_v26 = vadd.f32 %v1739_v24, %v1665_v23  ;;  %v6180_v29 = vpop.f32.mrb[27].mxu0  ;;  %v6191_v30 = vpop.f32.mrb[23].mxu1  ;;  %v1820_v34 = vadd.f32 %v1816_v25, %v1667_v33  ;;  %v2149_v23 = vld [vmem:[#allocation2 + $0x30] sm:$0xff] }
 0x648   :  { %v5538_v32 = vmul.f32 -1.442695, %v1743_v26  ;;  %v5540_v35 = vmul.f32 -1.442695, %v1820_v34 }
 0x64a   :  { %7079 = vpow2.f32 %v5538_v32  ;;  %v2151_v32 = vld [vmem:[#allocation3 + $0x30] sm:$0xff] }
 0x64b   :  { %7081 = vpow2.f32 %v5540_v35 }
 0x64d   :  { %v1893_v36 = vpop.f32.mrb[28].mxu0 }
 0x64e   :  { %v6202_v37 = vpop.f32.mrb[29].mxu0  ;;  %v1894_v43 = vadd.f32 %v8155_v42, %v1893_v36 }
 0x654   :  { %v7080_v38 = vpop.eup %7079 }
 0x655   :  { %v1747_v39 = vadd.f32 1.0, %v7080_v38  ;;  %v7082_v40 = vpop.eup %7081 }
 0x656   :  { %v1824_v41 = vadd.f32 1.0, %v7082_v40 }
 0x657   :  { %7083 = vrcp.f32 %v1747_v39 }
 0x658   :  { %7085 = vrcp.f32 %v1824_v41 }
 0x661   :  { %v7084_v44 = vpop.eup %7083 }
 0x662   :  { %v1897_v45 = vmul.f32 %v7084_v44, %v1894_v43  ;;  %v7086_v48 = vpop.eup %7085  ;;  %v2153_v44 = vld [vmem:[#allocation4 + $0x30] sm:$0xff] }
 0x663   :  { %v1900_v49 = vsub.f32 1.0, %v7086_v48  ;;  %v1902_v52 = vmul.f32 %v7086_v48, %v1661_v19 }
 0x664   :  { %v1898_v47 = vadd.f32 %v1897_v45, %v1669_v46 }
 0x666   :  { %7087 = vtanh.f32 %v1898_v47 }
 0x670   :  { %v7088_v50 = vpop.eup %7087 }
 0x671   :  { %v1901_v51 = vmul.f32 %v7088_v50, %v1900_v49 }
 0x673   :  { %v1903_v53 = vadd.f32 %v1902_v52, %v1901_v51  ;;  %v2642_v51 = vld [vmem:[%s8794_s13 + $0x10] sm:$0xff]  ;;  %v2643_v52 = vld [vmem:[%s8794_s13 + $0x18] sm:$0xff] }
 0x675   :  { %1905 = vst.msk [vmem:[#allocation5 + $0x20] sm:$0xff] %vm423_vm3, %v1903_v53  ;;  %6212 = vmatmul.mubr.msk.f32.vlgmr.msra.gmra.mrb[24].mxu1 %vm423_vm3, %v1903_v53  ;;  %6223 = vmatmul.mubr.msk.f32.vlgmr.msra.gmra.mrb[30].mxu0 %vm423_vm3, %v1903_v53 }
 0x676   :  { %6784 = vmatpush3.bf16.msra.mxu1 %v8083_v27  ;;  %6233 = vmatprep.mubr.msk.f32.mxu1 %vm7619_vm2, %v7620_v20 }
 0x677   :  { %6785 = vmatprep.subr.bf16.mxu1 %v7618_v8  ;;  %6790 = vmatpush3.bf16.msra.mxu0 %v8001_v6 }
 0x678   :  { %6791 = vmatprep.subr.bf16.mxu0 %v7618_v8  ;;  %6244 = vmatprep.mubr.msk.f32.mxu0 %vm7619_vm2, %v7620_v20 }
 0x67a   :  { %6787 = vmatpush3.bf16.msra.mxu1 %v8103_v31 }
 0x67b   :  { %6794 = vmatprep.subr.bf16.mxu1 %v7618_v8  ;;  %6793 = vmatpush3.bf16.msra.mxu0 %v8021_v12 }
 0x67c   :  { %6800 = vmatprep.subr.bf16.mxu0 %v7618_v8 }
 0x67d   :  { %6234 = vmatmul.mubr.msk.f32.vlgmr.msra.gmra.mrb[26].mxu1 %vm423_vm3, %v1903_v53 }
 0x67e   :  { %6796 = vmatpush3.bf16.msra.mxu1 %v8065_v22  ;;  %6255 = vmatprep.mubr.msk.f32.mxu1 %vm7619_vm2, %v7620_v20 }
 0x67f   :  { %6797 = vmatprep.subr.bf16.mxu1 %v7618_v8 }
 0x682   :  { %6799 = vmatpush3.bf16.msra.mxu1 %v8086_v28 }
 0x683   :  { %6806 = vmatprep.subr.bf16.mxu1 %v7618_v8 }
 0x748   :  { %v1981_v55 = vpop.f32.mrb[24].mxu1  ;;  %v2058_v21 = vpop.f32.mrb[30].mxu0 }
 0x749   :  { %v1985_v56 = vadd.f32 %v1981_v55, %v1907_v54  ;;  %v6213_v57 = vpop.f32.mrb[25].mxu1  ;;  %v6224_v58 = vpop.f32.mrb[31].mxu0  ;;  %v2062_v61 = vadd.f32 %v2058_v21, %v1909_v60  ;;  %v6828_v54 = vpack.c.bf16 %v2643_v52, %v2642_v51  ;;  %v2788_v55 = vld [vmem:[%s8795_s14] sm:$0xff]  ;;  %v2789_v21 = vld [vmem:[%s8795_s14 + $0x8] sm:$0xff] }
 0x74a   :  { %v6832_v57 = vpack.c.bf16 %v2789_v21, %v2788_v55  ;;  %v2790_v58 = vld [vmem:[%s8795_s14 + $0x10] sm:$0xff]  ;;  %v8337_v60 = vld [vmem:[#allocation5 + $0x8] sm:$0xff] }
 0x74b   :  { %v5543_v59 = vmul.f32 -1.442695, %v1985_v56  ;;  %v5545_v62 = vmul.f32 -1.442695, %v2062_v61  ;;  %v8323_v56 = vld [vmem:[#allocation5] sm:$0xff]  ;;  %v8343_v61 = vld [vmem:[#allocation5 + $0x10] sm:$0xff] }
 0x74d   :  { %7089 = vpow2.f32 %v5543_v59 }
 0x74e   :  { %7091 = vpow2.f32 %v5545_v62  ;;  %v8353_v62 = vld [vmem:[#allocation5 + $0x20] sm:$0xff] }
 0x750   :  { %v2135_v63 = vpop.f32.mrb[26].mxu1 }
 0x751   :  { %v6235_v0 = vpop.f32.mrb[27].mxu1  ;;  %v2136_v5 = vadd.f32 %v8155_v42, %v2135_v63 }
 0x757   :  { %v7090_v1 = vpop.eup %7089 }
 0x758   :  { %v1989_v2 = vadd.f32 1.0, %v7090_v1  ;;  %v7092_v3 = vpop.eup %7091  ;;  %v3036_v1 = vld [vmem:[#allocation20] sm:$0xff] }
 0x759   :  { %v2066_v4 = vadd.f32 1.0, %v7092_v3  ;;  %v2912_v3 = vld [vmem:[%s8796_s15] sm:$0xff] }
 0x75a   :  { %7093 = vrcp.f32 %v1989_v2  ;;  %v3037_v2 = vld [vmem:[#allocation20 + $0x8] sm:$0xff] }
 0x75b   :  { %7095 = vrcp.f32 %v2066_v4  ;;  %v8381_v4 = vpack.c.bf16 %v3037_v2, %v3036_v1 }
 0x764   :  { %v7094_v7 = vpop.eup %7093 }
 0x765   :  { %v2139_v9 = vmul.f32 %v7094_v7, %v2136_v5  ;;  %v7096_v13 = vpop.eup %7095  ;;  %v2913_v5 = vld [vmem:[%s8796_s15 + $0x8] sm:$0xff]  ;;  %v3038_v7 = vld [vmem:[#allocation20 + $0x10] sm:$0xff] }
 0x766   :  { %v2142_v14 = vsub.f32 1.0, %v7096_v13  ;;  %v2144_v17 = vmul.f32 %v7096_v13, %v1903_v53  ;;  %v2914_v13 = vld [vmem:[%s8796_s15 + $0x10] sm:$0xff] }
 0x767   :  { %v2140_v11 = vadd.f32 %v2139_v9, %v1911_v10  ;;  %v3039_v9 = vld [vmem:[#allocation20 + $0x18] sm:$0xff]  ;;  %v6840_v10 = vpack.c.bf16 %v2913_v5, %v2912_v3 }
 0x769   :  { %7097 = vtanh.f32 %v2140_v11  ;;  %v8387_v11 = vpack.c.bf16 %v3039_v9, %v3038_v7  ;;  %v2395_v7 = vld [vmem:[#allocation4 + $0x38] sm:$0xff] }
 0x773   :  { %v7098_v15 = vpop.eup %7097 }
 0x774   :  { %v2143_v16 = vmul.f32 %v7098_v15, %v2142_v14  ;;  %v2915_v14 = vld [vmem:[%s8796_s15 + $0x18] sm:$0xff] }
 0x775   :  { %v6844_v15 = vpack.c.bf16 %v2915_v14, %v2914_v13 }
 0x776   :  { %v2145_v18 = vadd.f32 %v2144_v17, %v2143_v16  ;;  %v2391_v16 = vld [vmem:[#allocation2 + $0x38] sm:$0xff] }
 0x778   :  { %2147 = vst.msk [vmem:[#allocation5 + $0x28] sm:$0xff] %vm423_vm3, %v2145_v18  ;;  %6245 = vmatmul.mubr.msk.f32.vlgmr.msra.gmra.mrb[32].mxu0 %vm423_vm3, %v2145_v18  ;;  %6256 = vmatmul.mubr.msk.f32.vlgmr.msra.gmra.mrb[28].mxu1 %vm423_vm3, %v2145_v18 }
 0x779   :  { %6802 = vmatpush3.bf16.msra.mxu0 %v8083_v27  ;;  %6266 = vmatprep.mubr.msk.f32.mxu0 %vm7619_vm2, %v7620_v20 }
 0x77a   :  { %6803 = vmatprep.subr.bf16.mxu0 %v7618_v8  ;;  %6808 = vmatpush3.bf16.msra.mxu1 %v8001_v6  ;;  %v2640_v6 = vld [vmem:[%s8794_s13] sm:$0xff] }
 0x77b   :  { %6809 = vmatprep.subr.bf16.mxu1 %v7618_v8  ;;  %6277 = vmatprep.mubr.msk.f32.mxu1 %vm7619_vm2, %v7620_v20 }
 0x77d   :  { %6805 = vmatpush3.bf16.msra.mxu0 %v8103_v31 }
 0x77e   :  { %6812 = vmatprep.subr.bf16.mxu0 %v7618_v8  ;;  %6811 = vmatpush3.bf16.msra.mxu1 %v8021_v12  ;;  %v2641_v12 = vld [vmem:[%s8794_s13 + $0x8] sm:$0xff] }
 0x77f   :  { %6818 = vmatprep.subr.bf16.mxu1 %v7618_v8  ;;  %v6824_v19 = vpack.c.bf16 %v2641_v12, %v2640_v6  ;;  %v8358_v63 = vld [vmem:[#allocation5 + $0x28] sm:$0xff] }
 0x780   :  { %6267 = vmatmul.mubr.msk.f32.vlgmr.msra.gmra.mrb[34].mxu0 %vm423_vm3, %v2145_v18 }
 0x781   :  { %6814 = vmatpush3.bf16.msra.mxu0 %v8065_v22  ;;  %6288 = vmatprep.mubr.msk.f32.mxu0 %vm7619_vm2, %v7620_v20 }
 0x782   :  { %6815 = vmatprep.subr.bf16.mxu0 %v7618_v8 }
 0x785   :  { %6817 = vmatpush3.bf16.msra.mxu0 %v8086_v28 }
 0x786   :  { %6825 = vmatprep.subr.bf16.mxu0 %v6824_v19 }
 0x84b   :  { %v2223_v24 = vpop.f32.mrb[32].mxu0  ;;  %v2300_v22 = vpop.f32.mrb[28].mxu1 }
 0x84c   :  { %v2227_v25 = vadd.f32 %v2223_v24, %v2149_v23  ;;  %v6246_v26 = vpop.f32.mrb[33].mxu0  ;;  %v6257_v29 = vpop.f32.mrb[29].mxu1  ;;  %v2304_v33 = vadd.f32 %v2300_v22, %v2151_v32  ;;  %v2393_v24 = vld [vmem:[#allocation3 + $0x38] sm:$0xff] }
 0x84e   :  { %v5548_v30 = vmul.f32 -1.442695, %v2227_v25  ;;  %v5550_v28 = vmul.f32 -1.442695, %v2304_v33  ;;  %v8402_v25 = vld [vmem:[%s8800_s19] ss:$0 sm:$0xff] }
 0x850   :  { %7099 = vpow2.f32 %v5548_v30 }
 0x851   :  { %7101 = vpow2.f32 %v5550_v28 }
 0x853   :  { %v2377_v34 = vpop.f32.mrb[34].mxu0 }
 0x854   :  { %v6268_v35 = vpop.f32.mrb[35].mxu0  ;;  %v2378_v40 = vadd.f32 %v8155_v42, %v2377_v34 }
 0x85a   :  { %v7100_v36 = vpop.eup %7099 }
 0x85b   :  { %v2231_v37 = vadd.f32 1.0, %v7100_v36  ;;  %v7102_v38 = vpop.eup %7101 }
 0x85c   :  { %v2308_v39 = vadd.f32 1.0, %v7102_v38 }
 0x85d   :  { %7103 = vrcp.f32 %v2231_v37 }
 0x85e   :  { %7105 = vrcp.f32 %v2308_v39  ;;  %v8413_v39 = vld [vmem:[%s8801_s20] ss:$0 sm:$0xff] }
 0x867   :  { %v7104_v41 = vpop.eup %7103 }
 0x868   :  { %v2381_v43 = vmul.f32 %v7104_v41, %v2378_v40  ;;  %v7106_v46 = vpop.eup %7105 }
 0x869   :  { %v2384_v47 = vsub.f32 1.0, %v7106_v46  ;;  %v2386_v50 = vmul.f32 %v7106_v46, %v2145_v18 }
 0x86a   :  { %v2382_v45 = vadd.f32 %v2381_v43, %v2153_v44 }
 0x86c   :  { %7107 = vtanh.f32 %v2382_v45 }
 0x876   :  { %v7108_v48 = vpop.eup %7107 }
 0x877   :  { %v2385_v49 = vmul.f32 %v7108_v48, %v2384_v47 }
 0x879   :  { %v8308_v53 = vadd.f32 %v2386_v50, %v2385_v49 }
 0x87b   :  { %2389 = vst.msk [vmem:[#allocation5 + $0x30] sm:$0xff] %vm423_vm3, %v8308_v53  ;;  %6278 = vmatmul.mubr.msk.f32.vlgmr.msra.gmra.mrb[30].mxu1 %vm423_vm3, %v8308_v53  ;;  %6289 = vmatmul.mubr.msk.f32.vlgmr.msra.gmra.mrb[36].mxu0 %vm423_vm3, %v8308_v53 }
 0x87c   :  { %6820 = vmatpush3.bf16.msra.mxu1 %v8083_v27  ;;  %6827 = vmatpush3.bf16.msra.mxu0 %v6824_v19  ;;  %v2791_v27 = vld [vmem:[%s8795_s14 + $0x18] sm:$0xff] }
 0x87d   :  { %6310 = vmatprep.mubr.msk.f32.mxu0 %vm423_vm3, %v8323_v56  ;;  %6821 = vmatprep.subr.bf16.mxu1 %v7618_v8  ;;  %v6836_v59 = vpack.c.bf16 %v2791_v27, %v2790_v58 }
 0x87e   :  { %6829 = vmatprep.subr.bf16.mxu0 %v6828_v54  ;;  %6299 = vmatprep.mubr.msk.f32.mxu1 %vm7619_vm2, %v7620_v20 }
 0x880   :  { %6823 = vmatpush3.bf16.msra.mxu1 %v8103_v31  ;;  %6831 = vmatpush3.bf16.msra.mxu0 %v6828_v54  ;;  %v8349_v31 = vld [vmem:[#allocation5 + $0x18] sm:$0xff] }
 0x881   :  { %6833 = vmatprep.subr.bf16.mxu1 %v6832_v57  ;;  %6841 = vmatprep.subr.bf16.mxu0 %v6840_v10 }
 0x882   :  { %v8364_v0 = vld [vmem:[#allocation5 + $0x30] sm:$0xff] }
 0x883   :  { %6300 = vmatmul.mubr.msk.f32.vlgmr.msra.gmra.mrb[32].mxu1 %vm423_vm3, %v8308_v53  ;;  %6311 = vmatmul.mubr.msk.f32.vlgmr.msra.gmra.mrb[38].mxu0 %vm423_vm3, %v8337_v60 }
 0x884   :  { %6313 = vmatprep.mubr.msk.f32.mxu0 %vm423_vm3, %v8343_v61  ;;  %6835 = vmatpush3.bf16.msra.mxu1 %v6832_v57 }
 0x885   :  { %6330 = vmatprep.mubr.msk.f32.mxu1 %vm423_vm3, %v8323_v56  ;;  %6837 = vmatprep.subr.bf16.mxu1 %v6836_v59 }
 0x886   :  { %6843 = vmatpush3.bf16.msra.mxu0 %v6840_v10 }
 0x887   :  { %6314 = vmatmul.mubr.msk.f32.gmra.mrb[40].mxu0 %vm423_vm3, %v8349_v31  ;;  %6845 = vmatprep.subr.bf16.mxu0 %v6844_v15 }
 0x888   :  { %6316 = vmatprep.mubr.msk.f32.mxu0 %vm423_vm3, %v8353_v62  ;;  %6839 = vmatpush3.bf16.msra.mxu1 %v6836_v59 }
 0x889   :  { %6848 = vmatprep.subr.bf16.mxu1 %v7618_v8 }
 0x88a   :  { %6847 = vmatpush3.bf16.msra.mxu0 %v6844_v15 }
 0x88b   :  { %6317 = vmatmul.mubr.msk.f32.gmra.mrb[42].mxu0 %vm423_vm3, %v8358_v63  ;;  %6331 = vmatmul.mubr.msk.f32.vlgmr.msra.gmra.mrb[34].mxu1 %vm423_vm3, %v8337_v60 }
 0x88c   :  { %6319 = vmatprep.mubr.msk.f32.mxu0 %vm423_vm3, %v8364_v0  ;;  %6333 = vmatprep.mubr.msk.f32.mxu1 %vm423_vm3, %v8343_v61 }
 0x88d   :  { %6850 = vmatpush3.bf16.msra.mxu1 %v8381_v4  ;;  %6860 = vmatprep.subr.bf16.mxu0 %v7618_v8 }
 0x88e   :  { %6851 = vmatprep.subr.bf16.mxu1 %v7618_v8 }
 0x88f   :  { %6334 = vmatmul.mubr.msk.f32.gmra.mrb[36].mxu1 %vm423_vm3, %v8349_v31 }
 0x890   :  { %6336 = vmatprep.mubr.msk.f32.mxu1 %vm423_vm3, %v8353_v62 }
 0x891   :  { %6853 = vmatpush3.bf16.msra.mxu1 %v8387_v11 }
 0x892   :  { %6854 = vmatprep.subr.bf16.mxu1 %v7618_v8 }
 0x893   :  { %6337 = vmatmul.mubr.msk.f32.gmra.mrb[38].mxu1 %vm423_vm3, %v8358_v63 }
 0x894   :  { %6339 = vmatprep.mubr.msk.f32.mxu1 %vm423_vm3, %v8364_v0 }
 0x94e   :  { %v2465_v17 = vpop.f32.mrb[30].mxu1  ;;  %v2542_v18 = vpop.f32.mrb[36].mxu0 }
 0x94f   :  { %v2469_v6 = vadd.f32 %v2465_v17, %v2391_v16  ;;  %v6279_v12 = vpop.f32.mrb[31].mxu1  ;;  %v6290_v19 = vpop.f32.mrb[37].mxu0  ;;  %v2546_v22 = vadd.f32 %v2542_v18, %v2393_v24  ;;  %v3041_v18 = vld [vmem:[#allocation21 + $0x8] sm:$0xff]  ;;  %v3042_v24 = vld [vmem:[#allocation21 + $0x10] sm:$0xff] }
 0x950   :  { %v3044_v12 = vld [vmem:[#allocation23] sm:$0xff]  ;;  %v3045_v19 = vld [vmem:[#allocation23 + $0x8] sm:$0xff] }
 0x951   :  { %v5553_v23 = vmul.f32 -1.442695, %v2469_v6  ;;  %v5555_v26 = vmul.f32 -1.442695, %v2546_v22  ;;  %v3043_v22 = vld [vmem:[#allocation21 + $0x18] sm:$0xff] }
 0x953   :  { %7109 = vpow2.f32 %v5553_v23 }
 0x954   :  { %7111 = vpow2.f32 %v5555_v26  ;;  %v8446_v26 = vpack.c.bf16 %v3045_v19, %v3044_v12 }
 0x956   :  { %v2619_v29 = vpop.f32.mrb[32].mxu1  ;;  %v6312_v30 = vpop.f32.mrb[38].mxu0 }
 0x957   :  { %v2747_v32 = vadd.f32 %v6312_v30, %v8402_v25  ;;  %v6301_v33 = vpop.f32.mrb[33].mxu1  ;;  %v2741_v28 = vpop.f32.mrb[39].mxu0  ;;  %v2620_v2 = vadd.f32 %v8155_v42, %v2619_v29  ;;  %v3040_v42 = vld [vmem:[#allocation21] sm:$0xff]  ;;  %v3046_v29 = vld [vmem:[#allocation23 + $0x10] sm:$0xff]  ;;  %v3047_v30 = vld [vmem:[#allocation23 + $0x18] sm:$0xff] }
 0x958   :  { %v2742_v34 = vadd.f32 %v8402_v25, %v2741_v28  ;;  %v8444_v23 = vpack.c.bf16 %v3041_v18, %v3040_v42 }
 0x959   :  { %2781 = vst.msk [vmem:[#allocation2 + $0x8] sm:$0xff] %vm423_vm3, %v2747_v32 }
 0x95a   :  { %2780 = vst.msk [vmem:[#allocation2] sm:$0xff] %vm423_vm3, %v2742_v34  ;;  %v6315_v35 = vpop.f32.mrb[40].mxu0  ;;  %v5575_v34 = vld [vmem:[#allocation24] ss:$0 sm:$0xff] }
 0x95b   :  { %v2757_v36 = vadd.f32 %v6315_v35, %v8402_v25  ;;  %v2751_v37 = vpop.f32.mrb[41].mxu0 }
 0x95c   :  { %v2752_v38 = vadd.f32 %v8402_v25, %v2751_v37 }
 0x95d   :  { %v7110_v40 = vpop.eup %7109  ;;  %2783 = vst.msk [vmem:[#allocation2 + $0x18] sm:$0xff] %vm423_vm3, %v2757_v36 }
 0x95e   :  { %v2473_v41 = vadd.f32 1.0, %v7110_v40  ;;  %2782 = vst.msk [vmem:[#allocation2 + $0x10] sm:$0xff] %vm423_vm3, %v2752_v38  ;;  %v6318_v43 = vpop.f32.mrb[42].mxu0  ;;  %v6332_v44 = vpop.f32.mrb[34].mxu1 }
 0x95f   :  { %v2767_v45 = vadd.f32 %v6318_v43, %v8402_v25  ;;  %v2871_v46 = vadd.f32 %v6332_v44, %v8413_v39  ;;  %v2761_v47 = vpop.f32.mrb[43].mxu0  ;;  %v2865_v48 = vpop.f32.mrb[35].mxu1 }
 0x960   :  { %7113 = vrcp.f32 %v2473_v41  ;;  %v2762_v49 = vadd.f32 %v8402_v25, %v2761_v47  ;;  %v2866_v50 = vadd.f32 %v8413_v39, %v2865_v48  ;;  %v7112_v55 = vpop.eup %7111 }
 0x961   :  { %2785 = vst.msk [vmem:[#allocation2 + $0x28] sm:$0xff] %vm423_vm3, %v2767_v45  ;;  %2905 = vst.msk [vmem:[#allocation3 + $0x8] sm:$0xff] %vm423_vm3, %v2871_v46  ;;  %v2550_v58 = vadd.f32 1.0, %v7112_v55  ;;  %v3051_v36 = vld [vmem:[#allocation2] sm:$0xff] }
 0x962   :  { %2784 = vst.msk [vmem:[#allocation2 + $0x20] sm:$0xff] %vm423_vm3, %v2762_v49  ;;  %2904 = vst.msk [vmem:[#allocation3] sm:$0xff] %vm423_vm3, %v2866_v50  ;;  %v6335_v51 = vpop.f32.mrb[36].mxu1 }
 0x963   :  { %v2881_v52 = vadd.f32 %v6335_v51, %v8413_v39  ;;  %v2875_v54 = vpop.f32.mrb[37].mxu1  ;;  %7115 = vrcp.f32 %v2550_v58 }
 0x964   :  { %v2876_v21 = vadd.f32 %v8413_v39, %v2875_v54 }
 0x965   :  { %2907 = vst.msk [vmem:[#allocation3 + $0x18] sm:$0xff] %vm423_vm3, %v2881_v52 }
 0x966   :  { %2906 = vst.msk [vmem:[#allocation3 + $0x10] sm:$0xff] %vm423_vm3, %v2876_v21  ;;  %v6338_v57 = vpop.f32.mrb[38].mxu1 }
 0x967   :  { %v2891_v27 = vadd.f32 %v6338_v57, %v8413_v39  ;;  %v2885_v59 = vpop.f32.mrb[39].mxu1 }
 0x968   :  { %v2886_v1 = vadd.f32 %v8413_v39, %v2885_v59 }
 0x969   :  { %2909 = vst.msk [vmem:[#allocation3 + $0x28] sm:$0xff] %vm423_vm3, %v2891_v27  ;;  %v3052_v48 = vld [vmem:[#allocation3] sm:$0xff] }
 0x96a   :  { %v7114_v3 = vpop.eup %7113  ;;  %2908 = vst.msk [vmem:[#allocation3 + $0x20] sm:$0xff] %vm423_vm3, %v2886_v1 }
 0x96b   :  { %v2623_v5 = vmul.f32 %v7114_v3, %v2620_v2 }
 0x96d   :  { %v2624_v9 = vadd.f32 %v2623_v5, %v2395_v7  ;;  %v7116_v10 = vpop.eup %7115 }
 0x96e   :  { %v2626_v13 = vsub.f32 1.0, %v7116_v10  ;;  %v2628_v15 = vmul.f32 %v7116_v10, %v8308_v53  ;;  %v8442_v53 = vld [vmem:[#allocation6 + $0x8] sm:$0xff] }
 0x96f   :  { %7117 = vtanh.f32 %v2624_v9  ;;  %v8511_v9 = vld [vmem:[#allocation26] ss:$0 sm:$0xff] }
 0x979   :  { %v7118_v14 = vpop.eup %7117 }
 0x97a   :  { %v2627_v16 = vmul.f32 %v7118_v14, %v2626_v13 }
 0x97c   :  { %v2629_v17 = vadd.f32 %v2628_v15, %v2627_v16 }
 0x97e   :  { %2631 = vst.msk [vmem:[#allocation5 + $0x38] sm:$0xff] %vm423_vm3, %v2629_v17 }
 0x985   :  { %v2639_v6 = vld [vmem:[#allocation5 + $0x38] sm:$0xff] }
 0x986   :  { %6320 = vmatmul.mubr.msk.f32.gmra.mrb[44].mxu0 %vm423_vm3, %v2639_v6  ;;  %6340 = vmatmul.mubr.msk.f32.gmra.mrb[40].mxu1 %vm423_vm3, %v2639_v6 }
 0x987   :  { %6350 = vmatprep.mubr.msk.f32.mxu0 %vm423_vm3, %v8323_v56  ;;  %6370 = vmatprep.mubr.msk.f32.mxu1 %vm7619_vm2, %v7620_v20  ;;  %v8455_v56 = vpack.c.bf16 %v3043_v22, %v3042_v24 }
 0x98a   :  { %6351 = vmatmul.mubr.msk.f32.vlgmr.msra.gmra.mrb[46].mxu0 %vm423_vm3, %v8337_v60  ;;  %6371 = vmatmul.mubr.msk.f32.vlgmr.msra.gmra.mrb[42].mxu1 %vm423_vm3, %v8442_v53  ;;  %v8461_v60 = vpack.c.bf16 %v3047_v30, %v3046_v29 }
 0x98b   :  { %6856 = vmatpush3.bf16.msra.mxu1 %v8444_v23  ;;  %6353 = vmatprep.mubr.msk.f32.mxu0 %vm423_vm3, %v8343_v61 }
 0x98c   :  { %6857 = vmatprep.subr.bf16.mxu1 %v7618_v8  ;;  %6381 = vmatprep.mubr.msk.f32.mxu1 %vm7619_vm2, %v7620_v20 }
 0x98d   :  { %6862 = vmatpush3.bf16.msra.mxu0 %v8446_v26 }
 0x98e   :  { %6354 = vmatmul.mubr.msk.f32.gmra.mrb[48].mxu0 %vm423_vm3, %v8349_v31  ;;  %6863 = vmatprep.subr.bf16.mxu0 %v7618_v8 }
 0x98f   :  { %6859 = vmatpush3.bf16.msra.mxu1 %v8455_v56  ;;  %6356 = vmatprep.mubr.msk.f32.mxu0 %vm423_vm3, %v8353_v62 }
 0x990   :  { %6866 = vmatprep.subr.bf16.mxu1 %v7618_v8 }
 0x991   :  { %6865 = vmatpush3.bf16.msra.mxu0 %v8461_v60 }
 0x992   :  { %6382 = vmatmul.mubr.msk.f32.vlgmr.msra.gmra.mrb[44].mxu1 %vm423_vm3, %v8442_v53  ;;  %6357 = vmatmul.mubr.msk.f32.gmra.mrb[50].mxu0 %vm423_vm3, %v8358_v63 }
 0x993   :  { %6359 = vmatprep.mubr.msk.f32.mxu0 %vm423_vm3, %v8364_v0  ;;  %6868 = vmatpush3.bf16.msra.mxu1 %v8381_v4 }
 0x994   :  { %6872 = vmatprep.subr.bf16.mxu0 %v7618_v8  ;;  %6869 = vmatprep.subr.bf16.mxu1 %v7618_v8 }
 0x995   :  { %6403 = vmatprep.mubr.msk.f32.mxu1 %vm7619_vm2, %v7620_v20 }
 0x996   :  { %6360 = vmatmul.mubr.msk.f32.gmra.mrb[52].mxu0 %vm423_vm3, %v2639_v6 }
 0x997   :  { %6392 = vmatprep.mubr.msk.f32.mxu0 %vm7619_vm2, %v7620_v20  ;;  %6871 = vmatpush3.bf16.msra.mxu1 %v8387_v11 }
 0x998   :  { %6878 = vmatprep.subr.bf16.mxu1 %v7618_v8 }
 0x99a   :  { %6393 = vmatmul.mubr.msk.f32.vlgmr.msra.gmra.mrb[54].mxu0 %vm423_vm3, %v8442_v53 }
 0x99b   :  { %6874 = vmatpush3.bf16.msra.mxu0 %v8444_v23  ;;  %6414 = vmatprep.mubr.msk.f32.mxu0 %vm7619_vm2, %v7620_v20 }
 0x99c   :  { %6875 = vmatprep.subr.bf16.mxu0 %v7618_v8 }
 0x99f   :  { %6877 = vmatpush3.bf16.msra.mxu0 %v8455_v56 }
 0x9a0   :  { %6884 = vmatprep.subr.bf16.mxu0 %v7618_v8 }
 0xa59   :  { %v6321_v61 = vpop.f32.mrb[44].mxu0  ;;  %v6341_v31 = vpop.f32.mrb[40].mxu1 }
 0xa5a   :  { %v2777_v62 = vadd.f32 %v6321_v61, %v8402_v25  ;;  %v2901_v63 = vadd.f32 %v6341_v31, %v8413_v39  ;;  %v2771_v0 = vpop.f32.mrb[45].mxu0  ;;  %v2895_v32 = vpop.f32.mrb[41].mxu1 }
 0xa5b   :  { %v2772_v33 = vadd.f32 %v8402_v25, %v2771_v0  ;;  %v2896_v28 = vadd.f32 %v8413_v39, %v2895_v32  ;;  %v3296_v0 = vld [vmem:[#allocation3 + $0x8] sm:$0xff] }
 0xa5c   :  { %2787 = vst.msk [vmem:[#allocation2 + $0x38] sm:$0xff] %vm423_vm3, %v2777_v62  ;;  %2911 = vst.msk [vmem:[#allocation3 + $0x38] sm:$0xff] %vm423_vm3, %v2901_v63 }
 0xa5d   :  { %2786 = vst.msk [vmem:[#allocation2 + $0x30] sm:$0xff] %vm423_vm3, %v2772_v33  ;;  %2910 = vst.msk [vmem:[#allocation3 + $0x30] sm:$0xff] %vm423_vm3, %v2896_v28  ;;  %v6352_v35 = vpop.f32.mrb[46].mxu0  ;;  %v3123_v37 = vpop.f32.mrb[42].mxu1 }
 0xa5e   :  { %v2995_v38 = vadd.f32 %v6352_v35, %v5575_v34  ;;  %v3127_v40 = vadd.f32 %v3123_v37, %v3051_v36  ;;  %v2989_v41 = vpop.f32.mrb[47].mxu0  ;;  %v6372_v43 = vpop.f32.mrb[43].mxu1 }
 0xa5f   :  { %v2990_v44 = vadd.f32 %v5575_v34, %v2989_v41 }
 0xa60   :  { %3029 = vst.msk [vmem:[#allocation4 + $0x8] sm:$0xff] %vm423_vm3, %v2995_v38  ;;  %v5585_v25 = vmul.f32 -1.442695, %v3127_v40 }
 0xa61   :  { %3028 = vst.msk [vmem:[#allocation4] sm:$0xff] %vm423_vm3, %v2990_v44  ;;  %v6355_v39 = vpop.f32.mrb[48].mxu0 }
 0xa62   :  { %7119 = vpow2.f32 %v5585_v25  ;;  %v3005_v45 = vadd.f32 %v6355_v39, %v5575_v34  ;;  %v2999_v46 = vpop.f32.mrb[49].mxu0 }
 0xa63   :  { %v3000_v47 = vadd.f32 %v5575_v34, %v2999_v46 }
 0xa64   :  { %3031 = vst.msk [vmem:[#allocation4 + $0x18] sm:$0xff] %vm423_vm3, %v3005_v45 }
 0xa65   :  { %3030 = vst.msk [vmem:[#allocation4 + $0x10] sm:$0xff] %vm423_vm3, %v3000_v47  ;;  %v3200_v49 = vpop.f32.mrb[44].mxu1  ;;  %v6358_v50 = vpop.f32.mrb[50].mxu0 }
 0xa66   :  { %v3204_v51 = vadd.f32 %v3200_v49, %v3052_v48  ;;  %v3015_v52 = vadd.f32 %v6358_v50, %v5575_v34  ;;  %v3009_v54 = vpop.f32.mrb[51].mxu0  ;;  %v6383_v55 = vpop.f32.mrb[45].mxu1  ;;  %v3533_v50 = vld [vmem:[#allocation2 + $0x10] sm:$0xff] }
 0xa67   :  { %v3010_v21 = vadd.f32 %v5575_v34, %v3009_v54  ;;  %v3297_v44 = vld [vmem:[#allocation4 + $0x8] sm:$0xff] }
 0xa68   :  { %v5587_v57 = vmul.f32 -1.442695, %v3204_v51  ;;  %3033 = vst.msk [vmem:[#allocation4 + $0x28] sm:$0xff] %vm423_vm3, %v3015_v52  ;;  %v3053_v17 = vld [vmem:[#allocation4] sm:$0xff] }
 0xa69   :  { %3032 = vst.msk [vmem:[#allocation4 + $0x20] sm:$0xff] %vm423_vm3, %v3010_v21  ;;  %v6361_v58 = vpop.f32.mrb[52].mxu0 }
 0xa6a   :  { %7121 = vpow2.f32 %v5587_v57  ;;  %v3025_v27 = vadd.f32 %v6361_v58, %v5575_v34  ;;  %v3019_v59 = vpop.f32.mrb[53].mxu0  ;;  %v3534_v58 = vld [vmem:[#allocation3 + $0x10] sm:$0xff] }
 0xa6b   :  { %v3020_v1 = vadd.f32 %v5575_v34, %v3019_v59 }
 0xa6c   :  { %v7120_v2 = vpop.eup %7119  ;;  %3035 = vst.msk [vmem:[#allocation4 + $0x38] sm:$0xff] %vm423_vm3, %v3025_v27 }
 0xa6d   :  { %v3131_v3 = vadd.f32 1.0, %v7120_v2  ;;  %3034 = vst.msk [vmem:[#allocation4 + $0x30] sm:$0xff] %vm423_vm3, %v3020_v1  ;;  %v3283_v5 = vpop.f32.mrb[54].mxu0 }
 0xa6e   :  { %v6394_v7 = vpop.f32.mrb[55].mxu0  ;;  %v3284_v14 = vadd.f32 %v8511_v9, %v3283_v5 }
 0xa6f   :  { %7123 = vrcp.f32 %v3131_v3 }
 0xa74   :  { %v7122_v10 = vpop.eup %7121 }
 0xa75   :  { %v3208_v13 = vadd.f32 1.0, %v7122_v10 }
 0xa77   :  { %7125 = vrcp.f32 %v3208_v13 }
 0xa79   :  { %v7124_v15 = vpop.eup %7123 }
 0xa7a   :  { %v3287_v16 = vmul.f32 %v7124_v15, %v3284_v14 }
 0xa7c   :  { %v3288_v42 = vadd.f32 %v3287_v16, %v3053_v17  ;;  %v3535_v16 = vld [vmem:[#allocation4 + $0x10] sm:$0xff] }
 0xa7e   :  { %7127 = vtanh.f32 %v3288_v42 }
 0xa81   :  { %v7126_v18 = vpop.eup %7125 }
 0xa82   :  { %v3290_v6 = vsub.f32 1.0, %v7126_v18  ;;  %v3292_v24 = vmul.f32 %v7126_v18, %v8442_v53  ;;  %v3295_v53 = vld [vmem:[#allocation2 + $0x8] sm:$0xff] }
 0xa88   :  { %v7128_v12 = vpop.eup %7127 }
 0xa89   :  { %v3291_v19 = vmul.f32 %v7128_v12, %v3290_v6 }
 0xa8b   :  { %v3293_v22 = vadd.f32 %v3292_v24, %v3291_v19 }
 0xa8d   :  { %3294 = vst.msk [vmem:[#allocation5] sm:$0xff] %vm423_vm3, %v3293_v22  ;;  %6404 = vmatmul.mubr.msk.f32.vlgmr.msra.gmra.mrb[46].mxu1 %vm423_vm3, %v3293_v22  ;;  %6415 = vmatmul.mubr.msk.f32.vlgmr.msra.gmra.mrb[56].mxu0 %vm423_vm3, %v3293_v22 }
 0xa8e   :  { %6880 = vmatpush3.bf16.msra.mxu1 %v8446_v26  ;;  %6425 = vmatprep.mubr.msk.f32.mxu1 %vm7619_vm2, %v7620_v20 }
 0xa8f   :  { %6881 = vmatprep.subr.bf16.mxu1 %v7618_v8  ;;  %6886 = vmatpush3.bf16.msra.mxu0 %v8381_v4 }
 0xa90   :  { %6887 = vmatprep.subr.bf16.mxu0 %v7618_v8  ;;  %6436 = vmatprep.mubr.msk.f32.mxu0 %vm7619_vm2, %v7620_v20 }
 0xa92   :  { %6883 = vmatpush3.bf16.msra.mxu1 %v8461_v60 }
 0xa93   :  { %6890 = vmatprep.subr.bf16.mxu1 %v7618_v8  ;;  %6889 = vmatpush3.bf16.msra.mxu0 %v8387_v11 }
 0xa94   :  { %6896 = vmatprep.subr.bf16.mxu0 %v7618_v8 }
 0xa95   :  { %6426 = vmatmul.mubr.msk.f32.vlgmr.msra.gmra.mrb[48].mxu1 %vm423_vm3, %v3293_v22 }
 0xa96   :  { %6892 = vmatpush3.bf16.msra.mxu1 %v8444_v23  ;;  %6447 = vmatprep.mubr.msk.f32.mxu1 %vm7619_vm2, %v7620_v20 }
 0xa97   :  { %6893 = vmatprep.subr.bf16.mxu1 %v7618_v8 }
 0xa9a   :  { %6895 = vmatpush3.bf16.msra.mxu1 %v8455_v56 }
 0xa9b   :  { %6902 = vmatprep.subr.bf16.mxu1 %v7618_v8 }
 0xb60   :  { %v3367_v29 = vpop.f32.mrb[46].mxu1  ;;  %v3444_v30 = vpop.f32.mrb[56].mxu0 }
 0xb61   :  { %v3371_v61 = vadd.f32 %v3367_v29, %v3295_v53  ;;  %v6405_v31 = vpop.f32.mrb[47].mxu1  ;;  %v6416_v62 = vpop.f32.mrb[57].mxu0  ;;  %v3448_v32 = vadd.f32 %v3444_v30, %v3296_v0 }
 0xb63   :  { %v5591_v63 = vmul.f32 -1.442695, %v3371_v61  ;;  %v5593_v33 = vmul.f32 -1.442695, %v3448_v32 }
 0xb65   :  { %7129 = vpow2.f32 %v5591_v63  ;;  %v3772_v63 = vld [vmem:[#allocation3 + $0x18] sm:$0xff] }
 0xb66   :  { %7131 = vpow2.f32 %v5593_v33 }
 0xb68   :  { %v3521_v28 = vpop.f32.mrb[48].mxu1 }
 0xb69   :  { %v6427_v34 = vpop.f32.mrb[49].mxu1  ;;  %v3522_v40 = vadd.f32 %v8511_v9, %v3521_v28 }
 0xb6f   :  { %v7130_v35 = vpop.eup %7129 }
 0xb70   :  { %v3375_v36 = vadd.f32 1.0, %v7130_v35  ;;  %v7132_v37 = vpop.eup %7131 }
 0xb71   :  { %v3452_v38 = vadd.f32 1.0, %v7132_v37 }
 0xb72   :  { %7133 = vrcp.f32 %v3375_v36 }
 0xb73   :  { %7135 = vrcp.f32 %v3452_v38 }
 0xb7c   :  { %v7134_v41 = vpop.eup %7133 }
 0xb7d   :  { %v3525_v43 = vmul.f32 %v7134_v41, %v3522_v40  ;;  %v7136_v39 = vpop.eup %7135 }
 0xb7e   :  { %v3528_v45 = vsub.f32 1.0, %v7136_v39  ;;  %v3530_v48 = vmul.f32 %v7136_v39, %v3293_v22  ;;  %v3771_v22 = vld [vmem:[#allocation2 + $0x18] sm:$0xff] }
 0xb7f   :  { %v3526_v25 = vadd.f32 %v3525_v43, %v3297_v44  ;;  %v3773_v43 = vld [vmem:[#allocation4 + $0x18] sm:$0xff] }
 0xb81   :  { %7137 = vtanh.f32 %v3526_v25 }
 0xb8b   :  { %v7138_v46 = vpop.eup %7137 }
 0xb8c   :  { %v3529_v47 = vmul.f32 %v7138_v46, %v3528_v45 }
 0xb8e   :  { %v3531_v49 = vadd.f32 %v3530_v48, %v3529_v47 }
 0xb90   :  { %3532 = vst.msk [vmem:[#allocation5 + $0x8] sm:$0xff] %vm423_vm3, %v3531_v49  ;;  %6437 = vmatmul.mubr.msk.f32.vlgmr.msra.gmra.mrb[58].mxu0 %vm423_vm3, %v3531_v49  ;;  %6448 = vmatmul.mubr.msk.f32.vlgmr.msra.gmra.mrb[50].mxu1 %vm423_vm3, %v3531_v49 }
 0xb91   :  { %6898 = vmatpush3.bf16.msra.mxu0 %v8446_v26  ;;  %6458 = vmatprep.mubr.msk.f32.mxu0 %vm7619_vm2, %v7620_v20 }
 0xb92   :  { %6899 = vmatprep.subr.bf16.mxu0 %v7618_v8  ;;  %6904 = vmatpush3.bf16.msra.mxu1 %v8381_v4 }
 0xb93   :  { %6905 = vmatprep.subr.bf16.mxu1 %v7618_v8  ;;  %6469 = vmatprep.mubr.msk.f32.mxu1 %vm7619_vm2, %v7620_v20 }
 0xb95   :  { %6901 = vmatpush3.bf16.msra.mxu0 %v8461_v60 }
 0xb96   :  { %6908 = vmatprep.subr.bf16.mxu0 %v7618_v8  ;;  %6907 = vmatpush3.bf16.msra.mxu1 %v8387_v11 }
 0xb97   :  { %6914 = vmatprep.subr.bf16.mxu1 %v7618_v8 }
 0xb98   :  { %6459 = vmatmul.mubr.msk.f32.vlgmr.msra.gmra.mrb[60].mxu0 %vm423_vm3, %v3531_v49 }
 0xb99   :  { %6910 = vmatpush3.bf16.msra.mxu0 %v8444_v23  ;;  %6480 = vmatprep.mubr.msk.f32.mxu0 %vm7619_vm2, %v7620_v20 }
 0xb9a   :  { %6911 = vmatprep.subr.bf16.mxu0 %v7618_v8 }
 0xb9d   :  { %6913 = vmatpush3.bf16.msra.mxu0 %v8455_v56 }
 0xb9e   :  { %6920 = vmatprep.subr.bf16.mxu0 %v7618_v8 }
 0xc63   :  { %v3605_v51 = vpop.f32.mrb[58].mxu0  ;;  %v3682_v52 = vpop.f32.mrb[50].mxu1 }
 0xc64   :  { %v3609_v54 = vadd.f32 %v3605_v51, %v3533_v50  ;;  %v6438_v55 = vpop.f32.mrb[59].mxu0  ;;  %v6449_v21 = vpop.f32.mrb[51].mxu1  ;;  %v3686_v27 = vadd.f32 %v3682_v52, %v3534_v58 }
 0xc66   :  { %v5596_v57 = vmul.f32 -1.442695, %v3609_v54  ;;  %v5598_v59 = vmul.f32 -1.442695, %v3686_v27 }
 0xc68   :  { %7139 = vpow2.f32 %v5596_v57  ;;  %v4010_v57 = vld [vmem:[#allocation3 + $0x20] sm:$0xff] }
 0xc69   :  { %7141 = vpow2.f32 %v5598_v59 }
 0xc6b   :  { %v3759_v1 = vpop.f32.mrb[60].mxu0 }
 0xc6c   :  { %v6460_v2 = vpop.f32.mrb[61].mxu0  ;;  %v3760_v13 = vadd.f32 %v8511_v9, %v3759_v1 }
 0xc72   :  { %v7140_v3 = vpop.eup %7139 }
 0xc73   :  { %v3613_v5 = vadd.f32 1.0, %v7140_v3  ;;  %v7142_v7 = vpop.eup %7141 }
 0xc74   :  { %v3690_v10 = vadd.f32 1.0, %v7142_v7 }
 0xc75   :  { %7143 = vrcp.f32 %v3613_v5 }
 0xc76   :  { %7145 = vrcp.f32 %v3690_v10 }
 0xc7f   :  { %v7144_v14 = vpop.eup %7143 }
 0xc80   :  { %v3763_v15 = vmul.f32 %v7144_v14, %v3760_v13  ;;  %v7146_v42 = vpop.eup %7145 }
 0xc81   :  { %v3766_v18 = vsub.f32 1.0, %v7146_v42  ;;  %v3768_v19 = vmul.f32 %v7146_v42, %v3531_v49  ;;  %v4009_v49 = vld [vmem:[#allocation2 + $0x20] sm:$0xff] }
 0xc82   :  { %v3764_v17 = vadd.f32 %v3763_v15, %v3535_v16  ;;  %v4011_v15 = vld [vmem:[#allocation4 + $0x20] sm:$0xff] }
 0xc84   :  { %7147 = vtanh.f32 %v3764_v17 }
 0xc8e   :  { %v7148_v6 = vpop.eup %7147 }
 0xc8f   :  { %v3767_v12 = vmul.f32 %v7148_v6, %v3766_v18 }
 0xc91   :  { %v3769_v24 = vadd.f32 %v3768_v19, %v3767_v12 }
 0xc93   :  { %3770 = vst.msk [vmem:[#allocation5 + $0x10] sm:$0xff] %vm423_vm3, %v3769_v24  ;;  %6470 = vmatmul.mubr.msk.f32.vlgmr.msra.gmra.mrb[52].mxu1 %vm423_vm3, %v3769_v24  ;;  %6481 = vmatmul.mubr.msk.f32.vlgmr.msra.gmra.mrb[62].mxu0 %vm423_vm3, %v3769_v24 }
 0xc94   :  { %6916 = vmatpush3.bf16.msra.mxu1 %v8446_v26  ;;  %6491 = vmatprep.mubr.msk.f32.mxu1 %vm7619_vm2, %v7620_v20 }
 0xc95   :  { %6917 = vmatprep.subr.bf16.mxu1 %v7618_v8  ;;  %6922 = vmatpush3.bf16.msra.mxu0 %v8381_v4 }
 0xc96   :  { %6923 = vmatprep.subr.bf16.mxu0 %v7618_v8  ;;  %6502 = vmatprep.mubr.msk.f32.mxu0 %vm7619_vm2, %v7620_v20 }
 0xc98   :  { %6919 = vmatpush3.bf16.msra.mxu1 %v8461_v60 }
 0xc99   :  { %6926 = vmatprep.subr.bf16.mxu1 %v7618_v8  ;;  %6925 = vmatpush3.bf16.msra.mxu0 %v8387_v11 }
 0xc9a   :  { %6932 = vmatprep.subr.bf16.mxu0 %v7618_v8 }
 0xc9b   :  { %6492 = vmatmul.mubr.msk.f32.vlgmr.msra.gmra.mrb[54].mxu1 %vm423_vm3, %v3769_v24 }
 0xc9c   :  { %6928 = vmatpush3.bf16.msra.mxu1 %v8444_v23  ;;  %6513 = vmatprep.mubr.msk.f32.mxu1 %vm7619_vm2, %v7620_v20 }
 0xc9d   :  { %6929 = vmatprep.subr.bf16.mxu1 %v7618_v8 }
 0xca0   :  { %6931 = vmatpush3.bf16.msra.mxu1 %v8455_v56 }
 0xca1   :  { %6938 = vmatprep.subr.bf16.mxu1 %v7618_v8 }
 0xd66   :  { %v3843_v53 = vpop.f32.mrb[52].mxu1  ;;  %v3920_v29 = vpop.f32.mrb[62].mxu0 }
 0xd67   :  { %v3847_v30 = vadd.f32 %v3843_v53, %v3771_v22  ;;  %v6471_v61 = vpop.f32.mrb[53].mxu1  ;;  %v6482_v31 = vpop.f32.mrb[63].mxu0  ;;  %v3924_v0 = vadd.f32 %v3920_v29, %v3772_v63 }
 0xd69   :  { %v5601_v62 = vmul.f32 -1.442695, %v3847_v30  ;;  %v5603_v32 = vmul.f32 -1.442695, %v3924_v0 }
 0xd6b   :  { %7149 = vpow2.f32 %v5601_v62  ;;  %v4248_v62 = vld [vmem:[#allocation3 + $0x28] sm:$0xff] }
 0xd6c   :  { %7151 = vpow2.f32 %v5603_v32 }
 0xd6e   :  { %v3997_v33 = vpop.f32.mrb[54].mxu1 }
 0xd6f   :  { %v6493_v28 = vpop.f32.mrb[55].mxu1  ;;  %v3998_v38 = vadd.f32 %v8511_v9, %v3997_v33 }
 0xd75   :  { %v7150_v34 = vpop.eup %7149 }
 0xd76   :  { %v3851_v35 = vadd.f32 1.0, %v7150_v34  ;;  %v7152_v36 = vpop.eup %7151 }
 0xd77   :  { %v3928_v37 = vadd.f32 1.0, %v7152_v36 }
 0xd78   :  { %7153 = vrcp.f32 %v3851_v35 }
 0xd79   :  { %7155 = vrcp.f32 %v3928_v37 }
 0xd82   :  { %v7154_v40 = vpop.eup %7153 }
 0xd83   :  { %v4001_v41 = vmul.f32 %v7154_v40, %v3998_v38  ;;  %v7156_v25 = vpop.eup %7155 }
 0xd84   :  { %v4004_v39 = vsub.f32 1.0, %v7156_v25  ;;  %v4006_v47 = vmul.f32 %v7156_v25, %v3769_v24  ;;  %v4247_v24 = vld [vmem:[#allocation2 + $0x28] sm:$0xff] }
 0xd85   :  { %v4002_v44 = vadd.f32 %v4001_v41, %v3773_v43  ;;  %v4249_v41 = vld [vmem:[#allocation4 + $0x28] sm:$0xff] }
 0xd87   :  { %7157 = vtanh.f32 %v4002_v44 }
 0xd91   :  { %v7158_v45 = vpop.eup %7157 }
 0xd92   :  { %v4005_v46 = vmul.f32 %v7158_v45, %v4004_v39 }
 0xd94   :  { %v4007_v48 = vadd.f32 %v4006_v47, %v4005_v46 }
 0xd96   :  { %4008 = vst.msk [vmem:[#allocation5 + $0x18] sm:$0xff] %vm423_vm3, %v4007_v48  ;;  %6503 = vmatmul.mubr.msk.f32.vlgmr.msra.gmra.mrb[64].mxu0 %vm423_vm3, %v4007_v48  ;;  %6514 = vmatmul.mubr.msk.f32.vlgmr.msra.gmra.mrb[56].mxu1 %vm423_vm3, %v4007_v48 }
 0xd97   :  { %6934 = vmatpush3.bf16.msra.mxu0 %v8446_v26  ;;  %6524 = vmatprep.mubr.msk.f32.mxu0 %vm7619_vm2, %v7620_v20 }
 0xd98   :  { %6935 = vmatprep.subr.bf16.mxu0 %v7618_v8  ;;  %6940 = vmatpush3.bf16.msra.mxu1 %v8381_v4 }
 0xd99   :  { %6941 = vmatprep.subr.bf16.mxu1 %v7618_v8  ;;  %6535 = vmatprep.mubr.msk.f32.mxu1 %vm7619_vm2, %v7620_v20 }
 0xd9b   :  { %6937 = vmatpush3.bf16.msra.mxu0 %v8461_v60 }
 0xd9c   :  { %6944 = vmatprep.subr.bf16.mxu0 %v7618_v8  ;;  %6943 = vmatpush3.bf16.msra.mxu1 %v8387_v11 }
 0xd9d   :  { %6950 = vmatprep.subr.bf16.mxu1 %v7618_v8 }
 0xd9e   :  { %6525 = vmatmul.mubr.msk.f32.vlgmr.msra.gmra.mrb[66].mxu0 %vm423_vm3, %v4007_v48 }
 0xd9f   :  { %6946 = vmatpush3.bf16.msra.mxu0 %v8444_v23  ;;  %6546 = vmatprep.mubr.msk.f32.mxu0 %vm7619_vm2, %v7620_v20 }
 0xda0   :  { %6947 = vmatprep.subr.bf16.mxu0 %v7618_v8 }
 0xda3   :  { %6949 = vmatpush3.bf16.msra.mxu0 %v8455_v56 }
 0xda4   :  { %6956 = vmatprep.subr.bf16.mxu0 %v7618_v8 }
 0xe69   :  { %v4081_v50 = vpop.f32.mrb[64].mxu0  ;;  %v4158_v51 = vpop.f32.mrb[56].mxu1 }
 0xe6a   :  { %v4085_v52 = vadd.f32 %v4081_v50, %v4009_v49  ;;  %v6504_v54 = vpop.f32.mrb[65].mxu0  ;;  %v6515_v55 = vpop.f32.mrb[57].mxu1  ;;  %v4162_v58 = vadd.f32 %v4158_v51, %v4010_v57 }
 0xe6c   :  { %v5606_v21 = vmul.f32 -1.442695, %v4085_v52  ;;  %v5608_v27 = vmul.f32 -1.442695, %v4162_v58 }
 0xe6e   :  { %7159 = vpow2.f32 %v5606_v21 }
 0xe6f   :  { %7161 = vpow2.f32 %v5608_v27 }
 0xe71   :  { %v4235_v59 = vpop.f32.mrb[66].mxu0 }
 0xe72   :  { %v6526_v1 = vpop.f32.mrb[67].mxu0  ;;  %v4236_v10 = vadd.f32 %v8511_v9, %v4235_v59 }
 0xe78   :  { %v7160_v2 = vpop.eup %7159 }
 0xe79   :  { %v4089_v3 = vadd.f32 1.0, %v7160_v2  ;;  %v7162_v5 = vpop.eup %7161 }
 0xe7a   :  { %v4166_v7 = vadd.f32 1.0, %v7162_v5 }
 0xe7b   :  { %7163 = vrcp.f32 %v4089_v3 }
 0xe7c   :  { %7165 = vrcp.f32 %v4166_v7  ;;  %v4487_v7 = vld [vmem:[#allocation4 + $0x30] sm:$0xff] }
 0xe85   :  { %v7164_v13 = vpop.eup %7163 }
 0xe86   :  { %v4239_v14 = vmul.f32 %v7164_v13, %v4236_v10  ;;  %v7166_v17 = vpop.eup %7165 }
 0xe87   :  { %v4242_v42 = vsub.f32 1.0, %v7166_v17  ;;  %v4244_v12 = vmul.f32 %v7166_v17, %v4007_v48  ;;  %v4485_v48 = vld [vmem:[#allocation2 + $0x30] sm:$0xff] }
 0xe88   :  { %v4240_v16 = vadd.f32 %v4239_v14, %v4011_v15 }
 0xe8a   :  { %7167 = vtanh.f32 %v4240_v16 }
 0xe94   :  { %v7168_v18 = vpop.eup %7167 }
 0xe95   :  { %v4243_v6 = vmul.f32 %v7168_v18, %v4242_v42  ;;  %v4977_v42 = vld [vmem:[#allocation27] sm:$0xff]  ;;  %v4978_v18 = vld [vmem:[#allocation27 + $0x8] sm:$0xff] }
 0xe97   :  { %v4245_v19 = vadd.f32 %v4244_v12, %v4243_v6  ;;  %v4969_v12 = vld [vmem:[%s8850_s18] sm:$0xff] }
 0xe99   :  { %4246 = vst.msk [vmem:[#allocation5 + $0x20] sm:$0xff] %vm423_vm3, %v4245_v19  ;;  %6536 = vmatmul.mubr.msk.f32.vlgmr.msra.gmra.mrb[58].mxu1 %vm423_vm3, %v4245_v19  ;;  %6547 = vmatmul.mubr.msk.f32.vlgmr.msra.gmra.mrb[68].mxu0 %vm423_vm3, %v4245_v19 }
 0xe9a   :  { %6952 = vmatpush3.bf16.msra.mxu1 %v8446_v26  ;;  %6557 = vmatprep.mubr.msk.f32.mxu1 %vm7619_vm2, %v7620_v20 }
 0xe9b   :  { %6953 = vmatprep.subr.bf16.mxu1 %v7618_v8  ;;  %6958 = vmatpush3.bf16.msra.mxu0 %v8381_v4 }
 0xe9c   :  { %6959 = vmatprep.subr.bf16.mxu0 %v7618_v8  ;;  %6568 = vmatprep.mubr.msk.f32.mxu0 %vm7619_vm2, %v7620_v20 }
 0xe9e   :  { %6955 = vmatpush3.bf16.msra.mxu1 %v8461_v60 }
 0xe9f   :  { %6962 = vmatprep.subr.bf16.mxu1 %v7618_v8  ;;  %6961 = vmatpush3.bf16.msra.mxu0 %v8387_v11 }
 0xea0   :  { %6968 = vmatprep.subr.bf16.mxu0 %v7618_v8 }
 0xea1   :  { %6558 = vmatmul.mubr.msk.f32.vlgmr.msra.gmra.mrb[60].mxu1 %vm423_vm3, %v4245_v19 }
 0xea2   :  { %6964 = vmatpush3.bf16.msra.mxu1 %v8444_v23  ;;  %6579 = vmatprep.mubr.msk.f32.mxu1 %vm7619_vm2, %v7620_v20 }
 0xea3   :  { %6965 = vmatprep.subr.bf16.mxu1 %v7618_v8 }
 0xea6   :  { %6967 = vmatpush3.bf16.msra.mxu1 %v8455_v56 }
 0xea7   :  { %6974 = vmatprep.subr.bf16.mxu1 %v7618_v8 }
 0xf6c   :  { %v4319_v22 = vpop.f32.mrb[58].mxu1  ;;  %v4396_v53 = vpop.f32.mrb[68].mxu0 }
 0xf6d   :  { %v4323_v29 = vadd.f32 %v4319_v22, %v4247_v24  ;;  %v6537_v30 = vpop.f32.mrb[59].mxu1  ;;  %v6548_v61 = vpop.f32.mrb[69].mxu0  ;;  %v4400_v63 = vadd.f32 %v4396_v53, %v4248_v62  ;;  %v4979_v24 = vld [vmem:[#allocation27 + $0x10] sm:$0xff]  ;;  %v4980_v22 = vld [vmem:[#allocation27 + $0x18] sm:$0xff]  ;;  %v4970_v53 = vld [vmem:[%s8850_s18 + $0x8] sm:$0xff] }
 0xf6e   :  { %v4974_v30 = vld [vmem:[%s8850_s18 + $0x28] sm:$0xff]  ;;  %v4964_v62 = vld [vmem:[#allocation5 + $0x18] sm:$0xff] }
 0xf6f   :  { %v5611_v31 = vmul.f32 -1.442695, %v4323_v29  ;;  %v5613_v0 = vmul.f32 -1.442695, %v4400_v63  ;;  %v6996_v29 = vpack.c.bf16 %v4980_v22, %v4979_v24  ;;  %v4962_v61 = vld [vmem:[#allocation5 + $0x8] sm:$0xff]  ;;  %v4965_v63 = vld [vmem:[#allocation5 + $0x20] sm:$0xff] }
 0xf71   :  { %7169 = vpow2.f32 %v5611_v31  ;;  %v4963_v31 = vld [vmem:[#allocation5 + $0x10] sm:$0xff] }
 0xf72   :  { %7171 = vpow2.f32 %v5613_v0 }
 0xf74   :  { %v4473_v32 = vpop.f32.mrb[60].mxu1 }
 0xf75   :  { %v6559_v33 = vpop.f32.mrb[61].mxu1  ;;  %v4474_v37 = vadd.f32 %v8511_v9, %v4473_v32 }
 0xf76   :  { %v5266_v33 = vld [vmem:[%s8807_s26] sm:$0xff] }
 0xf7b   :  { %v7170_v28 = vpop.eup %7169 }
 0xf7c   :  { %v4327_v34 = vadd.f32 1.0, %v7170_v28  ;;  %v7172_v35 = vpop.eup %7171  ;;  %v5267_v28 = vld [vmem:[%s8807_s26 + $0x8] sm:$0xff] }
 0xf7d   :  { %v4404_v36 = vadd.f32 1.0, %v7172_v35  ;;  %v5268_v35 = vld [vmem:[%s8807_s26 + $0x10] sm:$0xff] }
 0xf7e   :  { %7173 = vrcp.f32 %v4327_v34  ;;  %v7000_v34 = vpack.c.bf16 %v5267_v28, %v5266_v33 }
 0xf7f   :  { %7175 = vrcp.f32 %v4404_v36  ;;  %v5269_v36 = vld [vmem:[%s8807_s26 + $0x18] sm:$0xff] }
 0xf88   :  { %v7174_v38 = vpop.eup %7173 }
 0xf89   :  { %v4477_v40 = vmul.f32 %v7174_v38, %v4474_v37  ;;  %v7176_v44 = vpop.eup %7175  ;;  %v4975_v37 = vld [vmem:[%s8850_s18 + $0x30] sm:$0xff]  ;;  %v7004_v38 = vpack.c.bf16 %v5269_v36, %v5268_v35 }
 0xf8a   :  { %v4480_v25 = vsub.f32 1.0, %v7176_v44  ;;  %v4482_v46 = vmul.f32 %v7176_v44, %v4245_v19  ;;  %v6992_v19 = vpack.c.bf16 %v4978_v18, %v4977_v42 }
 0xf8b   :  { %v4478_v43 = vadd.f32 %v4477_v40, %v4249_v41  ;;  %v4976_v40 = vld [vmem:[%s8850_s18 + $0x38] sm:$0xff] }
 0xf8c   :  { %v4723_v41 = vld [vmem:[#allocation2 + $0x38] sm:$0xff] }
 0xf8d   :  { %7177 = vtanh.f32 %v4478_v43 }
 0xf97   :  { %v7178_v39 = vpop.eup %7177 }
 0xf98   :  { %v4481_v45 = vmul.f32 %v7178_v39, %v4480_v25 }
 0xf9a   :  { %v4483_v47 = vadd.f32 %v4482_v46, %v4481_v45 }
 0xf9c   :  { %4484 = vst.msk [vmem:[#allocation5 + $0x28] sm:$0xff] %vm423_vm3, %v4483_v47  ;;  %6569 = vmatmul.mubr.msk.f32.vlgmr.msra.gmra.mrb[70].mxu0 %vm423_vm3, %v4483_v47  ;;  %6580 = vmatmul.mubr.msk.f32.vlgmr.msra.gmra.mrb[62].mxu1 %vm423_vm3, %v4483_v47 }
 0xf9d   :  { %6970 = vmatpush3.bf16.msra.mxu0 %v8446_v26  ;;  %6590 = vmatprep.mubr.msk.f32.mxu0 %vm7619_vm2, %v7620_v20 }
 0xf9e   :  { %6971 = vmatprep.subr.bf16.mxu0 %v7618_v8  ;;  %6976 = vmatpush3.bf16.msra.mxu1 %v8381_v4  ;;  %v8651_v4 = vld [vmem:[#allocation29] sm:$0xf] }
 0xf9f   :  { %6977 = vmatprep.subr.bf16.mxu1 %v7618_v8  ;;  %6601 = vmatprep.mubr.msk.f32.mxu1 %vm7619_vm2, %v7620_v20 }
 0xfa1   :  { %6973 = vmatpush3.bf16.msra.mxu0 %v8461_v60 }
 0xfa2   :  { %6980 = vmatprep.subr.bf16.mxu0 %v7618_v8  ;;  %6979 = vmatpush3.bf16.msra.mxu1 %v8387_v11 }
 0xfa3   :  { %6986 = vmatprep.subr.bf16.mxu1 %v7618_v8  ;;  %v4966_v0 = vld [vmem:[#allocation5 + $0x28] sm:$0xff] }
 0xfa4   :  { %6591 = vmatmul.mubr.msk.f32.vlgmr.msra.gmra.mrb[72].mxu0 %vm423_vm3, %v4483_v47 }
 0xfa5   :  { %6982 = vmatpush3.bf16.msra.mxu0 %v8444_v23  ;;  %6612 = vmatprep.mubr.msk.f32.mxu0 %vm7619_vm2, %v7620_v20  ;;  %v4486_v23 = vld [vmem:[#allocation3 + $0x30] sm:$0xff] }
 0xfa6   :  { %6983 = vmatprep.subr.bf16.mxu0 %v7618_v8 }
 0xfa9   :  { %6985 = vmatpush3.bf16.msra.mxu0 %v8455_v56 }
 0xfaa   :  { %6626 = vmatprep.subr.msk.mxu0 %vm314_vm0, %v8651_v4 }
0x106f   :  { %v4557_v11 = vpop.f32.mrb[70].mxu0  ;;  %v4634_v49 = vpop.f32.mrb[62].mxu1 }
0x1070   :  { %v4561_v50 = vadd.f32 %v4557_v11, %v4485_v48  ;;  %v6570_v51 = vpop.f32.mrb[71].mxu0  ;;  %v6581_v52 = vpop.f32.mrb[63].mxu1  ;;  %v4638_v55 = vadd.f32 %v4634_v49, %v4486_v23 }
0x1072   :  { %v5616_v54 = vmul.f32 -1.442695, %v4561_v50  ;;  %v5618_v21 = vmul.f32 -1.442695, %v4638_v55  ;;  %v8731_v50 = vld [vmem:[%s8806_s25] ss:$0 sm:$0xff] }
0x1074   :  { %7179 = vpow2.f32 %v5616_v54 }
0x1075   :  { %7181 = vpow2.f32 %v5618_v21 }
0x1077   :  { %v4711_v57 = vpop.f32.mrb[72].mxu0 }
0x1078   :  { %v6592_v58 = vpop.f32.mrb[73].mxu0  ;;  %v4712_v2 = vadd.f32 %v8511_v9, %v4711_v57 }
0x107e   :  { %v7180_v56 = vpop.eup %7179 }
0x107f   :  { %v4565_v27 = vadd.f32 1.0, %v7180_v56  ;;  %v7182_v59 = vpop.eup %7181 }
0x1080   :  { %v4642_v1 = vadd.f32 1.0, %v7182_v59 }
0x1081   :  { %7183 = vrcp.f32 %v4565_v27 }
0x1082   :  { %7185 = vrcp.f32 %v4642_v1 }
0x108b   :  { %v7184_v3 = vpop.eup %7183 }
0x108c   :  { %v4715_v5 = vmul.f32 %v7184_v3, %v4712_v2  ;;  %v7186_v13 = vpop.eup %7185 }
0x108d   :  { %v4718_v14 = vsub.f32 1.0, %v7186_v13  ;;  %v4720_v17 = vmul.f32 %v7186_v13, %v4483_v47  ;;  %v4724_v47 = vld [vmem:[#allocation3 + $0x38] sm:$0xff] }
0x108e   :  { %v4716_v10 = vadd.f32 %v4715_v5, %v4487_v7 }
0x1090   :  { %7187 = vtanh.f32 %v4716_v10 }
0x109a   :  { %v7188_v15 = vpop.eup %7187 }
0x109b   :  { %v4719_v16 = vmul.f32 %v7188_v15, %v4718_v14 }
0x109d   :  { %v8656_v6 = vadd.f32 %v4720_v17, %v4719_v16 }
0x109f   :  { %4722 = vst.msk [vmem:[#allocation5 + $0x30] sm:$0xff] %vm423_vm3, %v8656_v6  ;;  %6602 = vmatmul.mubr.msk.f32.vlgmr.msra.gmra.mrb[64].mxu1 %vm423_vm3, %v8656_v6  ;;  %6613 = vmatmul.mubr.msk.f32.vlgmr.msra.gmra.mrb[74].mxu0 %vm423_vm3, %v8656_v6 }
0x10a0   :  { %6988 = vmatpush3.bf16.msra.mxu1 %v8446_v26  ;;  %6627 = vmatpush3.msk.msra.mxu0 %vm314_vm0, %v8651_v4  ;;  %v4971_v26 = vld [vmem:[%s8850_s18 + $0x10] sm:$0xff] }
0x10a1   :  { %6989 = vmatprep.subr.bf16.mxu1 %v7618_v8  ;;  %6628 = vmatprep.mubr.msk.f32.mxu0 %vm289_vm1, %v4969_v12  ;;  %v4972_v8 = vld [vmem:[%s8850_s18 + $0x18] sm:$0xff] }
0x10a2   :  { %6993 = vmatprep.subr.bf16.mxu0 %v6992_v19  ;;  %6623 = vmatprep.mubr.msk.f32.mxu1 %vm7619_vm2, %v7620_v20  ;;  %v4973_v20 = vld [vmem:[%s8850_s18 + $0x20] sm:$0xff] }
0x10a3   :  { %6629 = vmatmul.mubr.msk.f32.vlgmr.msra.gmra.mrb[76].mxu0 %vm289_vm1, %v4970_v53 }
0x10a4   :  { %6991 = vmatpush3.bf16.msra.mxu1 %v8461_v60  ;;  %6995 = vmatpush3.bf16.msra.mxu0 %v6992_v19  ;;  %v4961_v60 = vld [vmem:[#allocation5] sm:$0xff] }
0x10a5   :  { %6631 = vmatprep.mubr.msk.f32.mxu0 %vm289_vm1, %v4971_v26  ;;  %6997 = vmatprep.subr.bf16.mxu0 %v6996_v29 }
0x10a6   :  { %7008 = vmatprep.subr.msk.mxu1 %vm314_vm0, %v8651_v4  ;;  %v4967_v32 = vld [vmem:[#allocation5 + $0x30] sm:$0xff] }
0x10a7   :  { %6624 = vmatmul.mubr.msk.f32.vlgmr.msra.gmra.mrb[66].mxu1 %vm423_vm3, %v8656_v6  ;;  %6632 = vmatmul.mubr.msk.f32.gmra.mrb[78].mxu0 %vm289_vm1, %v4972_v8 }
0x10a8   :  { %6999 = vmatpush3.bf16.msra.mxu0 %v6996_v29  ;;  %6648 = vmatprep.mubr.msk.f32.mxu0 %vm423_vm3, %v4961_v60  ;;  %v4725_v29 = vld [vmem:[#allocation4 + $0x38] sm:$0xff] }
0x10a9   :  { %7009 = vmatpush3.msk.msra.mxu1 %vm314_vm0, %v8651_v4  ;;  %6634 = vmatprep.mubr.msk.f32.mxu1 %vm289_vm1, %v4973_v20 }
0x10aa   :  { %7001 = vmatprep.subr.bf16.mxu1 %v7000_v34 }
0x10ab   :  { %6649 = vmatmul.mubr.msk.f32.vlgmr.msra.gmra.mrb[76].mxu0 %vm423_vm3, %v4962_v61  ;;  %6635 = vmatmul.mubr.msk.f32.vlgmr.msra.gmra.mrb[68].mxu1 %vm289_vm1, %v4974_v30 }
0x10ac   :  { %6651 = vmatprep.mubr.msk.f32.mxu0 %vm423_vm3, %v4963_v31  ;;  %7003 = vmatpush3.bf16.msra.mxu1 %v7000_v34 }
0x10ad   :  { %6637 = vmatprep.mubr.msk.f32.mxu1 %vm289_vm1, %v4975_v37  ;;  %7005 = vmatprep.subr.bf16.mxu1 %v7004_v38 }
0x10af   :  { %6652 = vmatmul.mubr.msk.f32.gmra.mrb[78].mxu0 %vm423_vm3, %v4964_v62  ;;  %6638 = vmatmul.mubr.msk.f32.gmra.mrb[70].mxu1 %vm289_vm1, %v4976_v40 }
0x10b0   :  { %6654 = vmatprep.mubr.msk.f32.mxu0 %vm423_vm3, %v4965_v63  ;;  %7007 = vmatpush3.bf16.msra.mxu1 %v7004_v38 }
0x10b3   :  { %6655 = vmatmul.mubr.msk.f32.gmra.mrb[80].mxu0 %vm423_vm3, %v4966_v0  ;;  %v8752_v0 = vld [vmem:[%s8808_s27] ss:$0 sm:$0xff]  ;;  %s7621_s27 = smov [#allocation30]  }
0x10b4   :  { %6657 = vmatprep.mubr.msk.f32.mxu0 %vm423_vm3, %v4967_v32  ;;  %s5467_s7 = sshll.u32 %s7621_s27, 4  ;;  %s5468_s7 = int_to_ptr.vmem [resolvable:$true] %s5467_s7 }
0x10b5   :  { %s7561_s18 = scalar_lea.vmem %s5468_s7, 1024  ;;  %p7566_p9 = scmp.lt.s32.totalorder %s5468_s7, %s5468_s7 }
0x10b6   :  { %p7562_p8 = scmp.ne.s32.totalorder %s5468_s7, %s7561_s18  ;;  %p7567_p10 = scmp.lt.s32.totalorder %s7561_s18, %s7561_s18 }
0x10b8   :  { %p7568_p11 = por %p7567_p10, %p7566_p9 }
0x10ba   :  { %p7569_p12 = pnand %p7568_p11, %p7562_p8 }
0x1172   :  { %v4795_v43 = vpop.f32.mrb[64].mxu1  ;;  %v4872_v44 = vpop.f32.mrb[74].mxu0 }
0x1173   :  { %v4799_v25 = vadd.f32 %v4795_v43, %v4723_v41  ;;  %v6603_v39 = vpop.f32.mrb[65].mxu1  ;;  %v6614_v45 = vpop.f32.mrb[75].mxu0  ;;  %v4876_v4 = vadd.f32 %v4872_v44, %v4724_v47 }
0x1175   :  { %v5621_v46 = vmul.f32 -1.442695, %v4799_v25  ;;  %v5623_v48 = vmul.f32 -1.442695, %v4876_v4 }
0x1177   :  { %7189 = vpow2.f32 %v5621_v46 }
0x1178   :  { %7191 = vpow2.f32 %v5623_v48 }
0x117a   :  { %v4949_v11 = vpop.f32.mrb[66].mxu1 }
0x117b   :  { %v6625_v49 = vpop.f32.mrb[67].mxu1  ;;  %v4950_v19 = vadd.f32 %v8511_v9, %v4949_v11 }
0x117e   :  { %v6650_v51 = vpop.f32.mrb[76].mxu0  ;;  %v6636_v52 = vpop.f32.mrb[68].mxu1 }
0x117f   :  { %v5251_v54 = vadd.f32 %v6650_v51, %v8731_v50  ;;  %v5204_v23 = vpop.f32.mrb[77].mxu0  ;;  %v5095_v55 = vpop.f32.mrb[69].mxu1 }
0x1180   :  { %v5250_v21 = vadd.f32 %v8731_v50, %v5204_v23 }
0x1181   :  { %v7190_v57 = vpop.eup %7189  ;;  %v5259_v59 = vmax.f32 %v5251_v54, 0.0 }
0x1182   :  { %v4803_v58 = vadd.f32 1.0, %v7190_v57  ;;  %v5258_v56 = vmax.f32 %v5250_v21, 0.0  ;;  %v6653_v27 = vpop.f32.mrb[78].mxu0  ;;  %v7192_v15 = vpop.eup %7191 }
0x1183   :  { %v5253_v1 = vadd.f32 %v6653_v27, %v8731_v50  ;;  %v5214_v2 = vpop.f32.mrb[79].mxu0  ;;  %v4880_v18 = vadd.f32 1.0, %v7192_v15  ;;  %v6639_v62 = vpop.f32.mrb[70].mxu1 }
0x1184   :  { %7193 = vrcp.f32 %v4803_v58  ;;  %v5252_v3 = vadd.f32 %v8731_v50, %v5214_v2  ;;  %6668 = vmatprep.mubr.msk.f32.mxu1 %vm423_vm3, %v5258_v56  ;;  %v5105_v63 = vpop.f32.mrb[71].mxu1 }
0x1185   :  { %6669 = vmatmul.mubr.msk.f32.vlgmr.msra.gmra.mrb[72].mxu1 %vm423_vm3, %v5259_v59  ;;  %v5261_v10 = vmax.f32 %v5253_v1, 0.0  ;;  %7195 = vrcp.f32 %v4880_v18 }
0x1186   :  { %v5260_v5 = vmax.f32 %v5252_v3, 0.0  ;;  %v6656_v7 = vpop.f32.mrb[80].mxu0 }
0x1187   :  { %v5230_v13 = vadd.f32 %v6656_v7, %v6636_v52  ;;  %v5224_v14 = vpop.f32.mrb[81].mxu0 }
0x1188   :  { %v5225_v16 = vadd.f32 %v5224_v14, %v5095_v55  ;;  %6671 = vmatprep.mubr.msk.f32.mxu1 %vm423_vm3, %v5260_v5 }
0x1189   :  { %v5255_v17 = vadd.f32 %v8731_v50, %v5230_v13  ;;  %6672 = vmatmul.mubr.msk.f32.gmra.mrb[74].mxu1 %vm423_vm3, %v5261_v10 }
0x118a   :  { %v5254_v42 = vadd.f32 %v8731_v50, %v5225_v16 }
0x118b   :  { %v5263_v24 = vmax.f32 %v5255_v17, 0.0 }
0x118c   :  { %v5262_v12 = vmax.f32 %v5254_v42, 0.0 }
0x118e   :  { %v7194_v22 = vpop.eup %7193  ;;  %6674 = vmatprep.mubr.msk.f32.mxu1 %vm423_vm3, %v5262_v12 }
0x118f   :  { %v4953_v53 = vmul.f32 %v7194_v22, %v4950_v19  ;;  %6675 = vmatmul.mubr.msk.f32.gmra.mrb[76].mxu1 %vm423_vm3, %v5263_v24  ;;  %v7196_v8 = vpop.eup %7195 }
0x1190   :  { %v4956_v20 = vsub.f32 1.0, %v7196_v8  ;;  %v4958_v30 = vmul.f32 %v7196_v8, %v8656_v6 }
0x1191   :  { %v4954_v26 = vadd.f32 %v4953_v53, %v4725_v29 }
0x1193   :  { %7197 = vtanh.f32 %v4954_v26 }
0x119d   :  { %v7198_v60 = vpop.eup %7197 }
0x119e   :  { %v4957_v61 = vmul.f32 %v7198_v60, %v4956_v20 }
0x11a0   :  { %v4959_v31 = vadd.f32 %v4958_v30, %v4957_v61 }
0x11a2   :  { %4960 = vst.msk [vmem:[#allocation5 + $0x38] sm:$0xff] %vm423_vm3, %v4959_v31 }
0x11a9   :  { %v4968_v9 = vld [vmem:[#allocation5 + $0x38] sm:$0xff] }
0x11aa   :  { %6658 = vmatmul.mubr.msk.f32.gmra.mrb[82].mxu0 %vm423_vm3, %v4968_v9 }
0x1258   :  { %v6670_v32 = vpop.f32.mrb[72].mxu1 }
0x1259   :  { %v5373_v33 = vadd.f32 %v6670_v32, %v8752_v0  ;;  %v5367_v28 = vpop.f32.mrb[73].mxu1 }
0x125a   :  { %v5368_v6 = vadd.f32 %v8752_v0, %v5367_v28 }
0x125b   :  { %v5653_v34 = vmul.f32 -1.442695, %v5373_v33 }
0x125c   :  { %v5652_v35 = vmul.f32 -1.442695, %v5368_v6  ;;  %v6673_v36 = vpop.f32.mrb[74].mxu1 }
0x125d   :  { %7199 = vpow2.f32 %v5653_v34  ;;  %v5383_v37 = vadd.f32 %v6673_v36, %v8752_v0  ;;  %v5377_v38 = vpop.f32.mrb[75].mxu1 }
0x125e   :  { %7201 = vpow2.f32 %v5652_v35  ;;  %v5378_v40 = vadd.f32 %v8752_v0, %v5377_v38 }
0x125f   :  { %v5655_v41 = vmul.f32 -1.442695, %v5383_v37 }
0x1260   :  { %v5654_v43 = vmul.f32 -1.442695, %v5378_v40 }
0x1261   :  { %7203 = vpow2.f32 %v5655_v41 }
0x1262   :  { %7205 = vpow2.f32 %v5654_v43  ;;  %v6676_v44 = vpop.f32.mrb[76].mxu1 }
0x1263   :  { %v5393_v25 = vadd.f32 %v6676_v44, %v8752_v0  ;;  %v5387_v39 = vpop.f32.mrb[77].mxu1 }
0x1264   :  { %v5388_v45 = vadd.f32 %v8752_v0, %v5387_v39 }
0x1265   :  { %v5657_v46 = vmul.f32 -1.442695, %v5393_v25 }
0x1266   :  { %v5656_v47 = vmul.f32 -1.442695, %v5388_v45 }
0x1267   :  { %v7200_v4 = vpop.eup %7199  ;;  %7207 = vpow2.f32 %v5657_v46 }
0x1268   :  { %v7202_v48 = vpop.eup %7201  ;;  %v5431_v11 = vadd.f32 1.0, %v7200_v4  ;;  %7209 = vpow2.f32 %v5656_v47 }
0x1269   :  { %v5430_v49 = vadd.f32 1.0, %v7202_v48 }
0x126a   :  { %7211 = vrcp.f32 %v5431_v11 }
0x126b   :  { %v7204_v51 = vpop.eup %7203  ;;  %7213 = vrcp.f32 %v5430_v49 }
0x126c   :  { %v7206_v52 = vpop.eup %7205  ;;  %v5433_v54 = vadd.f32 1.0, %v7204_v51 }
0x126d   :  { %v5432_v23 = vadd.f32 1.0, %v7206_v52 }
0x126e   :  { %7215 = vrcp.f32 %v5433_v54 }
0x126f   :  { %7217 = vrcp.f32 %v5432_v23 }
0x1271   :  { %v7208_v55 = vpop.eup %7207 }
0x1272   :  { %v7210_v21 = vpop.eup %7209  ;;  %v5435_v57 = vadd.f32 1.0, %v7208_v55 }
0x1273   :  { %v5434_v58 = vadd.f32 1.0, %v7210_v21 }
0x1274   :  { %v7212_v56 = vpop.eup %7211  ;;  %7219 = vrcp.f32 %v5435_v57 }
0x1275   :  { %v7214_v27 = vpop.eup %7213  ;;  %5455 = vst [vmem:[#allocation30 + $0x8] sm:$0xff] %v7212_v56  ;;  %7221 = vrcp.f32 %v5434_v58 }
0x1276   :  { %5454 = vst [vmem:[#allocation30] sm:$0xff] %v7214_v27 }
0x1278   :  { %v7216_v59 = vpop.eup %7215 }
0x1279   :  { %v7218_v1 = vpop.eup %7217  ;;  %5457 = vst [vmem:[#allocation30 + $0x18] sm:$0xff] %v7216_v59 }
0x127a   :  { %5456 = vst [vmem:[#allocation30 + $0x10] sm:$0xff] %v7218_v1 }
0x127d   :  { %v6659_v2 = vpop.f32.mrb[82].mxu0 }
0x127e   :  { %v7220_v3 = vpop.eup %7219  ;;  %v5240_v5 = vadd.f32 %v6659_v2, %v6639_v62  ;;  %v5234_v7 = vpop.f32.mrb[83].mxu0 }
0x127f   :  { %v7222_v10 = vpop.eup %7221  ;;  %5459 = vst [vmem:[#allocation30 + $0x28] sm:$0xff] %v7220_v3  ;;  %v5235_v13 = vadd.f32 %v5234_v7, %v5105_v63 }
0x1280   :  { %5458 = vst [vmem:[#allocation30 + $0x20] sm:$0xff] %v7222_v10  ;;  %v5257_v14 = vadd.f32 %v8731_v50, %v5240_v5 }
0x1281   :  { %v5256_v15 = vadd.f32 %v8731_v50, %v5235_v13 }
0x1282   :  { %v5265_v17 = vmax.f32 %v5257_v14, 0.0 }
0x1283   :  { %v5264_v16 = vmax.f32 %v5256_v15, 0.0 }
0x1285   :  { %6677 = vmatprep.mubr.msk.f32.mxu1 %vm423_vm3, %v5264_v16 }
0x1286   :  { %6678 = vmatmul.mubr.msk.f32.gmra.mrb[78].mxu1 %vm423_vm3, %v5265_v17 }
0x1359   :  { %v6679_v42 = vpop.f32.mrb[78].mxu1 }
0x135a   :  { %v5403_v18 = vadd.f32 %v6679_v42, %v8752_v0  ;;  %v5397_v12 = vpop.f32.mrb[79].mxu1 }
0x135b   :  { %v5398_v19 = vadd.f32 %v8752_v0, %v5397_v12 }
0x135c   :  { %v5659_v24 = vmul.f32 -1.442695, %v5403_v18 }
0x135d   :  { %v5658_v22 = vmul.f32 -1.442695, %v5398_v19 }
0x135e   :  { %7223 = vpow2.f32 %v5659_v24 }
0x135f   :  { %7225 = vpow2.f32 %v5658_v22 }
0x1368   :  { %v7224_v53 = vpop.eup %7223 }
0x1369   :  { %v7226_v29 = vpop.eup %7225  ;;  %v5437_v26 = vadd.f32 1.0, %v7224_v53 }
0x136a   :  { %v5436_v50 = vadd.f32 1.0, %v7226_v29 }
0x136b   :  { %7227 = vrcp.f32 %v5437_v26 }
0x136c   :  { %7229 = vrcp.f32 %v5436_v50 }
0x1375   :  { %v7228_v8 = vpop.eup %7227 }
0x1376   :  { %v7230_v20 = vpop.eup %7229  ;;  %5461 = vst [vmem:[#allocation30 + $0x38] sm:$0xff] %v7228_v8 }
0x1377   :  { %5460 = vst [vmem:[#allocation30 + $0x30] sm:$0xff] %v7230_v20 }
0x1378   :  { %7572 = shalt.err (!%p7569_p12)
}
0x1379   :  { %s8851_s8 = sld [smem:[#allocation53_spill]] }
0x137f   :  { %s7573_s10 = scalar_lea.hbm %s8851_s8, 1024 }
0x1380   :  { %p7574_p13 = scmp.ne.s32.totalorder %s8851_s8, %s7573_s10  ;;  %p7577_p0 = scmp.lt.u32.totalorder %s7573_s10, %s8851_s8 }
0x1382   :  { %p7579_p1 = pnand %p7577_p0, %p7574_p13 }
0x1384   :  { %7582 = shalt.err (!%p7579_p1)
}
0x1385   :  { %5473 = dma.vmem_to_hbm [thread:$0]  %s5468_s7, 1024, %s8851_s8, [#allocation8], %s7607_s9, %s7607_s9, %s7608_s30  }
0x1386   :  { %7599 = dma.done.wait [#allocation8], 1024  }
0x1387   :  { %7600 = vsyncadd [#allocation8], 4294966272 }
0x1388   :  { %5477 = vsyncpa [#allocation7], 1 }
0x1389   :  { %5478 = vsyncpa [#allocation10], 1 }
0x138a   :  { %5479 = vsyncpa [#allocation13], 1 }
0x138b   :  { %5480 = vsyncpa [#allocation16], 1 }
0x138c   :  { %5481 = vsyncpa [#allocation19], 1 }
0x138d   :  { %5482 = vsyncpa [#allocation22], 1 }
0x138e   :  { %5483 = vsyncpa [#allocation25], 1 }
0x138f   :  { %5484 = vsyncpa [#allocation28], 1 }
0x1390   :  { %5485 = vsyncpa [#allocation8], 1 }

</bundles_post_ra>
